<compile_context>
chip_gen: v7x
topology: tpu7x:2x2x1
jax: 0.10.0
libtpu: 0.0.40
codegen_flags: <defaults>
</compile_context>

<pallas_src>
import functools

import jax
import jax.numpy as jnp
from jax.experimental import pallas as pl
from jax.experimental.pallas import tpu as pltpu


def _cdiv(a, b):
    return -(-a // b)


# ----------------------------- Pallas kernels -----------------------------

def _matmul_bias_act_kernel(a_ref, w_ref, b_ref, o_ref, *, act):
    acc = jnp.dot(a_ref[...], w_ref[...], preferred_element_type=jnp.float32)
    acc = acc + b_ref[...]
    if act == "relu":
        acc = jnp.maximum(acc, 0.0)
    elif act == "sigmoid":
        acc = jax.nn.sigmoid(acc)
    elif act == "tanh":
        acc = jnp.tanh(acc)
    o_ref[...] = acc.astype(o_ref.dtype)


def matmul_bias_act(a, w, b, act="none", tm=1024):
    """out = act(a @ w + b);  a:(M,K)  w:(K,N)  b:(N,).

    bf16 MXU inputs, f32 accumulation / bias / activation.  N is padded to a
    multiple of 128 inside the kernel (lane-dense, unmasked stores) and sliced
    back on return.  No pre-padding of `a` along M: grid = ceil(M/tm) and the
    last partial block's out-of-bounds rows are masked on store."""
    M, K = a.shape
    _, N = w.shape
    Np = _cdiv(N, 128) * 128
    a = a.astype(jnp.bfloat16)
    w = w.astype(jnp.bfloat16)
    b2 = b.astype(jnp.float32).reshape(1, N)
    if Np != N:
        w = jnp.pad(w, ((0, 0), (0, Np - N)))
        b2 = jnp.pad(b2, ((0, 0), (0, Np - N)))
    bm = min(M, tm)
    grid_m = _cdiv(M, bm)
    out = pl.pallas_call(
        functools.partial(_matmul_bias_act_kernel, act=act),
        grid=(grid_m,),
        in_specs=[
            pl.BlockSpec((bm, K), lambda i: (i, 0)),
            pl.BlockSpec((K, Np), lambda i: (0, 0)),
            pl.BlockSpec((1, Np), lambda i: (0, 0)),
        ],
        out_specs=pl.BlockSpec((bm, Np), lambda i: (i, 0)),
        out_shape=jax.ShapeDtypeStruct((M, Np), jnp.float32),
        compiler_params=pltpu.CompilerParams(dimension_semantics=("parallel",)),
    )(a, w, b2)
    return out if Np == N else out[:, :N]


def _latent_cluster_kernel(flat_ref, ew_ref, eb_ref, mut_ref, dw_ref, db_ref,
                           lat_ref, q_ref, y_ref, *, alpha):
    """Fused embedding -> Student-t clustering -> deembedding. Latent stays in VMEM."""
    flat = flat_ref[...]                                              # (B, 64)
    z = jnp.dot(flat, ew_ref[...], preferred_element_type=jnp.float32) + eb_ref[...]
    lat_ref[...] = z.astype(lat_ref.dtype)

    mu_t = mut_ref[...]                                               # (D, K)
    z2 = jnp.sum(z * z, axis=1, keepdims=True)                        # (B, 1)
    mu2 = jnp.sum(mu_t * mu_t, axis=0, keepdims=True)                 # (1, K)
    cross = jnp.dot(z, mu_t, preferred_element_type=jnp.float32)      # (B, K) on MXU
    dist2 = jnp.maximum(z2 + mu2 - 2.0 * cross, 0.0)
    q = 1.0 / (1.0 + dist2 / alpha)
    expo = (alpha + 1.0) / 2.0
    if expo != 1.0:                                                   # alpha=1 -> exponent 1
        q = q ** expo
    q_ref[...] = (q / jnp.sum(q, axis=1, keepdims=True)).astype(q_ref.dtype)

    y = jnp.dot(z, dw_ref[...], preferred_element_type=jnp.float32) + db_ref[...]
    y_ref[...] = y.astype(y_ref.dtype)


def latent_cluster_deembed(flat, emb_w, emb_b, mu, demb_w, demb_b, alpha=1.0):
    B, F = flat.shape
    D = emb_w.shape[0]            # torch Linear weight layout: (out, in)
    K = mu.shape[0]
    O = demb_w.shape[0]
    ew = emb_w.T.astype(jnp.float32)            # (F, D)
    eb = emb_b.reshape(1, D).astype(jnp.float32)
    mut = mu.T.astype(jnp.float32)              # (D, K) -- transposed outside the kernel
    dw = demb_w.T.astype(jnp.float32)           # (D, O)
    db = demb_b.reshape(1, O).astype(jnp.float32)
    return pl.pallas_call(
        functools.partial(_latent_cluster_kernel, alpha=alpha),
        grid=(1,),
        in_specs=[
            pl.BlockSpec((B, F), lambda i: (0, 0)),
            pl.BlockSpec((F, D), lambda i: (0, 0)),
            pl.BlockSpec((1, D), lambda i: (0, 0)),
            pl.BlockSpec((D, K), lambda i: (0, 0)),
            pl.BlockSpec((D, O), lambda i: (0, 0)),
            pl.BlockSpec((1, O), lambda i: (0, 0)),
        ],
        out_specs=(pl.BlockSpec((B, D), lambda i: (0, 0)),
                   pl.BlockSpec((B, K), lambda i: (0, 0)),
                   pl.BlockSpec((B, O), lambda i: (0, 0))),
        out_shape=(jax.ShapeDtypeStruct((B, D), jnp.float32),
                   jax.ShapeDtypeStruct((B, K), jnp.float32),
                   jax.ShapeDtypeStruct((B, O), jnp.float32)),
    )(flat.astype(jnp.float32), ew, eb, mut, dw, db)


# ----------------------------- conv glue -----------------------------

def _im2col(x, kh, kw, stride, padding):
    """x: (B,H,W,C) NHWC -> ((B*oh*ow, kh*kw*C), oh, ow); feature order (i,j,c)."""
    B, H, W, C = x.shape
    if padding:
        x = jnp.pad(x, ((0, 0), (padding, padding), (padding, padding), (0, 0)))
    Hp, Wp = H + 2 * padding, W + 2 * padding
    oh = (Hp - kh) // stride + 1
    ow = (Wp - kw) // stride + 1
    cols = []
    for i in range(kh):
        for j in range(kw):
            cols.append(x[:, i:i + stride * oh:stride, j:j + stride * ow:stride, :])
    patches = jnp.concatenate(cols, axis=-1)          # (B, oh, ow, kh*kw*C)
    return patches.reshape(B * oh * ow, kh * kw * C), oh, ow
    # TODO(synk): fold im2col for the 3x3 encoder convs into the kernel (implicit GEMM
    # with halo'd BlockSpec) for large-batch runs; XLA-side im2col kept here for clarity.


def conv2d(x, w, b, stride, padding, act):
    """x NHWC, w: (Cout, Cin, kh, kw) torch layout."""
    Cout, Cin, kh, kw = w.shape
    B = x.shape[0]
    patches, oh, ow = _im2col(x, kh, kw, stride, padding)
    w_mat = jnp.transpose(w, (2, 3, 1, 0)).reshape(kh * kw * Cin, Cout)
    out = matmul_bias_act(patches, w_mat, b, act)
    return out.reshape(B, oh, ow, Cout)


def conv_transpose2d_from_1x1(x_flat, w, b, act):
    """ConvTranspose2d on a 1x1 spatial input == a dense matmul.
    out[b,i,j,cout] = sum_cin x[b,cin] * w[cin,cout,i,j] + b[cout]."""
    Cin, Cout, kh, kw = w.shape
    B = x_flat.shape[0]
    w_mat = jnp.transpose(w, (0, 2, 3, 1)).reshape(Cin, kh * kw * Cout)   # rows cin, cols (i,j,cout)
    b_full = jnp.tile(b, kh * kw)
    out = matmul_bias_act(x_flat, w_mat, b_full, act)                     # (B, kh*kw*Cout)
    return out.reshape(B, kh, kw, Cout)


def conv_transpose2d_s2k3(x, w, b, act):
    """ConvTranspose2d(k=3, stride=2, padding=1, output_padding=1), sub-pixel form.

    The 4 output phases (even/odd row x even/odd col) are computed in one matmul:
    LHS = 2x2 input patches (K = 4*Cin), RHS = a (4*Cin, 4*Cout) phase-weight matrix.
      out[2u+0, 2v+0] = x[u,v]   * w[1,1]
      out[2u+0, 2v+1] = x[u,v]   * w[1,2] + x[u,v+1]  * w[1,0]
      out[2u+1, 2v+0] = x[u,v]   * w[2,1] + x[u+1,v]  * w[0,1]
      out[2u+1, 2v+1] = x[u,v]*w[2,2] + x[u,v+1]*w[2,0] + x[u+1,v]*w[0,2] + x[u+1,v+1]*w[0,0]
    (indices are kernel spatial indices; x padded by one zero row/col on bottom/right)."""
    Cin, Cout, kh, kw = w.shape
    assert kh == 3 and kw == 3
    B, H, W, _ = x.shape
    xp = jnp.pad(x, ((0, 0), (0, 1), (0, 1), (0, 0)))
    patches = jnp.concatenate(
        [xp[:, 0:H, 0:W, :], xp[:, 0:H, 1:W + 1, :],
         xp[:, 1:H + 1, 0:W, :], xp[:, 1:H + 1, 1:W + 1, :]],
        axis=-1).reshape(B * H * W, 4 * Cin)

    def tap(d, du):
        # 1-D: even phase uses kernel index 1 (only du=0 valid);
        #      odd  phase uses kernel index 2 (du=0) or 0 (du=1).
        if d == 0:
            return (du == 0), 1
        return True, (2 if du == 0 else 0)

    zero_blk = jnp.zeros((Cin, Cout), w.dtype)
    rows = []
    for du in (0, 1):
        for dv in (0, 1):
            cols = []
            for dr in (0, 1):
                for dc in (0, 1):
                    vr, ir = tap(dr, du)
                    vc, ic = tap(dc, dv)
                    cols.append(w[:, :, ir, ic] if (vr and vc) else zero_blk)
            rows.append(jnp.concatenate(cols, axis=1))      # (Cin, 4*Cout)
    w_mat = jnp.concatenate(rows, axis=0)                   # (4*Cin, 4*Cout)
    b_full = jnp.tile(b, 4)

    out = matmul_bias_act(patches, w_mat, b_full, act)      # (B*H*W, 4*Cout)
    out = out.reshape(B, H, W, 2, 2, Cout)
    out = jnp.transpose(out, (0, 1, 3, 2, 4, 5)).reshape(B, 2 * H, 2 * W, Cout)
    return out


# ----------------------------- model -----------------------------

def init_params(key, dim=32, n_clusters=10):
    keys = jax.random.split(key, 16)

    def u(k, shape, fan_in):
        bound = 1.0 / jnp.sqrt(float(fan_in))
        return jax.random.uniform(k, shape, jnp.float32, -bound, bound)

    p = {}
    # encoder: Conv2d(1,16,3,s2,p1) / Conv2d(16,32,3,s2,p1) / Conv2d(32,64,7)
    p["enc1_w"] = u(keys[0], (16, 1, 3, 3), 1 * 9);    p["enc1_b"] = u(keys[1], (16,), 1 * 9)
    p["enc2_w"] = u(keys[2], (32, 16, 3, 3), 16 * 9);  p["enc2_b"] = u(keys[3], (32,), 16 * 9)
    p["enc3_w"] = u(keys[4], (64, 32, 7, 7), 32 * 49); p["enc3_b"] = u(keys[5], (64,), 32 * 49)
    # Linear(64, dim) and Linear(dim, 64)  (torch weight layout: (out, in))
    p["emb_w"] = u(keys[6], (dim, 64), 64);   p["emb_b"] = u(keys[7], (dim,), 64)
    p["demb_w"] = u(keys[8], (64, dim), dim); p["demb_b"] = u(keys[9], (64,), dim)
    # clustering centroids: xavier_uniform_ on (n_clusters, dim)
    bound = jnp.sqrt(6.0 / (n_clusters + dim))
    p["mu"] = jax.random.uniform(keys[10], (n_clusters, dim), jnp.float32, -bound, bound)
    # decoder: ConvT(64,32,7) / ConvT(32,16,3,s2,p1,op1) / ConvT(16,1,3,s2,p1,op1)
    # (torch fan_in for ConvTranspose2d weight (Cin,Cout,kh,kw) is Cout*kh*kw)
    p["dec1_w"] = u(keys[11], (64, 32, 7, 7), 32 * 49); p["dec1_b"] = u(keys[12], (32,), 32 * 49)
    p["dec2_w"] = u(keys[13], (32, 16, 3, 3), 16 * 9);  p["dec2_b"] = u(keys[14], (16,), 16 * 9)
    p["dec3_w"] = u(keys[15], (16, 1, 3, 3), 1 * 9)
    p["dec3_b"] = u(jax.random.fold_in(key, 99), (1,), 1 * 9)
    return p


def cluster_autoencoder_forward(params, x_nchw, alpha=1.0):
    # x: (B, 1, 28, 28) NCHW (PyTorch convention) -> NHWC internally
    x = jnp.transpose(x_nchw, (0, 2, 3, 1)).astype(jnp.float32)
    # encoder
    x = conv2d(x, params["enc1_w"], params["enc1_b"], stride=2, padding=1, act="relu")   # (B,14,14,16)
    x = conv2d(x, params["enc2_w"], params["enc2_b"], stride=2, padding=1, act="relu")   # (B,7,7,32)
    x = conv2d(x, params["enc3_w"], params["enc3_b"], stride=1, padding=0, act="none")   # (B,1,1,64)
    B = x.shape[0]
    flat = x.reshape(B, 64)                                                              # torch.flatten
    # fused: embedding -> clustering -> deembedding (latent stays in VMEM)
    latent, q, y = latent_cluster_deembed(flat, params["emb_w"], params["emb_b"],
                                          params["mu"], params["demb_w"], params["demb_b"],
                                          alpha=alpha)
    # decoder
    y = conv_transpose2d_from_1x1(y, params["dec1_w"], params["dec1_b"], act="relu")     # (B,7,7,32)
    y = conv_transpose2d_s2k3(y, params["dec2_w"], params["dec2_b"], act="relu")         # (B,14,14,16)
    y = conv_transpose2d_s2k3(y, params["dec3_w"], params["dec3_b"], act="sigmoid")      # (B,28,28,1)
    x_rec = jnp.transpose(y, (0, 3, 1, 2))                                               # back to NCHW
    return x_rec, q, latent


if __name__ == "__main__":
    key = jax.random.PRNGKey(0)
    k_params, k_x = jax.random.split(key)
    dim, n_clusters = 32, 10
    params = init_params(k_params, dim=dim, n_clusters=n_clusters)
    # input size implied by the architecture: 28x28 -> encoder output (B,64,1,1)
    x = jax.random.uniform(k_x, (2, 1, 28, 28), jnp.float32)

    fwd = jax.jit(functools.partial(cluster_autoencoder_forward, alpha=1.0))
    x_rec, q, latent = fwd(params, x)
    jax.block_until_ready((x_rec, q, latent))

    assert x_rec.shape == (2, 1, 28, 28)
    assert q.shape == (2, n_clusters)
    assert latent.shape == (2, dim)
    assert bool(jnp.all(jnp.isfinite(x_rec))) and bool(jnp.all(jnp.isfinite(q)))
    # q rows are a softmax-like distribution: must sum to 1
    assert bool(jnp.allclose(jnp.sum(q, axis=1), 1.0, atol=1e-5))
    print("KERNEL_OK")
</pallas_src>

<mosaic_0001>
module attributes {stable_mosaic.version = 11 : i64} {
  func.func @_matmul_bias_act_kernel(%arg0: i32, %arg1: memref<392x9xbf16, #tpu.memory_space<vmem>>, %arg2: memref<9x128xbf16, #tpu.memory_space<vmem>>, %arg3: memref<1x128xf32, #tpu.memory_space<vmem>>, %arg4: memref<392x128xf32, #tpu.memory_space<vmem>>) attributes {dimension_semantics = [#tpu.dimension_semantics<parallel>], iteration_bounds = array<i64: 1>, scalar_prefetch = 0 : i64, scratch_operands = 0 : i64, tpu.core_type = #tpu.core_type<tc>, window_params = [{transform_indices = @transform_0, window_bounds = array<i64: 392, 9>}, {pipeline_mode = #tpu.pipeline_mode<synchronous>, transform_indices = @transform_1, window_bounds = array<i64: 9, 128>}, {pipeline_mode = #tpu.pipeline_mode<synchronous>, transform_indices = @transform_2, window_bounds = array<i64: 1, 128>}, {transform_indices = @transform_3, window_bounds = array<i64: 392, 128>}]} {
    %c0 = arith.constant 0 : index
    %c0_0 = arith.constant 0 : index
    %0 = vector.load %arg1[%c0, %c0_0] : memref<392x9xbf16, #tpu.memory_space<vmem>>, vector<392x9xbf16>
    %c0_1 = arith.constant 0 : index
    %c0_2 = arith.constant 0 : index
    %1 = vector.load %arg2[%c0_1, %c0_2] : memref<9x128xbf16, #tpu.memory_space<vmem>>, vector<9x128xbf16>
    %cst = arith.constant dense<0.000000e+00> : vector<392x128xf32>
    %2 = tpu.matmul %0, %1, %cst {dimension_numbers = #tpu.dot_dimension_numbers<[1], [0], [0], [1], [0, 0, 1, 1], [], []>} : vector<392x9xbf16>, vector<9x128xbf16>, vector<392x128xf32> -> vector<392x128xf32>
    %c0_3 = arith.constant 0 : index
    %c0_4 = arith.constant 0 : index
    %3 = vector.load %arg3[%c0_3, %c0_4] : memref<1x128xf32, #tpu.memory_space<vmem>>, vector<1x128xf32>
    %4 = vector.broadcast %3 : vector<1x128xf32> to vector<392x128xf32>
    %5 = arith.addf %2, %4 : vector<392x128xf32>
    %cst_5 = arith.constant 0.000000e+00 : f32
    %6 = vector.broadcast %cst_5 : f32 to vector<392x128xf32>
    %7 = arith.maximumf %5, %6 : vector<392x128xf32>
    %c0_6 = arith.constant 0 : index
    %c0_7 = arith.constant 0 : index
    %8 = vector.load %arg4[%c0_6, %c0_7] : memref<392x128xf32, #tpu.memory_space<vmem>>, vector<392x128xf32>
    tpu.vector_store %arg4[%c0_6, %c0_7], %7 {strides = array<i32>} : memref<392x128xf32, #tpu.memory_space<vmem>>, vector<392x128xf32>,
    return
  }
  func.func @transform_0(%arg0: i32) -> (i32, i32) {
    %c0_i32 = arith.constant 0 : i32
    %c0_i32_0 = arith.constant 0 : i32
    return %arg0, %c0_i32 : i32, i32
  }
  func.func @transform_1(%arg0: i32) -> (i32, i32) {
    %c0_i32 = arith.constant 0 : i32
    %c0_i32_0 = arith.constant 0 : i32
    %c0_i32_1 = arith.constant 0 : i32
    return %c0_i32, %c0_i32_0 : i32, i32
  }
  func.func @transform_2(%arg0: i32) -> (i32, i32) {
    %c0_i32 = arith.constant 0 : i32
    %c0_i32_0 = arith.constant 0 : i32
    %c0_i32_1 = arith.constant 0 : i32
    return %c0_i32, %c0_i32_0 : i32, i32
  }
  func.func @transform_3(%arg0: i32) -> (i32, i32) {
    %c0_i32 = arith.constant 0 : i32
    %c0_i32_0 = arith.constant 0 : i32
    return %arg0, %c0_i32 : i32, i32
  }
}

module attributes {stable_mosaic.version = 11 : i64} {
  func.func @_matmul_bias_act_kernel(%arg0: i32, %arg1: memref<98x144xbf16, #tpu.memory_space<vmem>>, %arg2: memref<144x128xbf16, #tpu.memory_space<vmem>>, %arg3: memref<1x128xf32, #tpu.memory_space<vmem>>, %arg4: memref<98x128xf32, #tpu.memory_space<vmem>>) attributes {dimension_semantics = [#tpu.dimension_semantics<parallel>], iteration_bounds = array<i64: 1>, scalar_prefetch = 0 : i64, scratch_operands = 0 : i64, tpu.core_type = #tpu.core_type<tc>, window_params = [{transform_indices = @transform_0, window_bounds = array<i64: 98, 144>}, {pipeline_mode = #tpu.pipeline_mode<synchronous>, transform_indices = @transform_1, window_bounds = array<i64: 144, 128>}, {pipeline_mode = #tpu.pipeline_mode<synchronous>, transform_indices = @transform_2, window_bounds = array<i64: 1, 128>}, {transform_indices = @transform_3, window_bounds = array<i64: 98, 128>}]} {
    %c0 = arith.constant 0 : index
    %c0_0 = arith.constant 0 : index
    %0 = vector.load %arg1[%c0, %c0_0] : memref<98x144xbf16, #tpu.memory_space<vmem>>, vector<98x144xbf16>
    %c0_1 = arith.constant 0 : index
    %c0_2 = arith.constant 0 : index
    %1 = vector.load %arg2[%c0_1, %c0_2] : memref<144x128xbf16, #tpu.memory_space<vmem>>, vector<144x128xbf16>
    %cst = arith.constant dense<0.000000e+00> : vector<98x128xf32>
    %2 = tpu.matmul %0, %1, %cst {dimension_numbers = #tpu.dot_dimension_numbers<[1], [0], [0], [1], [0, 0, 1, 1], [], []>} : vector<98x144xbf16>, vector<144x128xbf16>, vector<98x128xf32> -> vector<98x128xf32>
    %c0_3 = arith.constant 0 : index
    %c0_4 = arith.constant 0 : index
    %3 = vector.load %arg3[%c0_3, %c0_4] : memref<1x128xf32, #tpu.memory_space<vmem>>, vector<1x128xf32>
    %4 = vector.broadcast %3 : vector<1x128xf32> to vector<98x128xf32>
    %5 = arith.addf %2, %4 : vector<98x128xf32>
    %cst_5 = arith.constant 0.000000e+00 : f32
    %6 = vector.broadcast %cst_5 : f32 to vector<98x128xf32>
    %7 = arith.maximumf %5, %6 : vector<98x128xf32>
    %c0_6 = arith.constant 0 : index
    %c0_7 = arith.constant 0 : index
    %8 = vector.load %arg4[%c0_6, %c0_7] : memref<98x128xf32, #tpu.memory_space<vmem>>, vector<98x128xf32>
    tpu.vector_store %arg4[%c0_6, %c0_7], %7 {strides = array<i32>} : memref<98x128xf32, #tpu.memory_space<vmem>>, vector<98x128xf32>,
    return
  }
  func.func @transform_0(%arg0: i32) -> (i32, i32) {
    %c0_i32 = arith.constant 0 : i32
    %c0_i32_0 = arith.constant 0 : i32
    return %arg0, %c0_i32 : i32, i32
  }
  func.func @transform_1(%arg0: i32) -> (i32, i32) {
    %c0_i32 = arith.constant 0 : i32
    %c0_i32_0 = arith.constant 0 : i32
    %c0_i32_1 = arith.constant 0 : i32
    return %c0_i32, %c0_i32_0 : i32, i32
  }
  func.func @transform_2(%arg0: i32) -> (i32, i32) {
    %c0_i32 = arith.constant 0 : i32
    %c0_i32_0 = arith.constant 0 : i32
    %c0_i32_1 = arith.constant 0 : i32
    return %c0_i32, %c0_i32_0 : i32, i32
  }
  func.func @transform_3(%arg0: i32) -> (i32, i32) {
    %c0_i32 = arith.constant 0 : i32
    %c0_i32_0 = arith.constant 0 : i32
    return %arg0, %c0_i32 : i32, i32
  }
}

module attributes {stable_mosaic.version = 11 : i64} {
  func.func @_matmul_bias_act_kernel(%arg0: i32, %arg1: memref<2x1568xbf16, #tpu.memory_space<vmem>>, %arg2: memref<1568x128xbf16, #tpu.memory_space<vmem>>, %arg3: memref<1x128xf32, #tpu.memory_space<vmem>>, %arg4: memref<2x128xf32, #tpu.memory_space<vmem>>) attributes {dimension_semantics = [#tpu.dimension_semantics<parallel>], iteration_bounds = array<i64: 1>, scalar_prefetch = 0 : i64, scratch_operands = 0 : i64, tpu.core_type = #tpu.core_type<tc>, window_params = [{transform_indices = @transform_0, window_bounds = array<i64: 2, 1568>}, {pipeline_mode = #tpu.pipeline_mode<synchronous>, transform_indices = @transform_1, window_bounds = array<i64: 1568, 128>}, {pipeline_mode = #tpu.pipeline_mode<synchronous>, transform_indices = @transform_2, window_bounds = array<i64: 1, 128>}, {transform_indices = @transform_3, window_bounds = array<i64: 2, 128>}]} {
    %c0 = arith.constant 0 : index
    %c0_0 = arith.constant 0 : index
    %0 = vector.load %arg1[%c0, %c0_0] : memref<2x1568xbf16, #tpu.memory_space<vmem>>, vector<2x1568xbf16>
    %c0_1 = arith.constant 0 : index
    %c0_2 = arith.constant 0 : index
    %1 = vector.load %arg2[%c0_1, %c0_2] : memref<1568x128xbf16, #tpu.memory_space<vmem>>, vector<1568x128xbf16>
    %cst = arith.constant dense<0.000000e+00> : vector<2x128xf32>
    %2 = tpu.matmul %0, %1, %cst {dimension_numbers = #tpu.dot_dimension_numbers<[1], [0], [0], [1], [0, 0, 1, 1], [], []>} : vector<2x1568xbf16>, vector<1568x128xbf16>, vector<2x128xf32> -> vector<2x128xf32>
    %c0_3 = arith.constant 0 : index
    %c0_4 = arith.constant 0 : index
    %3 = vector.load %arg3[%c0_3, %c0_4] : memref<1x128xf32, #tpu.memory_space<vmem>>, vector<1x128xf32>
    %4 = vector.broadcast %3 : vector<1x128xf32> to vector<2x128xf32>
    %5 = arith.addf %2, %4 : vector<2x128xf32>
    %c0_5 = arith.constant 0 : index
    %c0_6 = arith.constant 0 : index
    %6 = vector.load %arg4[%c0_5, %c0_6] : memref<2x128xf32, #tpu.memory_space<vmem>>, vector<2x128xf32>
    tpu.vector_store %arg4[%c0_5, %c0_6], %5 {strides = array<i32>} : memref<2x128xf32, #tpu.memory_space<vmem>>, vector<2x128xf32>,
    return
  }
  func.func @transform_0(%arg0: i32) -> (i32, i32) {
    %c0_i32 = arith.constant 0 : i32
    %c0_i32_0 = arith.constant 0 : i32
    return %arg0, %c0_i32 : i32, i32
  }
  func.func @transform_1(%arg0: i32) -> (i32, i32) {
    %c0_i32 = arith.constant 0 : i32
    %c0_i32_0 = arith.constant 0 : i32
    %c0_i32_1 = arith.constant 0 : i32
    return %c0_i32, %c0_i32_0 : i32, i32
  }
  func.func @transform_2(%arg0: i32) -> (i32, i32) {
    %c0_i32 = arith.constant 0 : i32
    %c0_i32_0 = arith.constant 0 : i32
    %c0_i32_1 = arith.constant 0 : i32
    return %c0_i32, %c0_i32_0 : i32, i32
  }
  func.func @transform_3(%arg0: i32) -> (i32, i32) {
    %c0_i32 = arith.constant 0 : i32
    %c0_i32_0 = arith.constant 0 : i32
    return %arg0, %c0_i32 : i32, i32
  }
}

module attributes {stable_mosaic.version = 11 : i64} {
  func.func @_latent_cluster_kernel(%arg0: i32, %arg1: memref<2x64xf32, #tpu.memory_space<vmem>>, %arg2: memref<64x32xf32, #tpu.memory_space<vmem>>, %arg3: memref<1x32xf32, #tpu.memory_space<vmem>>, %arg4: memref<32x10xf32, #tpu.memory_space<vmem>>, %arg5: memref<32x64xf32, #tpu.memory_space<vmem>>, %arg6: memref<1x64xf32, #tpu.memory_space<vmem>>, %arg7: memref<2x32xf32, #tpu.memory_space<vmem>>, %arg8: memref<2x10xf32, #tpu.memory_space<vmem>>, %arg9: memref<2x64xf32, #tpu.memory_space<vmem>>) attributes {dimension_semantics = [#tpu.dimension_semantics<arbitrary>], iteration_bounds = array<i64: 1>, scalar_prefetch = 0 : i64, scratch_operands = 0 : i64, tpu.core_type = #tpu.core_type<tc>, window_params = [{pipeline_mode = #tpu.pipeline_mode<synchronous>, transform_indices = @transform_0, window_bounds = array<i64: 2, 64>}, {pipeline_mode = #tpu.pipeline_mode<synchronous>, transform_indices = @transform_1, window_bounds = array<i64: 64, 32>}, {pipeline_mode = #tpu.pipeline_mode<synchronous>, transform_indices = @transform_2, window_bounds = array<i64: 1, 32>}, {pipeline_mode = #tpu.pipeline_mode<synchronous>, transform_indices = @transform_3, window_bounds = array<i64: 32, 10>}, {pipeline_mode = #tpu.pipeline_mode<synchronous>, transform_indices = @transform_4, window_bounds = array<i64: 32, 64>}, {pipeline_mode = #tpu.pipeline_mode<synchronous>, transform_indices = @transform_5, window_bounds = array<i64: 1, 64>}, {pipeline_mode = #tpu.pipeline_mode<synchronous>, transform_indices = @transform_6, window_bounds = array<i64: 2, 32>}, {pipeline_mode = #tpu.pipeline_mode<synchronous>, transform_indices = @transform_7, window_bounds = array<i64: 2, 10>}, {pipeline_mode = #tpu.pipeline_mode<synchronous>, transform_indices = @transform_8, window_bounds = array<i64: 2, 64>}]} {
    %c0 = arith.constant 0 : index
    %c0_0 = arith.constant 0 : index
    %0 = vector.load %arg1[%c0, %c0_0] : memref<2x64xf32, #tpu.memory_space<vmem>>, vector<2x64xf32>
    %c0_1 = arith.constant 0 : index
    %c0_2 = arith.constant 0 : index
    %1 = vector.load %arg2[%c0_1, %c0_2] : memref<64x32xf32, #tpu.memory_space<vmem>>, vector<64x32xf32>
    %cst = arith.constant dense<0.000000e+00> : vector<2x32xf32>
    %2 = tpu.matmul %0, %1, %cst {dimension_numbers = #tpu.dot_dimension_numbers<[1], [0], [0], [1], [0, 0, 1, 1], [], []>} : vector<2x64xf32>, vector<64x32xf32>, vector<2x32xf32> -> vector<2x32xf32>
    %c0_3 = arith.constant 0 : index
    %c0_4 = arith.constant 0 : index
    %3 = vector.load %arg3[%c0_3, %c0_4] : memref<1x32xf32, #tpu.memory_space<vmem>>, vector<1x32xf32>
    %4 = vector.broadcast %3 : vector<1x32xf32> to vector<2x32xf32>
    %5 = arith.addf %2, %4 : vector<2x32xf32>
    %c0_5 = arith.constant 0 : index
    %c0_6 = arith.constant 0 : index
    %6 = vector.load %arg7[%c0_5, %c0_6] : memref<2x32xf32, #tpu.memory_space<vmem>>, vector<2x32xf32>
    tpu.vector_store %arg7[%c0_5, %c0_6], %5 {strides = array<i32>} : memref<2x32xf32, #tpu.memory_space<vmem>>, vector<2x32xf32>,
    %c0_7 = arith.constant 0 : index
    %c0_8 = arith.constant 0 : index
    %7 = vector.load %arg4[%c0_7, %c0_8] : memref<32x10xf32, #tpu.memory_space<vmem>>, vector<32x10xf32>
    %8 = arith.mulf %5, %5 : vector<2x32xf32>
    %cst_9 = arith.constant dense<0.000000e+00> : vector<2xf32>
    %9 = vector.multi_reduction <add>, %8, %cst_9 [1] : vector<2x32xf32> to vector<2xf32>
    %10 = vector.shape_cast %9 : vector<2xf32> to vector<2x1xf32>
    %11 = arith.mulf %7, %7 : vector<32x10xf32>
    %cst_10 = arith.constant dense<0.000000e+00> : vector<10xf32>
    %12 = vector.multi_reduction <add>, %11, %cst_10 [0] : vector<32x10xf32> to vector<10xf32>
    %13 = vector.shape_cast %12 : vector<10xf32> to vector<1x10xf32>
    %cst_11 = arith.constant dense<0.000000e+00> : vector<2x10xf32>
    %14 = tpu.matmul %5, %7, %cst_11 {dimension_numbers = #tpu.dot_dimension_numbers<[1], [0], [0], [1], [0, 0, 1, 1], [], []>} : vector<2x32xf32>, vector<32x10xf32>, vector<2x10xf32> -> vector<2x10xf32>
    %15 = vector.broadcast %10 : vector<2x1xf32> to vector<2x10xf32>
    %16 = vector.broadcast %13 : vector<1x10xf32> to vector<2x10xf32>
    %17 = arith.addf %15, %16 : vector<2x10xf32>
    %cst_12 = arith.constant 2.000000e+00 : f32
    %18 = vector.broadcast %cst_12 : f32 to vector<2x10xf32>
    %19 = arith.mulf %18, %14 : vector<2x10xf32>
    %20 = arith.subf %17, %19 : vector<2x10xf32>
    %cst_13 = arith.constant 0.000000e+00 : f32
    %21 = vector.broadcast %cst_13 : f32 to vector<2x10xf32>
    %22 = arith.maximumf %20, %21 : vector<2x10xf32>
    %cst_14 = arith.constant 1.000000e+00 : f32
    %23 = vector.broadcast %cst_14 : f32 to vector<2x10xf32>
    %24 = arith.divf %22, %23 : vector<2x10xf32>
    %cst_15 = arith.constant 1.000000e+00 : f32
    %25 = vector.broadcast %cst_15 : f32 to vector<2x10xf32>
    %26 = arith.addf %25, %24 : vector<2x10xf32>
    %cst_16 = arith.constant 1.000000e+00 : f32
    %27 = vector.broadcast %cst_16 : f32 to vector<2x10xf32>
    %28 = arith.divf %27, %26 : vector<2x10xf32>
    %cst_17 = arith.constant dense<0.000000e+00> : vector<2xf32>
    %29 = vector.multi_reduction <add>, %28, %cst_17 [1] : vector<2x10xf32> to vector<2xf32>
    %30 = vector.shape_cast %29 : vector<2xf32> to vector<2x1xf32>
    %31 = vector.broadcast %30 : vector<2x1xf32> to vector<2x10xf32>
    %32 = arith.divf %28, %31 : vector<2x10xf32>
    %c0_18 = arith.constant 0 : index
    %c0_19 = arith.constant 0 : index
    %33 = vector.load %arg8[%c0_18, %c0_19] : memref<2x10xf32, #tpu.memory_space<vmem>>, vector<2x10xf32>
    tpu.vector_store %arg8[%c0_18, %c0_19], %32 {strides = array<i32>} : memref<2x10xf32, #tpu.memory_space<vmem>>, vector<2x10xf32>,
    %c0_20 = arith.constant 0 : index
    %c0_21 = arith.constant 0 : index
    %34 = vector.load %arg5[%c0_20, %c0_21] : memref<32x64xf32, #tpu.memory_space<vmem>>, vector<32x64xf32>
    %cst_22 = arith.constant dense<0.000000e+00> : vector<2x64xf32>
    %35 = tpu.matmul %5, %34, %cst_22 {dimension_numbers = #tpu.dot_dimension_numbers<[1], [0], [0], [1], [0, 0, 1, 1], [], []>} : vector<2x32xf32>, vector<32x64xf32>, vector<2x64xf32> -> vector<2x64xf32>
    %c0_23 = arith.constant 0 : index
    %c0_24 = arith.constant 0 : index
    %36 = vector.load %arg6[%c0_23, %c0_24] : memref<1x64xf32, #tpu.memory_space<vmem>>, vector<1x64xf32>
    %37 = vector.broadcast %36 : vector<1x64xf32> to vector<2x64xf32>
    %38 = arith.addf %35, %37 : vector<2x64xf32>
    %c0_25 = arith.constant 0 : index
    %c0_26 = arith.constant 0 : index
    %39 = vector.load %arg9[%c0_25, %c0_26] : memref<2x64xf32, #tpu.memory_space<vmem>>, vector<2x64xf32>
    tpu.vector_store %arg9[%c0_25, %c0_26], %38 {strides = array<i32>} : memref<2x64xf32, #tpu.memory_space<vmem>>, vector<2x64xf32>,
    return
  }
  func.func @transform_0(%arg0: i32) -> (i32, i32) {
    %c0_i32 = arith.constant 0 : i32
    %c0_i32_0 = arith.constant 0 : i32
    %c0_i32_1 = arith.constant 0 : i32
    return %c0_i32, %c0_i32_0 : i32, i32
  }
  func.func @transform_1(%arg0: i32) -> (i32, i32) {
    %c0_i32 = arith.constant 0 : i32
    %c0_i32_0 = arith.constant 0 : i32
    %c0_i32_1 = arith.constant 0 : i32
    return %c0_i32, %c0_i32_0 : i32, i32
  }
  func.func @transform_2(%arg0: i32) -> (i32, i32) {
    %c0_i32 = arith.constant 0 : i32
    %c0_i32_0 = arith.constant 0 : i32
    %c0_i32_1 = arith.constant 0 : i32
    return %c0_i32, %c0_i32_0 : i32, i32
  }
  func.func @transform_3(%arg0: i32) -> (i32, i32) {
    %c0_i32 = arith.constant 0 : i32
    %c0_i32_0 = arith.constant 0 : i32
    %c0_i32_1 = arith.constant 0 : i32
    return %c0_i32, %c0_i32_0 : i32, i32
  }
  func.func @transform_4(%arg0: i32) -> (i32, i32) {
    %c0_i32 = arith.constant 0 : i32
    %c0_i32_0 = arith.constant 0 : i32
    %c0_i32_1 = arith.constant 0 : i32
    return %c0_i32, %c0_i32_0 : i32, i32
  }
  func.func @transform_5(%arg0: i32) -> (i32, i32) {
    %c0_i32 = arith.constant 0 : i32
    %c0_i32_0 = arith.constant 0 : i32
    %c0_i32_1 = arith.constant 0 : i32
    return %c0_i32, %c0_i32_0 : i32, i32
  }
  func.func @transform_6(%arg0: i32) -> (i32, i32) {
    %c0_i32 = arith.constant 0 : i32
    %c0_i32_0 = arith.constant 0 : i32
    %c0_i32_1 = arith.constant 0 : i32
    return %c0_i32, %c0_i32_0 : i32, i32
  }
  func.func @transform_7(%arg0: i32) -> (i32, i32) {
    %c0_i32 = arith.constant 0 : i32
    %c0_i32_0 = arith.constant 0 : i32
    %c0_i32_1 = arith.constant 0 : i32
    return %c0_i32, %c0_i32_0 : i32, i32
  }
  func.func @transform_8(%arg0: i32) -> (i32, i32) {
    %c0_i32 = arith.constant 0 : i32
    %c0_i32_0 = arith.constant 0 : i32
    %c0_i32_1 = arith.constant 0 : i32
    return %c0_i32, %c0_i32_0 : i32, i32
  }
}

module attributes {stable_mosaic.version = 11 : i64} {
  func.func @_matmul_bias_act_kernel(%arg0: i32, %arg1: memref<2x64xbf16, #tpu.memory_space<vmem>>, %arg2: memref<64x1664xbf16, #tpu.memory_space<vmem>>, %arg3: memref<1x1664xf32, #tpu.memory_space<vmem>>, %arg4: memref<2x1664xf32, #tpu.memory_space<vmem>>) attributes {dimension_semantics = [#tpu.dimension_semantics<parallel>], iteration_bounds = array<i64: 1>, scalar_prefetch = 0 : i64, scratch_operands = 0 : i64, tpu.core_type = #tpu.core_type<tc>, window_params = [{transform_indices = @transform_0, window_bounds = array<i64: 2, 64>}, {pipeline_mode = #tpu.pipeline_mode<synchronous>, transform_indices = @transform_1, window_bounds = array<i64: 64, 1664>}, {pipeline_mode = #tpu.pipeline_mode<synchronous>, transform_indices = @transform_2, window_bounds = array<i64: 1, 1664>}, {transform_indices = @transform_3, window_bounds = array<i64: 2, 1664>}]} {
    %c0 = arith.constant 0 : index
    %c0_0 = arith.constant 0 : index
    %0 = vector.load %arg1[%c0, %c0_0] : memref<2x64xbf16, #tpu.memory_space<vmem>>, vector<2x64xbf16>
    %c0_1 = arith.constant 0 : index
    %c0_2 = arith.constant 0 : index
    %1 = vector.load %arg2[%c0_1, %c0_2] : memref<64x1664xbf16, #tpu.memory_space<vmem>>, vector<64x1664xbf16>
    %cst = arith.constant dense<0.000000e+00> : vector<2x1664xf32>
    %2 = tpu.matmul %0, %1, %cst {dimension_numbers = #tpu.dot_dimension_numbers<[1], [0], [0], [1], [0, 0, 1, 1], [], []>} : vector<2x64xbf16>, vector<64x1664xbf16>, vector<2x1664xf32> -> vector<2x1664xf32>
    %c0_3 = arith.constant 0 : index
    %c0_4 = arith.constant 0 : index
    %3 = vector.load %arg3[%c0_3, %c0_4] : memref<1x1664xf32, #tpu.memory_space<vmem>>, vector<1x1664xf32>
    %4 = vector.broadcast %3 : vector<1x1664xf32> to vector<2x1664xf32>
    %5 = arith.addf %2, %4 : vector<2x1664xf32>
    %cst_5 = arith.constant 0.000000e+00 : f32
    %6 = vector.broadcast %cst_5 : f32 to vector<2x1664xf32>
    %7 = arith.maximumf %5, %6 : vector<2x1664xf32>
    %c0_6 = arith.constant 0 : index
    %c0_7 = arith.constant 0 : index
    %8 = vector.load %arg4[%c0_6, %c0_7] : memref<2x1664xf32, #tpu.memory_space<vmem>>, vector<2x1664xf32>
    tpu.vector_store %arg4[%c0_6, %c0_7], %7 {strides = array<i32>} : memref<2x1664xf32, #tpu.memory_space<vmem>>, vector<2x1664xf32>,
    return
  }
  func.func @transform_0(%arg0: i32) -> (i32, i32) {
    %c0_i32 = arith.constant 0 : i32
    %c0_i32_0 = arith.constant 0 : i32
    return %arg0, %c0_i32 : i32, i32
  }
  func.func @transform_1(%arg0: i32) -> (i32, i32) {
    %c0_i32 = arith.constant 0 : i32
    %c0_i32_0 = arith.constant 0 : i32
    %c0_i32_1 = arith.constant 0 : i32
    return %c0_i32, %c0_i32_0 : i32, i32
  }
  func.func @transform_2(%arg0: i32) -> (i32, i32) {
    %c0_i32 = arith.constant 0 : i32
    %c0_i32_0 = arith.constant 0 : i32
    %c0_i32_1 = arith.constant 0 : i32
    return %c0_i32, %c0_i32_0 : i32, i32
  }
  func.func @transform_3(%arg0: i32) -> (i32, i32) {
    %c0_i32 = arith.constant 0 : i32
    %c0_i32_0 = arith.constant 0 : i32
    return %arg0, %c0_i32 : i32, i32
  }
}

module attributes {stable_mosaic.version = 11 : i64} {
  func.func @_matmul_bias_act_kernel(%arg0: i32, %arg1: memref<98x128xbf16, #tpu.memory_space<vmem>>, %arg2: memref<128x128xbf16, #tpu.memory_space<vmem>>, %arg3: memref<1x128xf32, #tpu.memory_space<vmem>>, %arg4: memref<98x128xf32, #tpu.memory_space<vmem>>) attributes {dimension_semantics = [#tpu.dimension_semantics<parallel>], iteration_bounds = array<i64: 1>, scalar_prefetch = 0 : i64, scratch_operands = 0 : i64, tpu.core_type = #tpu.core_type<tc>, window_params = [{transform_indices = @transform_0, window_bounds = array<i64: 98, 128>}, {pipeline_mode = #tpu.pipeline_mode<synchronous>, transform_indices = @transform_1, window_bounds = array<i64: 128, 128>}, {pipeline_mode = #tpu.pipeline_mode<synchronous>, transform_indices = @transform_2, window_bounds = array<i64: 1, 128>}, {transform_indices = @transform_3, window_bounds = array<i64: 98, 128>}]} {
    %c0 = arith.constant 0 : index
    %c0_0 = arith.constant 0 : index
    %0 = vector.load %arg1[%c0, %c0_0] : memref<98x128xbf16, #tpu.memory_space<vmem>>, vector<98x128xbf16>
    %c0_1 = arith.constant 0 : index
    %c0_2 = arith.constant 0 : index
    %1 = vector.load %arg2[%c0_1, %c0_2] : memref<128x128xbf16, #tpu.memory_space<vmem>>, vector<128x128xbf16>
    %cst = arith.constant dense<0.000000e+00> : vector<98x128xf32>
    %2 = tpu.matmul %0, %1, %cst {dimension_numbers = #tpu.dot_dimension_numbers<[1], [0], [0], [1], [0, 0, 1, 1], [], []>} : vector<98x128xbf16>, vector<128x128xbf16>, vector<98x128xf32> -> vector<98x128xf32>
    %c0_3 = arith.constant 0 : index
    %c0_4 = arith.constant 0 : index
    %3 = vector.load %arg3[%c0_3, %c0_4] : memref<1x128xf32, #tpu.memory_space<vmem>>, vector<1x128xf32>
    %4 = vector.broadcast %3 : vector<1x128xf32> to vector<98x128xf32>
    %5 = arith.addf %2, %4 : vector<98x128xf32>
    %cst_5 = arith.constant 0.000000e+00 : f32
    %6 = vector.broadcast %cst_5 : f32 to vector<98x128xf32>
    %7 = arith.maximumf %5, %6 : vector<98x128xf32>
    %c0_6 = arith.constant 0 : index
    %c0_7 = arith.constant 0 : index
    %8 = vector.load %arg4[%c0_6, %c0_7] : memref<98x128xf32, #tpu.memory_space<vmem>>, vector<98x128xf32>
    tpu.vector_store %arg4[%c0_6, %c0_7], %7 {strides = array<i32>} : memref<98x128xf32, #tpu.memory_space<vmem>>, vector<98x128xf32>,
    return
  }
  func.func @transform_0(%arg0: i32) -> (i32, i32) {
    %c0_i32 = arith.constant 0 : i32
    %c0_i32_0 = arith.constant 0 : i32
    return %arg0, %c0_i32 : i32, i32
  }
  func.func @transform_1(%arg0: i32) -> (i32, i32) {
    %c0_i32 = arith.constant 0 : i32
    %c0_i32_0 = arith.constant 0 : i32
    %c0_i32_1 = arith.constant 0 : i32
    return %c0_i32, %c0_i32_0 : i32, i32
  }
  func.func @transform_2(%arg0: i32) -> (i32, i32) {
    %c0_i32 = arith.constant 0 : i32
    %c0_i32_0 = arith.constant 0 : i32
    %c0_i32_1 = arith.constant 0 : i32
    return %c0_i32, %c0_i32_0 : i32, i32
  }
  func.func @transform_3(%arg0: i32) -> (i32, i32) {
    %c0_i32 = arith.constant 0 : i32
    %c0_i32_0 = arith.constant 0 : i32
    return %arg0, %c0_i32 : i32, i32
  }
}

module attributes {stable_mosaic.version = 11 : i64} {
  func.func @_matmul_bias_act_kernel(%arg0: i32, %arg1: memref<392x64xbf16, #tpu.memory_space<vmem>>, %arg2: memref<64x128xbf16, #tpu.memory_space<vmem>>, %arg3: memref<1x128xf32, #tpu.memory_space<vmem>>, %arg4: memref<392x128xf32, #tpu.memory_space<vmem>>) attributes {dimension_semantics = [#tpu.dimension_semantics<parallel>], iteration_bounds = array<i64: 1>, scalar_prefetch = 0 : i64, scratch_operands = 0 : i64, tpu.core_type = #tpu.core_type<tc>, window_params = [{transform_indices = @transform_0, window_bounds = array<i64: 392, 64>}, {pipeline_mode = #tpu.pipeline_mode<synchronous>, transform_indices = @transform_1, window_bounds = array<i64: 64, 128>}, {pipeline_mode = #tpu.pipeline_mode<synchronous>, transform_indices = @transform_2, window_bounds = array<i64: 1, 128>}, {transform_indices = @transform_3, window_bounds = array<i64: 392, 128>}]} {
    %c0 = arith.constant 0 : index
    %c0_0 = arith.constant 0 : index
    %0 = vector.load %arg1[%c0, %c0_0] : memref<392x64xbf16, #tpu.memory_space<vmem>>, vector<392x64xbf16>
    %c0_1 = arith.constant 0 : index
    %c0_2 = arith.constant 0 : index
    %1 = vector.load %arg2[%c0_1, %c0_2] : memref<64x128xbf16, #tpu.memory_space<vmem>>, vector<64x128xbf16>
    %cst = arith.constant dense<0.000000e+00> : vector<392x128xf32>
    %2 = tpu.matmul %0, %1, %cst {dimension_numbers = #tpu.dot_dimension_numbers<[1], [0], [0], [1], [0, 0, 1, 1], [], []>} : vector<392x64xbf16>, vector<64x128xbf16>, vector<392x128xf32> -> vector<392x128xf32>
    %c0_3 = arith.constant 0 : index
    %c0_4 = arith.constant 0 : index
    %3 = vector.load %arg3[%c0_3, %c0_4] : memref<1x128xf32, #tpu.memory_space<vmem>>, vector<1x128xf32>
    %4 = vector.broadcast %3 : vector<1x128xf32> to vector<392x128xf32>
    %5 = arith.addf %2, %4 : vector<392x128xf32>
    %6 = arith.negf %5 : vector<392x128xf32>
    %7 = math.exp %6 : vector<392x128xf32>
    %cst_5 = arith.constant 1.000000e+00 : f32
    %8 = vector.broadcast %cst_5 : f32 to vector<392x128xf32>
    %9 = arith.addf %8, %7 : vector<392x128xf32>
    %10 = arith.divf %8, %9 : vector<392x128xf32>
    %c0_6 = arith.constant 0 : index
    %c0_7 = arith.constant 0 : index
    %11 = vector.load %arg4[%c0_6, %c0_7] : memref<392x128xf32, #tpu.memory_space<vmem>>, vector<392x128xf32>
    tpu.vector_store %arg4[%c0_6, %c0_7], %10 {strides = array<i32>} : memref<392x128xf32, #tpu.memory_space<vmem>>, vector<392x128xf32>,
    return
  }
  func.func @transform_0(%arg0: i32) -> (i32, i32) {
    %c0_i32 = arith.constant 0 : i32
    %c0_i32_0 = arith.constant 0 : i32
    return %arg0, %c0_i32 : i32, i32
  }
  func.func @transform_1(%arg0: i32) -> (i32, i32) {
    %c0_i32 = arith.constant 0 : i32
    %c0_i32_0 = arith.constant 0 : i32
    %c0_i32_1 = arith.constant 0 : i32
    return %c0_i32, %c0_i32_0 : i32, i32
  }
  func.func @transform_2(%arg0: i32) -> (i32, i32) {
    %c0_i32 = arith.constant 0 : i32
    %c0_i32_0 = arith.constant 0 : i32
    %c0_i32_1 = arith.constant 0 : i32
    return %c0_i32, %c0_i32_0 : i32, i32
  }
  func.func @transform_3(%arg0: i32) -> (i32, i32) {
    %c0_i32 = arith.constant 0 : i32
    %c0_i32_0 = arith.constant 0 : i32
    return %arg0, %c0_i32 : i32, i32
  }
}

</mosaic_0001>

<bundles_post_ra>
// kernel: cluster_autoencoder_forward.7
= control target key start
LH: loop header
LB: loop body
LE: loop exit
PB: predicated region body
PF: predicated region fallthrough
CT: control target
= control target key end

     0   :  { %vm277_vm0 = vcmask 1043456   ;;  %vm278_vm1 = vcmask 1044480   ;;  %v829_v0 = vmov 0.0   ;;  %v830_v2 = vmov 65535   ;;  %s1208_s1 = inlined_call_operand.vmem [shape: bf16[9,128], index: 1, kind: input, shape index: {}]   ;;  %s1209_s0 = inlined_call_operand.vmem [shape: bf16[392,9], index: 0, kind: input, shape index: {}]   ;;  %s1210_s2 = inlined_call_operand.vmem [shape: f32[1,128], index: 2, kind: input, shape index: {}]   ;;  %s1211_s3 = inlined_call_operand.vmem [shape: f32[392,128], index: 3, kind: output, shape index: {}]  }
   0x1   :  { %696 = vmatprep.subr.bf16.mxu0 %v829_v0  ;;  %v803_v1 = vld [vmem:[%s1208_s1] sm:$0x1f]   ;;  %798 = vmatprep.subr.bf16.mxu1 %v829_v0  ;;  %v279_v3 = vsel %vm277_vm0, 4294967295, %v830_v2  ;;  %vm831_vm2 = vmmov 0   ;;  %v805_v7 = vld [vmem:[%s1209_s0 + $0x68] sm:$0xff]   ;;  %vm201_vm3 = vcmask 72704  }
   0x2   :  { %v280_v4 = vsel %vm278_vm1, %v279_v3, 0  ;;  %698 = vmatprep.mubr.msk.bf16.mxu0 %vm831_vm2, %v829_v0  ;;  %v804_v5 = vld [vmem:[%s1209_s0] sm:$0xff]   ;;  %750 = vmatprep.mubr.msk.bf16.mxu1 %vm831_vm2, %v829_v0  ;;  %v806_v8 = vld [vmem:[%s1209_s0 + $0x8] sm:$0xff]   ;;  %v807_v9 = vld [vmem:[%s1209_s0 + $0x70] sm:$0xff]  }
   0x3   :  { %v282_v6 = vand.u32 %v803_v1, %v280_v4  ;;  %v808_v10 = vld [vmem:[%s1209_s0 + $0x10] sm:$0xff]   ;;  %v809_v11 = vld [vmem:[%s1209_s0 + $0x78] sm:$0xff]   ;;  %v811_v13 = vld [vmem:[%s1209_s0 + $0x80] sm:$0xff]  }
   0x4   :  { %v810_v12 = vld [vmem:[%s1209_s0 + $0x18] sm:$0xff]   ;;  %v812_v14 = vld [vmem:[%s1209_s0 + $0x20] sm:$0xff]   ;;  %v813_v15 = vld [vmem:[%s1209_s0 + $0x88] sm:$0xff]  }
   0x5   :  { %697 = vmatpush3.bf16.msra.mxu0 %v282_v6  ;;  %799 = vmatpush3.bf16.msra.mxu1 %v282_v6  ;;  %v814_v16 = vld [vmem:[%s1209_s0 + $0x28] sm:$0xff]   ;;  %v815_v17 = vld [vmem:[%s1209_s0 + $0x90] sm:$0xff]   ;;  %v817_v19 = vld [vmem:[%s1209_s0 + $0x98] sm:$0xff]  }
   0x6   :  { %v816_v18 = vld [vmem:[%s1209_s0 + $0x30] sm:$0xff]   ;;  %v818_v20 = vld [vmem:[%s1209_s0 + $0x38] sm:$0xff]   ;;  %v819_v21 = vld [vmem:[%s1209_s0 + $0xa0] sm:$0xff]  }
   0x7   :  { %v820_v22 = vld [vmem:[%s1209_s0 + $0x40] sm:$0xff]   ;;  %v821_v23 = vld [vmem:[%s1209_s0 + $0xa8] sm:$0xff]   ;;  %v823_v25 = vld [vmem:[%s1209_s0 + $0xb0] sm:$0xff]  }
   0x8   :  { %699 = vmatmul.mubr.msk.bf16.vlgmr.msra.gmra.mrb[0].mxu0 %vm201_vm3, %v804_v5  ;;  %751 = vmatmul.mubr.msk.bf16.vlgmr.msra.gmra.mrb[0].mxu1 %vm201_vm3, %v805_v7  ;;  %v822_v24 = vld [vmem:[%s1209_s0 + $0x48] sm:$0xff]   ;;  %v824_v26 = vld [vmem:[%s1209_s0 + $0x50] sm:$0xff]   ;;  %v825_v27 = vld [vmem:[%s1209_s0 + $0xb8] sm:$0xff]  }
   0x9   :  { %702 = vmatprep.mubr.msk.bf16.mxu0 %vm831_vm2, %v829_v0  ;;  %754 = vmatprep.mubr.msk.bf16.mxu1 %vm831_vm2, %v829_v0  ;;  %v826_v28 = vld [vmem:[%s1209_s0 + $0x58] sm:$0xff]   ;;  %v827_v29 = vld [vmem:[%s1209_s0 + $0xc0] ss:$0 sps:$4 sm:$0xff]  }
   0xa   :  { %v828_v30 = vld [vmem:[%s1209_s0 + $0x60] sm:$0xff]  }
   0xb   :  { %v1010_v31 = vld [vmem:[%s1210_s2] ss:$0 sm:$0xff] }
  0x10   :  { %703 = vmatmul.mubr.msk.bf16.gmra.mrb[4].mxu0 %vm201_vm3, %v806_v8  ;;  %755 = vmatmul.mubr.msk.bf16.gmra.mrb[4].mxu1 %vm201_vm3, %v807_v9 }
  0x11   :  { %706 = vmatprep.mubr.msk.bf16.mxu0 %vm831_vm2, %v829_v0  ;;  %758 = vmatprep.mubr.msk.bf16.mxu1 %vm831_vm2, %v829_v0 }
  0x18   :  { %707 = vmatmul.mubr.msk.bf16.gmra.mrb[8].mxu0 %vm201_vm3, %v808_v10  ;;  %759 = vmatmul.mubr.msk.bf16.gmra.mrb[8].mxu1 %vm201_vm3, %v809_v11 }
  0x19   :  { %710 = vmatprep.mubr.msk.bf16.mxu0 %vm831_vm2, %v829_v0  ;;  %762 = vmatprep.mubr.msk.bf16.mxu1 %vm831_vm2, %v829_v0 }
  0x20   :  { %711 = vmatmul.mubr.msk.bf16.gmra.mrb[12].mxu0 %vm201_vm3, %v810_v12  ;;  %763 = vmatmul.mubr.msk.bf16.gmra.mrb[12].mxu1 %vm201_vm3, %v811_v13 }
  0x21   :  { %714 = vmatprep.mubr.msk.bf16.mxu0 %vm831_vm2, %v829_v0  ;;  %766 = vmatprep.mubr.msk.bf16.mxu1 %vm831_vm2, %v829_v0 }
  0x28   :  { %715 = vmatmul.mubr.msk.bf16.gmra.mrb[16].mxu0 %vm201_vm3, %v812_v14  ;;  %767 = vmatmul.mubr.msk.bf16.gmra.mrb[16].mxu1 %vm201_vm3, %v813_v15 }
  0x29   :  { %718 = vmatprep.mubr.msk.bf16.mxu0 %vm831_vm2, %v829_v0  ;;  %770 = vmatprep.mubr.msk.bf16.mxu1 %vm831_vm2, %v829_v0 }
  0x30   :  { %719 = vmatmul.mubr.msk.bf16.gmra.mrb[20].mxu0 %vm201_vm3, %v814_v16  ;;  %771 = vmatmul.mubr.msk.bf16.gmra.mrb[20].mxu1 %vm201_vm3, %v815_v17 }
  0x31   :  { %722 = vmatprep.mubr.msk.bf16.mxu0 %vm831_vm2, %v829_v0  ;;  %774 = vmatprep.mubr.msk.bf16.mxu1 %vm831_vm2, %v829_v0 }
  0x38   :  { %723 = vmatmul.mubr.msk.bf16.gmra.mrb[24].mxu0 %vm201_vm3, %v816_v18  ;;  %775 = vmatmul.mubr.msk.bf16.gmra.mrb[24].mxu1 %vm201_vm3, %v817_v19 }
  0x39   :  { %726 = vmatprep.mubr.msk.bf16.mxu0 %vm831_vm2, %v829_v0  ;;  %778 = vmatprep.mubr.msk.bf16.mxu1 %vm831_vm2, %v829_v0 }
  0x40   :  { %727 = vmatmul.mubr.msk.bf16.gmra.mrb[28].mxu0 %vm201_vm3, %v818_v20  ;;  %779 = vmatmul.mubr.msk.bf16.gmra.mrb[28].mxu1 %vm201_vm3, %v819_v21 }
  0x41   :  { %730 = vmatprep.mubr.msk.bf16.mxu0 %vm831_vm2, %v829_v0  ;;  %782 = vmatprep.mubr.msk.bf16.mxu1 %vm831_vm2, %v829_v0 }
  0x48   :  { %731 = vmatmul.mubr.msk.bf16.gmra.mrb[32].mxu0 %vm201_vm3, %v820_v22  ;;  %783 = vmatmul.mubr.msk.bf16.gmra.mrb[32].mxu1 %vm201_vm3, %v821_v23 }
  0x49   :  { %734 = vmatprep.mubr.msk.bf16.mxu0 %vm831_vm2, %v829_v0  ;;  %786 = vmatprep.mubr.msk.bf16.mxu1 %vm831_vm2, %v829_v0 }
  0x50   :  { %735 = vmatmul.mubr.msk.bf16.gmra.mrb[36].mxu0 %vm201_vm3, %v822_v24  ;;  %787 = vmatmul.mubr.msk.bf16.gmra.mrb[36].mxu1 %vm201_vm3, %v823_v25 }
  0x51   :  { %738 = vmatprep.mubr.msk.bf16.mxu0 %vm831_vm2, %v829_v0  ;;  %790 = vmatprep.mubr.msk.bf16.mxu1 %vm831_vm2, %v829_v0 }
  0x58   :  { %739 = vmatmul.mubr.msk.bf16.gmra.mrb[40].mxu0 %vm201_vm3, %v824_v26  ;;  %791 = vmatmul.mubr.msk.bf16.gmra.mrb[40].mxu1 %vm201_vm3, %v825_v27 }
  0x59   :  { %742 = vmatprep.mubr.msk.bf16.mxu0 %vm831_vm2, %v829_v0  ;;  %794 = vmatprep.mubr.msk.bf16.mxu1 %vm831_vm2, %v829_v0 }
  0x60   :  { %743 = vmatmul.mubr.msk.bf16.gmra.mrb[44].mxu0 %vm201_vm3, %v826_v28  ;;  %795 = vmatmul.mubr.msk.bf16.gmra.mrb[44].mxu1 %vm201_vm3, %v827_v29 }
  0x61   :  { %746 = vmatprep.mubr.msk.bf16.mxu0 %vm831_vm2, %v829_v0 }
  0x68   :  { %747 = vmatmul.mubr.msk.bf16.gmra.mrb[48].mxu0 %vm201_vm3, %v828_v30 }
  0xdb   :  { %v318_v32 = vpop.f32.mrb[0].mxu0  ;;  %v422_v33 = vpop.f32.mrb[0].mxu1 }
  0xdc   :  { %v319_v34 = vadd.f32 %v1010_v31, %v318_v32  ;;  %v700_v35 = vpop.f32.mrb[1].mxu0  ;;  %v423_v36 = vadd.f32 %v1010_v31, %v422_v33  ;;  %v752_v37 = vpop.f32.mrb[1].mxu1 }
  0xdd   :  { %v321_v38 = vpop.f32.mrb[2].mxu0  ;;  %v425_v39 = vpop.f32.mrb[2].mxu1 }
  0xde   :  { %v516_v40 = vmax.f32 %v319_v34, 0.0  ;;  %v322_v41 = vadd.f32 %v1010_v31, %v321_v38  ;;  %v701_v42 = vpop.f32.mrb[3].mxu0  ;;  %v542_v43 = vmax.f32 %v423_v36, 0.0  ;;  %v426_v44 = vadd.f32 %v1010_v31, %v425_v39  ;;  %v753_v45 = vpop.f32.mrb[3].mxu1 }
  0xe0   :  { %565 = vst [vmem:[%s1211_s3] sm:$0xff] %v516_v40  ;;  %v517_v46 = vmax.f32 %v322_v41, 0.0  ;;  %591 = vst [vmem:[%s1211_s3 + $0xd0] sm:$0xff] %v542_v43  ;;  %v543_v47 = vmax.f32 %v426_v44, 0.0 }
  0xe2   :  { %566 = vst [vmem:[%s1211_s3 + $0x8] sm:$0xff] %v517_v46  ;;  %592 = vst [vmem:[%s1211_s3 + $0xd8] sm:$0xff] %v543_v47 }
  0xe3   :  { %v326_v48 = vpop.f32.mrb[4].mxu0  ;;  %v430_v49 = vpop.f32.mrb[4].mxu1 }
  0xe4   :  { %v327_v50 = vadd.f32 %v1010_v31, %v326_v48  ;;  %v704_v51 = vpop.f32.mrb[5].mxu0  ;;  %v431_v52 = vadd.f32 %v1010_v31, %v430_v49  ;;  %v756_v53 = vpop.f32.mrb[5].mxu1 }
  0xe5   :  { %v329_v54 = vpop.f32.mrb[6].mxu0  ;;  %v433_v55 = vpop.f32.mrb[6].mxu1 }
  0xe6   :  { %v518_v56 = vmax.f32 %v327_v50, 0.0  ;;  %v330_v57 = vadd.f32 %v1010_v31, %v329_v54  ;;  %v705_v58 = vpop.f32.mrb[7].mxu0  ;;  %v544_v59 = vmax.f32 %v431_v52, 0.0  ;;  %v434_v60 = vadd.f32 %v1010_v31, %v433_v55  ;;  %v757_v61 = vpop.f32.mrb[7].mxu1 }
  0xe8   :  { %567 = vst [vmem:[%s1211_s3 + $0x10] sm:$0xff] %v518_v56  ;;  %v519_v62 = vmax.f32 %v330_v57, 0.0  ;;  %593 = vst [vmem:[%s1211_s3 + $0xe0] sm:$0xff] %v544_v59  ;;  %v545_v63 = vmax.f32 %v434_v60, 0.0 }
  0xea   :  { %568 = vst [vmem:[%s1211_s3 + $0x18] sm:$0xff] %v519_v62  ;;  %594 = vst [vmem:[%s1211_s3 + $0xe8] sm:$0xff] %v545_v63 }
  0xeb   :  { %v334_v0 = vpop.f32.mrb[8].mxu0  ;;  %v438_v1 = vpop.f32.mrb[8].mxu1 }
  0xec   :  { %v335_v2 = vadd.f32 %v1010_v31, %v334_v0  ;;  %v708_v3 = vpop.f32.mrb[9].mxu0  ;;  %v439_v4 = vadd.f32 %v1010_v31, %v438_v1  ;;  %v760_v5 = vpop.f32.mrb[9].mxu1 }
  0xed   :  { %v337_v6 = vpop.f32.mrb[10].mxu0  ;;  %v441_v7 = vpop.f32.mrb[10].mxu1 }
  0xee   :  { %v520_v8 = vmax.f32 %v335_v2, 0.0  ;;  %v338_v9 = vadd.f32 %v1010_v31, %v337_v6  ;;  %v709_v10 = vpop.f32.mrb[11].mxu0  ;;  %v546_v11 = vmax.f32 %v439_v4, 0.0  ;;  %v442_v12 = vadd.f32 %v1010_v31, %v441_v7  ;;  %v761_v13 = vpop.f32.mrb[11].mxu1 }
  0xf0   :  { %569 = vst [vmem:[%s1211_s3 + $0x20] sm:$0xff] %v520_v8  ;;  %v521_v14 = vmax.f32 %v338_v9, 0.0  ;;  %595 = vst [vmem:[%s1211_s3 + $0xf0] sm:$0xff] %v546_v11  ;;  %v547_v15 = vmax.f32 %v442_v12, 0.0 }
  0xf2   :  { %570 = vst [vmem:[%s1211_s3 + $0x28] sm:$0xff] %v521_v14  ;;  %596 = vst [vmem:[%s1211_s3 + $0xf8] sm:$0xff] %v547_v15 }
  0xf3   :  { %v342_v16 = vpop.f32.mrb[12].mxu0  ;;  %v446_v17 = vpop.f32.mrb[12].mxu1 }
  0xf4   :  { %v343_v18 = vadd.f32 %v1010_v31, %v342_v16  ;;  %v712_v19 = vpop.f32.mrb[13].mxu0  ;;  %v447_v20 = vadd.f32 %v1010_v31, %v446_v17  ;;  %v764_v21 = vpop.f32.mrb[13].mxu1 }
  0xf5   :  { %v345_v22 = vpop.f32.mrb[14].mxu0  ;;  %v449_v23 = vpop.f32.mrb[14].mxu1 }
  0xf6   :  { %v522_v24 = vmax.f32 %v343_v18, 0.0  ;;  %v346_v25 = vadd.f32 %v1010_v31, %v345_v22  ;;  %v713_v26 = vpop.f32.mrb[15].mxu0  ;;  %v548_v27 = vmax.f32 %v447_v20, 0.0  ;;  %v450_v28 = vadd.f32 %v1010_v31, %v449_v23  ;;  %v765_v29 = vpop.f32.mrb[15].mxu1 }
  0xf8   :  { %571 = vst [vmem:[%s1211_s3 + $0x30] sm:$0xff] %v522_v24  ;;  %v523_v30 = vmax.f32 %v346_v25, 0.0  ;;  %597 = vst [vmem:[%s1211_s3 + $0x100] sm:$0xff] %v548_v27  ;;  %v549_v32 = vmax.f32 %v450_v28, 0.0 }
  0xfa   :  { %572 = vst [vmem:[%s1211_s3 + $0x38] sm:$0xff] %v523_v30  ;;  %598 = vst [vmem:[%s1211_s3 + $0x108] sm:$0xff] %v549_v32 }
  0xfb   :  { %v350_v33 = vpop.f32.mrb[16].mxu0  ;;  %v454_v34 = vpop.f32.mrb[16].mxu1 }
  0xfc   :  { %v351_v35 = vadd.f32 %v1010_v31, %v350_v33  ;;  %v716_v36 = vpop.f32.mrb[17].mxu0  ;;  %v455_v37 = vadd.f32 %v1010_v31, %v454_v34  ;;  %v768_v38 = vpop.f32.mrb[17].mxu1 }
  0xfd   :  { %v353_v39 = vpop.f32.mrb[18].mxu0  ;;  %v457_v40 = vpop.f32.mrb[18].mxu1 }
  0xfe   :  { %v524_v41 = vmax.f32 %v351_v35, 0.0  ;;  %v354_v42 = vadd.f32 %v1010_v31, %v353_v39  ;;  %v717_v43 = vpop.f32.mrb[19].mxu0  ;;  %v550_v44 = vmax.f32 %v455_v37, 0.0  ;;  %v458_v45 = vadd.f32 %v1010_v31, %v457_v40  ;;  %v769_v46 = vpop.f32.mrb[19].mxu1 }
 0x100   :  { %573 = vst [vmem:[%s1211_s3 + $0x40] sm:$0xff] %v524_v41  ;;  %v525_v47 = vmax.f32 %v354_v42, 0.0  ;;  %599 = vst [vmem:[%s1211_s3 + $0x110] sm:$0xff] %v550_v44  ;;  %v551_v48 = vmax.f32 %v458_v45, 0.0 }
 0x102   :  { %574 = vst [vmem:[%s1211_s3 + $0x48] sm:$0xff] %v525_v47  ;;  %600 = vst [vmem:[%s1211_s3 + $0x118] sm:$0xff] %v551_v48 }
 0x103   :  { %v358_v49 = vpop.f32.mrb[20].mxu0  ;;  %v462_v50 = vpop.f32.mrb[20].mxu1 }
 0x104   :  { %v359_v51 = vadd.f32 %v1010_v31, %v358_v49  ;;  %v720_v52 = vpop.f32.mrb[21].mxu0  ;;  %v463_v53 = vadd.f32 %v1010_v31, %v462_v50  ;;  %v772_v54 = vpop.f32.mrb[21].mxu1 }
 0x105   :  { %v361_v55 = vpop.f32.mrb[22].mxu0  ;;  %v465_v56 = vpop.f32.mrb[22].mxu1 }
 0x106   :  { %v526_v57 = vmax.f32 %v359_v51, 0.0  ;;  %v362_v58 = vadd.f32 %v1010_v31, %v361_v55  ;;  %v721_v59 = vpop.f32.mrb[23].mxu0  ;;  %v552_v60 = vmax.f32 %v463_v53, 0.0  ;;  %v466_v61 = vadd.f32 %v1010_v31, %v465_v56  ;;  %v773_v62 = vpop.f32.mrb[23].mxu1 }
 0x108   :  { %575 = vst [vmem:[%s1211_s3 + $0x50] sm:$0xff] %v526_v57  ;;  %v527_v63 = vmax.f32 %v362_v58, 0.0  ;;  %601 = vst [vmem:[%s1211_s3 + $0x120] sm:$0xff] %v552_v60  ;;  %v553_v0 = vmax.f32 %v466_v61, 0.0 }
 0x10a   :  { %576 = vst [vmem:[%s1211_s3 + $0x58] sm:$0xff] %v527_v63  ;;  %602 = vst [vmem:[%s1211_s3 + $0x128] sm:$0xff] %v553_v0 }
 0x10b   :  { %v366_v1 = vpop.f32.mrb[24].mxu0  ;;  %v470_v2 = vpop.f32.mrb[24].mxu1 }
 0x10c   :  { %v367_v3 = vadd.f32 %v1010_v31, %v366_v1  ;;  %v724_v4 = vpop.f32.mrb[25].mxu0  ;;  %v471_v5 = vadd.f32 %v1010_v31, %v470_v2  ;;  %v776_v6 = vpop.f32.mrb[25].mxu1 }
 0x10d   :  { %v369_v7 = vpop.f32.mrb[26].mxu0  ;;  %v473_v8 = vpop.f32.mrb[26].mxu1 }
 0x10e   :  { %v528_v9 = vmax.f32 %v367_v3, 0.0  ;;  %v370_v10 = vadd.f32 %v1010_v31, %v369_v7  ;;  %v725_v11 = vpop.f32.mrb[27].mxu0  ;;  %v554_v12 = vmax.f32 %v471_v5, 0.0  ;;  %v474_v13 = vadd.f32 %v1010_v31, %v473_v8  ;;  %v777_v14 = vpop.f32.mrb[27].mxu1 }
 0x110   :  { %577 = vst [vmem:[%s1211_s3 + $0x60] sm:$0xff] %v528_v9  ;;  %v529_v15 = vmax.f32 %v370_v10, 0.0  ;;  %603 = vst [vmem:[%s1211_s3 + $0x130] sm:$0xff] %v554_v12  ;;  %v555_v16 = vmax.f32 %v474_v13, 0.0 }
 0x112   :  { %578 = vst [vmem:[%s1211_s3 + $0x68] sm:$0xff] %v529_v15  ;;  %604 = vst [vmem:[%s1211_s3 + $0x138] sm:$0xff] %v555_v16 }
 0x113   :  { %v374_v17 = vpop.f32.mrb[28].mxu0  ;;  %v478_v18 = vpop.f32.mrb[28].mxu1 }
 0x114   :  { %v375_v19 = vadd.f32 %v1010_v31, %v374_v17  ;;  %v728_v20 = vpop.f32.mrb[29].mxu0  ;;  %v479_v21 = vadd.f32 %v1010_v31, %v478_v18  ;;  %v780_v22 = vpop.f32.mrb[29].mxu1 }
 0x115   :  { %v377_v23 = vpop.f32.mrb[30].mxu0  ;;  %v481_v24 = vpop.f32.mrb[30].mxu1 }
 0x116   :  { %v530_v25 = vmax.f32 %v375_v19, 0.0  ;;  %v378_v26 = vadd.f32 %v1010_v31, %v377_v23  ;;  %v729_v27 = vpop.f32.mrb[31].mxu0  ;;  %v556_v28 = vmax.f32 %v479_v21, 0.0  ;;  %v482_v29 = vadd.f32 %v1010_v31, %v481_v24  ;;  %v781_v30 = vpop.f32.mrb[31].mxu1 }
 0x118   :  { %579 = vst [vmem:[%s1211_s3 + $0x70] sm:$0xff] %v530_v25  ;;  %v531_v32 = vmax.f32 %v378_v26, 0.0  ;;  %605 = vst [vmem:[%s1211_s3 + $0x140] sm:$0xff] %v556_v28  ;;  %v557_v33 = vmax.f32 %v482_v29, 0.0 }
 0x11a   :  { %580 = vst [vmem:[%s1211_s3 + $0x78] sm:$0xff] %v531_v32  ;;  %606 = vst [vmem:[%s1211_s3 + $0x148] sm:$0xff] %v557_v33 }
 0x11b   :  { %v382_v34 = vpop.f32.mrb[32].mxu0  ;;  %v486_v35 = vpop.f32.mrb[32].mxu1 }
 0x11c   :  { %v383_v36 = vadd.f32 %v1010_v31, %v382_v34  ;;  %v732_v37 = vpop.f32.mrb[33].mxu0  ;;  %v487_v38 = vadd.f32 %v1010_v31, %v486_v35  ;;  %v784_v39 = vpop.f32.mrb[33].mxu1 }
 0x11d   :  { %v385_v40 = vpop.f32.mrb[34].mxu0  ;;  %v489_v41 = vpop.f32.mrb[34].mxu1 }
 0x11e   :  { %v532_v42 = vmax.f32 %v383_v36, 0.0  ;;  %v386_v43 = vadd.f32 %v1010_v31, %v385_v40  ;;  %v733_v44 = vpop.f32.mrb[35].mxu0  ;;  %v558_v45 = vmax.f32 %v487_v38, 0.0  ;;  %v490_v46 = vadd.f32 %v1010_v31, %v489_v41  ;;  %v785_v47 = vpop.f32.mrb[35].mxu1 }
 0x120   :  { %581 = vst [vmem:[%s1211_s3 + $0x80] sm:$0xff] %v532_v42  ;;  %v533_v48 = vmax.f32 %v386_v43, 0.0  ;;  %607 = vst [vmem:[%s1211_s3 + $0x150] sm:$0xff] %v558_v45  ;;  %v559_v49 = vmax.f32 %v490_v46, 0.0 }
 0x122   :  { %582 = vst [vmem:[%s1211_s3 + $0x88] sm:$0xff] %v533_v48  ;;  %608 = vst [vmem:[%s1211_s3 + $0x158] sm:$0xff] %v559_v49 }
 0x123   :  { %v390_v50 = vpop.f32.mrb[36].mxu0  ;;  %v494_v51 = vpop.f32.mrb[36].mxu1 }
 0x124   :  { %v391_v52 = vadd.f32 %v1010_v31, %v390_v50  ;;  %v736_v53 = vpop.f32.mrb[37].mxu0  ;;  %v495_v54 = vadd.f32 %v1010_v31, %v494_v51  ;;  %v788_v55 = vpop.f32.mrb[37].mxu1 }
 0x125   :  { %v393_v56 = vpop.f32.mrb[38].mxu0  ;;  %v497_v57 = vpop.f32.mrb[38].mxu1 }
 0x126   :  { %v534_v58 = vmax.f32 %v391_v52, 0.0  ;;  %v394_v59 = vadd.f32 %v1010_v31, %v393_v56  ;;  %v737_v60 = vpop.f32.mrb[39].mxu0  ;;  %v560_v61 = vmax.f32 %v495_v54, 0.0  ;;  %v498_v62 = vadd.f32 %v1010_v31, %v497_v57  ;;  %v789_v63 = vpop.f32.mrb[39].mxu1 }
 0x128   :  { %583 = vst [vmem:[%s1211_s3 + $0x90] sm:$0xff] %v534_v58  ;;  %v535_v0 = vmax.f32 %v394_v59, 0.0  ;;  %609 = vst [vmem:[%s1211_s3 + $0x160] sm:$0xff] %v560_v61  ;;  %v561_v1 = vmax.f32 %v498_v62, 0.0 }
 0x12a   :  { %584 = vst [vmem:[%s1211_s3 + $0x98] sm:$0xff] %v535_v0  ;;  %610 = vst [vmem:[%s1211_s3 + $0x168] sm:$0xff] %v561_v1 }
 0x12b   :  { %v398_v2 = vpop.f32.mrb[40].mxu0  ;;  %v502_v3 = vpop.f32.mrb[40].mxu1 }
 0x12c   :  { %v399_v4 = vadd.f32 %v1010_v31, %v398_v2  ;;  %v740_v5 = vpop.f32.mrb[41].mxu0  ;;  %v503_v6 = vadd.f32 %v1010_v31, %v502_v3  ;;  %v792_v7 = vpop.f32.mrb[41].mxu1 }
 0x12d   :  { %v401_v8 = vpop.f32.mrb[42].mxu0  ;;  %v505_v9 = vpop.f32.mrb[42].mxu1 }
 0x12e   :  { %v536_v10 = vmax.f32 %v399_v4, 0.0  ;;  %v402_v11 = vadd.f32 %v1010_v31, %v401_v8  ;;  %v741_v12 = vpop.f32.mrb[43].mxu0  ;;  %v562_v13 = vmax.f32 %v503_v6, 0.0  ;;  %v506_v14 = vadd.f32 %v1010_v31, %v505_v9  ;;  %v793_v15 = vpop.f32.mrb[43].mxu1 }
 0x130   :  { %585 = vst [vmem:[%s1211_s3 + $0xa0] sm:$0xff] %v536_v10  ;;  %v537_v16 = vmax.f32 %v402_v11, 0.0  ;;  %611 = vst [vmem:[%s1211_s3 + $0x170] sm:$0xff] %v562_v13  ;;  %v563_v17 = vmax.f32 %v506_v14, 0.0 }
 0x132   :  { %586 = vst [vmem:[%s1211_s3 + $0xa8] sm:$0xff] %v537_v16  ;;  %612 = vst [vmem:[%s1211_s3 + $0x178] sm:$0xff] %v563_v17 }
 0x133   :  { %v406_v18 = vpop.f32.mrb[44].mxu0  ;;  %v510_v19 = vpop.f32.mrb[44].mxu1 }
 0x134   :  { %v407_v20 = vadd.f32 %v1010_v31, %v406_v18  ;;  %v744_v21 = vpop.f32.mrb[45].mxu0  ;;  %v511_v22 = vadd.f32 %v1010_v31, %v510_v19  ;;  %v796_v23 = vpop.f32.mrb[45].mxu1 }
 0x135   :  { %v409_v24 = vpop.f32.mrb[46].mxu0  ;;  %v513_v25 = vpop.f32.mrb[46].mxu1 }
 0x136   :  { %v538_v26 = vmax.f32 %v407_v20, 0.0  ;;  %v410_v27 = vadd.f32 %v1010_v31, %v409_v24  ;;  %v745_v28 = vpop.f32.mrb[47].mxu0  ;;  %v564_v29 = vmax.f32 %v511_v22, 0.0  ;;  %v797_v30 = vpop.f32.mrb[47].mxu1 }
 0x138   :  { %587 = vst [vmem:[%s1211_s3 + $0xb0] sm:$0xff] %v538_v26  ;;  %v539_v32 = vmax.f32 %v410_v27, 0.0  ;;  %613 = vst [vmem:[%s1211_s3 + $0x180] sm:$0xff] %v564_v29 }
 0x13a   :  { %588 = vst [vmem:[%s1211_s3 + $0xb8] sm:$0xff] %v539_v32 }
 0x13b   :  { %v414_v33 = vpop.f32.mrb[48].mxu0 }
 0x13c   :  { %v415_v34 = vadd.f32 %v1010_v31, %v414_v33  ;;  %v748_v35 = vpop.f32.mrb[49].mxu0 }
 0x13d   :  { %v417_v36 = vpop.f32.mrb[50].mxu0 }
 0x13e   :  { %v540_v37 = vmax.f32 %v415_v34, 0.0  ;;  %v418_v38 = vadd.f32 %v1010_v31, %v417_v36  ;;  %v749_v39 = vpop.f32.mrb[51].mxu0 }
 0x140   :  { %589 = vst [vmem:[%s1211_s3 + $0xc0] sm:$0xff] %v540_v37  ;;  %v541_v40 = vmax.f32 %v418_v38, 0.0 }
 0x142   :  { %590 = vst [vmem:[%s1211_s3 + $0xc8] sm:$0xff] %v541_v40 }

// kernel: cluster_autoencoder_forward.8
= control target key start
LH: loop header
LB: loop body
LE: loop exit
PB: predicated region body
PF: predicated region fallthrough
CT: control target
= control target key end

     0   :  { %v386_v0 = vmov 0   ;;  %vm167_vm0 = vcmask 130048   ;;  %s537_s1 = inlined_call_operand.vmem [shape: bf16[144,128], index: 1, kind: input, shape index: {}]   ;;  %s538_s0 = inlined_call_operand.vmem [shape: bf16[98,144], index: 0, kind: input, shape index: {}]   ;;  %s539_s2 = inlined_call_operand.vmem [shape: f32[1,128], index: 2, kind: input, shape index: {}]   ;;  %s540_s3 = inlined_call_operand.vmem [shape: f32[98,128], index: 3, kind: output, shape index: {}]  }
   0x1   :  { %189 = vmatprep.subr.bf16.mxu0 %v386_v0  ;;  %v357_v1 = vld [vmem:[%s537_s1] sm:$0xff]   ;;  %338 = vmatprep.subr.bf16.mxu1 %v386_v0  ;;  %v358_v2 = vld [vmem:[%s537_s1 + $0x8] sm:$0xff]   ;;  %v359_v3 = vld [vmem:[%s537_s1 + $0x10] sm:$0xff]  }
   0x2   :  { %190 = vmatpush1.bf16.msra.mxu0 %v357_v1  ;;  %347 = vmatpush1.bf16.msra.mxu1 %v357_v1  ;;  %v360_v4 = vld [vmem:[%s537_s1 + $0x18] sm:$0xff]   ;;  %v368_v5 = vld [vmem:[%s538_s0 + $0x4] ss:$8 sps:$4 sm:$0xff]   ;;  %v363_v9 = vld [vmem:[%s537_s1 + $0x30] sm:$0xff]  }
   0x3   :  { %191 = vmatprep.subr.bf16.mxu0 %v386_v0  ;;  %339 = vmatprep.subr.bf16.mxu1 %v386_v0  ;;  %v371_v6 = vld [vmem:[%s538_s0 + $0x44] ss:$8 sps:$4 sm:$0xff]   ;;  %v364_v10 = vld [vmem:[%s537_s1 + $0x38] sm:$0xff]   ;;  %v366_v12 = vld [vmem:[%s538_s0] ss:$8 sps:$4 sm:$0xff]  }
   0x4   :  { %331 = vmatprep.mubr.msk.bf16.mxu0 %vm167_vm0, %v368_v5  ;;  %335 = vmatprep.mubr.msk.bf16.mxu1 %vm167_vm0, %v371_v6  ;;  %v361_v7 = vld [vmem:[%s537_s1 + $0x20] sm:$0xff]   ;;  %v362_v8 = vld [vmem:[%s537_s1 + $0x28] sm:$0xff]   ;;  %v372_v14 = vld [vmem:[%s538_s0 + $0x14] ss:$8 sps:$4 sm:$0xff]  }
   0x5   :  { %v365_v11 = vld [vmem:[%s537_s1 + $0x40] sm:$0xff]   ;;  %v375_v15 = vld [vmem:[%s538_s0 + $0x54] ss:$8 sps:$4 sm:$0xff]   ;;  %v374_v17 = vld [vmem:[%s538_s0 + $0x10] ss:$8 sps:$4 sm:$0xff]  }
   0x6   :  { %192 = vmatpush1.bf16.msra.mxu0 %v358_v2  ;;  %348 = vmatpush1.bf16.msra.mxu1 %v358_v2  ;;  %v369_v13 = vld [vmem:[%s538_s0 + $0x40] ss:$8 sps:$4 sm:$0xff]   ;;  %v379_v18 = vld [vmem:[%s538_s0 + $0x50] ss:$8 sps:$4 sm:$0xff]   ;;  %v377_v19 = vld [vmem:[%s538_s0 + $0x24] ss:$8 sps:$4 sm:$0xff]  }
   0x7   :  { %193 = vmatprep.subr.bf16.mxu0 %v386_v0  ;;  %340 = vmatprep.subr.bf16.mxu1 %v386_v0  ;;  %v27_v16 = vld [vmem:[%s538_s0 + $0x60] sm:$0x11]  ;;  %v382_v23 = vld [vmem:[%s538_s0 + $0x34] ss:$8 sps:$4 sm:$0xff]   ;;  %v385_v24 = vld [vmem:[%s538_s0 + $0x30] ss:$8 sps:$4 sm:$0xff]  }
   0x8   :  { %v321_v20 = vcombine.high %v27_v16, %v27_v16  ;;  %v380_v21 = vld [vmem:[%s538_s0 + $0x20] ss:$8 sps:$4 sm:$0xff]   ;;  %v320_v22 = vcombine.low %v27_v16, %v27_v16 }
   0x9   :  { %v483_v25 = vld [vmem:[%s539_s2] ss:$0 sm:$0xff] }
   0xa   :  { %194 = vmatpush1.bf16.msra.mxu0 %v359_v3  ;;  %349 = vmatpush1.bf16.msra.mxu1 %v359_v3 }
   0xb   :  { %195 = vmatprep.subr.bf16.mxu0 %v386_v0  ;;  %341 = vmatprep.subr.bf16.mxu1 %v386_v0 }
   0xe   :  { %196 = vmatpush1.bf16.msra.mxu0 %v360_v4  ;;  %350 = vmatpush1.bf16.msra.mxu1 %v360_v4 }
   0xf   :  { %197 = vmatprep.subr.bf16.mxu0 %v386_v0  ;;  %342 = vmatprep.subr.bf16.mxu1 %v386_v0 }
  0x12   :  { %198 = vmatpush1.bf16.msra.mxu0 %v361_v7  ;;  %351 = vmatpush1.bf16.msra.mxu1 %v361_v7 }
  0x13   :  { %199 = vmatprep.subr.bf16.mxu0 %v386_v0  ;;  %343 = vmatprep.subr.bf16.mxu1 %v386_v0 }
  0x16   :  { %200 = vmatpush1.bf16.msra.mxu0 %v362_v8  ;;  %352 = vmatpush1.bf16.msra.mxu1 %v362_v8 }
  0x17   :  { %201 = vmatprep.subr.bf16.mxu0 %v386_v0  ;;  %344 = vmatprep.subr.bf16.mxu1 %v386_v0 }
  0x1a   :  { %202 = vmatpush1.bf16.msra.mxu0 %v363_v9  ;;  %353 = vmatpush1.bf16.msra.mxu1 %v363_v9 }
  0x1b   :  { %203 = vmatprep.subr.bf16.mxu0 %v386_v0  ;;  %345 = vmatprep.subr.bf16.mxu1 %v386_v0 }
  0x1e   :  { %204 = vmatpush1.bf16.msra.mxu0 %v364_v10  ;;  %354 = vmatpush1.bf16.msra.mxu1 %v364_v10 }
  0x1f   :  { %205 = vmatprep.subr.bf16.mxu0 %v386_v0  ;;  %346 = vmatprep.subr.bf16.mxu1 %v386_v0 }
  0x22   :  { %206 = vmatpush1.bf16.msra.mxu0 %v365_v11  ;;  %355 = vmatpush1.bf16.msra.mxu1 %v365_v11 }
  0x25   :  { %222 = vmatmul.mubr.bf16.vlgmr.msra.gmra.mrb[0].mxu0 %v366_v12  ;;  %254 = vmatmul.mubr.bf16.vlgmr.msra.gmra.mrb[0].mxu1 %v369_v13 }
  0x26   :  { %332 = vmatprep.mubr.msk.bf16.mxu0 %vm167_vm0, %v372_v14  ;;  %336 = vmatprep.mubr.msk.bf16.mxu1 %vm167_vm0, %v375_v15 }
  0x2d   :  { %230 = vmatmul.mubr.bf16.gmra.mrb[4].mxu0 %v374_v17  ;;  %262 = vmatmul.mubr.bf16.gmra.mrb[4].mxu1 %v379_v18 }
  0x2e   :  { %333 = vmatprep.mubr.msk.bf16.mxu0 %vm167_vm0, %v377_v19  ;;  %337 = vmatprep.mubr.msk.bf16.mxu1 %vm167_vm0, %v321_v20 }
  0x35   :  { %238 = vmatmul.mubr.bf16.gmra.mrb[8].mxu0 %v380_v21  ;;  %270 = vmatmul.mubr.bf16.gmra.mrb[8].mxu1 %v320_v22 }
  0x36   :  { %334 = vmatprep.mubr.msk.bf16.mxu0 %vm167_vm0, %v382_v23 }
  0x3d   :  { %246 = vmatmul.mubr.bf16.gmra.mrb[12].mxu0 %v385_v24 }
  0xf8   :  { %v223_v26 = vpop.f32.mrb[0].mxu0  ;;  %v255_v27 = vpop.f32.mrb[0].mxu1 }
  0xf9   :  { %v224_v28 = vadd.f32 %v483_v25, %v223_v26  ;;  %v225_v29 = vpop.f32.mrb[1].mxu0  ;;  %v256_v30 = vadd.f32 %v483_v25, %v255_v27  ;;  %v257_v31 = vpop.f32.mrb[1].mxu1 }
  0xfa   :  { %v226_v32 = vpop.f32.mrb[2].mxu0  ;;  %v258_v33 = vpop.f32.mrb[2].mxu1 }
  0xfb   :  { %v277_v34 = vmax.f32 %v224_v28, 0.0  ;;  %v227_v35 = vadd.f32 %v483_v25, %v226_v32  ;;  %v228_v36 = vpop.f32.mrb[3].mxu0  ;;  %v285_v37 = vmax.f32 %v256_v30, 0.0  ;;  %v259_v38 = vadd.f32 %v483_v25, %v258_v33  ;;  %v260_v39 = vpop.f32.mrb[3].mxu1 }
  0xfd   :  { %290 = vst [vmem:[%s540_s3] sm:$0xff] %v277_v34  ;;  %v278_v40 = vmax.f32 %v227_v35, 0.0  ;;  %298 = vst [vmem:[%s540_s3 + $0x40] sm:$0xff] %v285_v37  ;;  %v286_v41 = vmax.f32 %v259_v38, 0.0 }
  0xff   :  { %291 = vst [vmem:[%s540_s3 + $0x8] sm:$0xff] %v278_v40  ;;  %299 = vst [vmem:[%s540_s3 + $0x48] sm:$0xff] %v286_v41 }
 0x100   :  { %v231_v42 = vpop.f32.mrb[4].mxu0  ;;  %v263_v43 = vpop.f32.mrb[4].mxu1 }
 0x101   :  { %v232_v44 = vadd.f32 %v483_v25, %v231_v42  ;;  %v233_v45 = vpop.f32.mrb[5].mxu0  ;;  %v264_v46 = vadd.f32 %v483_v25, %v263_v43  ;;  %v265_v47 = vpop.f32.mrb[5].mxu1 }
 0x102   :  { %v234_v48 = vpop.f32.mrb[6].mxu0  ;;  %v266_v49 = vpop.f32.mrb[6].mxu1 }
 0x103   :  { %v279_v50 = vmax.f32 %v232_v44, 0.0  ;;  %v235_v51 = vadd.f32 %v483_v25, %v234_v48  ;;  %v236_v52 = vpop.f32.mrb[7].mxu0  ;;  %v287_v53 = vmax.f32 %v264_v46, 0.0  ;;  %v267_v54 = vadd.f32 %v483_v25, %v266_v49  ;;  %v268_v55 = vpop.f32.mrb[7].mxu1 }
 0x105   :  { %292 = vst [vmem:[%s540_s3 + $0x10] sm:$0xff] %v279_v50  ;;  %v280_v56 = vmax.f32 %v235_v51, 0.0  ;;  %300 = vst [vmem:[%s540_s3 + $0x50] sm:$0xff] %v287_v53  ;;  %v288_v57 = vmax.f32 %v267_v54, 0.0 }
 0x107   :  { %293 = vst [vmem:[%s540_s3 + $0x18] sm:$0xff] %v280_v56  ;;  %301 = vst [vmem:[%s540_s3 + $0x58] sm:$0xff] %v288_v57 }
 0x108   :  { %v239_v58 = vpop.f32.mrb[8].mxu0  ;;  %v271_v59 = vpop.f32.mrb[8].mxu1 }
 0x109   :  { %v240_v60 = vadd.f32 %v483_v25, %v239_v58  ;;  %v241_v61 = vpop.f32.mrb[9].mxu0  ;;  %v272_v62 = vadd.f32 %v483_v25, %v271_v59  ;;  %v273_v63 = vpop.f32.mrb[9].mxu1 }
 0x10a   :  { %v242_v0 = vpop.f32.mrb[10].mxu0  ;;  %v274_v1 = vpop.f32.mrb[10].mxu1 }
 0x10b   :  { %v281_v2 = vmax.f32 %v240_v60, 0.0  ;;  %v243_v3 = vadd.f32 %v483_v25, %v242_v0  ;;  %v244_v4 = vpop.f32.mrb[11].mxu0  ;;  %v289_v5 = vmax.f32 %v272_v62, 0.0  ;;  %v275_v6 = vpop.f32.mrb[11].mxu1 }
 0x10d   :  { %294 = vst [vmem:[%s540_s3 + $0x20] sm:$0xff] %v281_v2  ;;  %v282_v7 = vmax.f32 %v243_v3, 0.0  ;;  %302 = vst [vmem:[%s540_s3 + $0x60] sm:$0x3] %v289_v5 }
 0x10f   :  { %295 = vst [vmem:[%s540_s3 + $0x28] sm:$0xff] %v282_v7 }
 0x110   :  { %v247_v8 = vpop.f32.mrb[12].mxu0 }
 0x111   :  { %v248_v9 = vadd.f32 %v483_v25, %v247_v8  ;;  %v249_v10 = vpop.f32.mrb[13].mxu0 }
 0x112   :  { %v250_v11 = vpop.f32.mrb[14].mxu0 }
 0x113   :  { %v283_v12 = vmax.f32 %v248_v9, 0.0  ;;  %v251_v13 = vadd.f32 %v483_v25, %v250_v11  ;;  %v252_v14 = vpop.f32.mrb[15].mxu0 }
 0x115   :  { %296 = vst [vmem:[%s540_s3 + $0x30] sm:$0xff] %v283_v12  ;;  %v284_v15 = vmax.f32 %v251_v13, 0.0 }
 0x117   :  { %297 = vst [vmem:[%s540_s3 + $0x38] sm:$0xff] %v284_v15 }

// kernel: cluster_autoencoder_forward.10
= control target key start
LH: loop header
LB: loop body
LE: loop exit
PB: predicated region body
PF: predicated region fallthrough
CT: control target
= control target key end

     0   :  { %14 = vsyncpa [#allocation3], 0  ;;  %v495_v3 = vmov 0.0|0.0   ;;  %vm496_vm0 = vmmov 0   ;;  %v497_v6 = vmov 0.0   ;;  %vm132_vm1 = vcmask 80896   ;;  %s648_s0 = inlined_call_operand.vmem [shape: f32[2,64], index: 0, kind: input, shape index: {}]   ;;  %s649_s1 = inlined_call_operand.vmem [shape: f32[64,32], index: 1, kind: input, shape index: {}]   ;;  %s650_s2 = inlined_call_operand.vmem [shape: f32[1,32], index: 2, kind: input, shape index: {}]   ;;  %s651_s3 = inlined_call_operand.vmem [shape: f32[32,10], index: 3, kind: input, shape index: {}]   ;;  %s652_s4 = inlined_call_operand.vmem [shape: f32[32,64], index: 4, kind: input, shape index: {}]   ;;  %s653_s5 = inlined_call_operand.vmem [shape: f32[1,64], index: 5, kind: input, shape index: {}]   ;;  %s654_s6 = inlined_call_operand.hbm [shape: f32[2,32], index: 6, kind: output, shape index: {0}]   ;;  %s655_s7 = inlined_call_operand.hbm [shape: f32[2,10], index: 7, kind: output, shape index: {1}]   ;;  %s656_s8 = inlined_call_operand.vmem [shape: f32[2,64], index: 8, kind: output, shape index: {2}]  }
   0x1   :  { %v29_v0 = vld [vmem:[%s649_s1] sm:$0xff]  ;;  %v30_v1 = vld [vmem:[%s649_s1 + $0x8] sm:$0xff]  ;;  %v31_v2 = vld [vmem:[%s649_s1 + $0x10] sm:$0xff]  ;;  %414 = vmatprep.subr.bf16.mxu0 %v495_v3  ;;  %389 = vmatprep.mubr.msk.f32.mxu0 %vm496_vm0, %v497_v6 }
   0x2   :  { %v415_v4 = vpack.c.bf16 %v30_v1, %v29_v0  ;;  %v32_v5 = vld [vmem:[%s649_s1 + $0x18] sm:$0xff]  ;;  %v33_v7 = vld [vmem:[%s649_s1 + $0x20] sm:$0xff]  ;;  %426 = vmatprep.subr.bf16.mxu1 %v495_v3  ;;  %400 = vmatprep.mubr.msk.f32.mxu1 %vm496_vm0, %v497_v6  ;;  %v121_v10 = vld [vmem:[%s651_s3 + $0x8] sm:$0xff] }
   0x3   :  { %v418_v8 = vpack.c.bf16 %v32_v5, %v31_v2  ;;  %v120_v9 = vld [vmem:[%s651_s3] sm:$0xff]  ;;  %v122_v11 = vld [vmem:[%s651_s3 + $0x10] sm:$0xff]  ;;  %v34_v12 = vld [vmem:[%s649_s1 + $0x28] sm:$0xff]  ;;  %v129_v14 = vmul.f32 %v121_v10, %v121_v10 }
   0x4   :  { %416 = vmatpush3.bf16.msra.mxu0 %v415_v4  ;;  %v128_v13 = vmul.f32 %v120_v9, %v120_v9  ;;  %v427_v15 = vpack.c.bf16 %v121_v10, %v120_v9  ;;  %v123_v16 = vld [vmem:[%s651_s3 + $0x18] sm:$0xff]  ;;  %v130_v17 = vmul.f32 %v122_v11, %v122_v11 }
   0x5   :  { %417 = vmatprep.subr.bf16.mxu0 %v495_v3 }
   0x6   :  { %15 = vsyncpa [#allocation5], 0  ;;  %v133_v18 = vsel %vm132_vm1, %v128_v13, 0.0  ;;  %v134_v19 = vsel %vm132_vm1, %v129_v14, 0.0  ;;  %428 = vmatpush3.bf16.msra.mxu1 %v427_v15  ;;  %v136_v20 = vsel %vm132_vm1, %v130_v17, 0.0  ;;  %v430_v21 = vpack.c.bf16 %v123_v16, %v122_v11  ;;  %v35_v24 = vld [vmem:[%s649_s1 + $0x30] sm:$0xff] }
   0x7   :  { %v421_v22 = vpack.c.bf16 %v34_v12, %v33_v7  ;;  %v135_v23 = vadd.f32 %v134_v19, %v133_v18  ;;  %429 = vmatprep.subr.bf16.mxu1 %v495_v3  ;;  %v36_v25 = vld [vmem:[%s649_s1 + $0x38] sm:$0xff]  ;;  %v28_v28 = vld [vmem:[%s648_s0] sm:$0x3]  ;;  %vm44_vm2 = vcmask 523264   ;;  %v131_v29 = vmul.f32 %v123_v16, %v123_v16  ;;  %v235_v33 = vld [vmem:[%s652_s4 + $0x8] sm:$0xff]  ;;  %s498_s18 = smov [#allocation2]  }
   0x8   :  { %419 = vmatpush3.bf16.msra.mxu0 %v418_v8  ;;  %v424_v27 = vpack.c.bf16 %v36_v25, %v35_v24  ;;  %v234_v32 = vld [vmem:[%s652_s4] sm:$0xff]  ;;  %vm146_vm3 = vcmask 261120   ;;  %vm118_vm4 = vcmask 254976   ;;  %v236_v39 = vld [vmem:[%s652_s4 + $0x10] sm:$0xff]  ;;  %v237_v40 = vld [vmem:[%s652_s4 + $0x18] sm:$0xff]  ;;  %vm315_vm5 = vcmask 517120  }
   0x9   :  { %420 = vmatprep.subr.bf16.mxu0 %v495_v3  ;;  %v137_v26 = vadd.f32 %v136_v20, %v135_v23  ;;  %v138_v30 = vsel %vm132_vm1, %v131_v29, 0.0  ;;  %v349_v34 = vld [vmem:[%s650_s2] ss:$0 sm:$0xff]  ;;  %v433_v36 = vpack.c.bf16 %v235_v33, %v234_v32  ;;  %v436_v42 = vpack.c.bf16 %v237_v40, %v236_v39  ;;  %s323_s19 = sshll.u32 %s498_s18, 4  ;;  %s324_s19 = int_to_ptr.vmem [resolvable:$true] %s323_s19 }
   0xa   :  { %431 = vmatpush3.bf16.msra.mxu1 %v430_v21  ;;  %v352_v57 = vld [vmem:[%s653_s5] ss:$0 sm:$0xff]  ;;  %vm227_vm6 = vcmask 74752   ;;  %s447_s20 = scalar_lea.vmem %s324_s19, 32  ;;  %p452_p1 = scmp.lt.s32.totalorder %s324_s19, %s324_s19 }
   0xb   :  { %432 = vmatprep.subr.bf16.mxu1 %v495_v3  ;;  %v139_v31 = vadd.f32 %v138_v30, %v137_v26  ;;  %p448_p0 = scmp.ne.s32.totalorder %s324_s19, %s447_s20  ;;  %p453_p2 = scmp.lt.s32.totalorder %s447_s20, %s447_s20 }
   0xc   :  { %422 = vmatpush3.bf16.msra.mxu0 %v421_v22 }
   0xd   :  { %423 = vmatprep.subr.bf16.mxu0 %v495_v3  ;;  %v140_v44 = vrot.slane %v139_v31, 4  ;;  %p454_p3 = por %p453_p2, %p452_p1 }
   0xf   :  { %v141_v45 = vadd.f32 %v140_v44, %v139_v31  ;;  %p455_p4 = pnand %p454_p3, %p448_p0 }
  0x10   :  { %425 = vmatpush3.bf16.msra.mxu0 %v424_v27 }
  0x11   :  { %v142_v46 = vrot.slane %v141_v45, 2 }
  0x13   :  { %390 = vmatmul.mubr.msk.f32.vlgmr.msra.gmra.mrb[0].mxu0 %vm44_vm2, %v28_v28  ;;  %v143_v47 = vadd.f32 %v142_v46, %v141_v45 }
  0x15   :  { %v144_v48 = vrot.slane %v143_v47, 1 }
  0x17   :  { %v145_v49 = vadd.f32 %v144_v48, %v143_v47 }
  0xe6   :  { %v114_v35 = vpop.f32.mrb[0].mxu0 }
  0xe7   :  { %v115_v37 = vadd.f32 %v349_v34, %v114_v35  ;;  %v391_v38 = vpop.f32.mrb[1].mxu0 }
  0xe9   :  { %401 = vmatmul.mubr.msk.f32.vlgmr.msra.gmra.mrb[0].mxu1 %vm146_vm3, %v115_v37  ;;  %v124_v41 = vmul.f32 %v115_v37, %v115_v37  ;;  %119 = vst.msk [vmem:[#allocation2] sm:$0x3] %vm118_vm4, %v115_v37 }
  0xea   :  { %434 = vmatpush3.bf16.msra.mxu1 %v433_v36  ;;  %411 = vmatprep.mubr.msk.f32.mxu1 %vm496_vm0, %v497_v6 }
  0xeb   :  { %435 = vmatprep.subr.bf16.mxu1 %v495_v3  ;;  %v125_v43 = vsel %vm118_vm4, %v124_v41, 0.0 }
  0xec   :  { %126 = vadd.xlane.f32.xlu0 %v125_v43 }
  0xee   :  { %437 = vmatpush3.bf16.msra.mxu1 %v436_v42 }
  0xf1   :  { %412 = vmatmul.mubr.msk.f32.vlgmr.msra.gmra.mrb[2].mxu1 %vm146_vm3, %v115_v37 }
 0x179   :  { %v127_v50 = vpop.xlane.xlu0 %126 }
 0x17a   :  { %v220_v52 = vadd.f32 %v145_v49, %v127_v50 }
 0x1bc   :  { %v216_v51 = vpop.f32.mrb[0].mxu1 }
 0x1bd   :  { %v221_v53 = vmul.f32 2.0, %v216_v51  ;;  %v402_v54 = vpop.f32.mrb[1].mxu1 }
 0x1bf   :  { %v222_v55 = vsub.f32 %v220_v52, %v221_v53 }
 0x1c1   :  { %v223_v56 = vmax.f32 %v222_v55, 0.0 }
 0x1c3   :  { %v224_v58 = vadd.f32 1.0, %v223_v56 }
 0x1c4   :  { %v311_v59 = vpop.f32.mrb[2].mxu1 }
 0x1c5   :  { %443 = vrcp.f32 %v224_v58  ;;  %v312_v60 = vadd.f32 %v352_v57, %v311_v59  ;;  %v413_v61 = vpop.f32.mrb[3].mxu1 }
 0x1c7   :  { %316 = vst.msk [vmem:[%s656_s8] sm:$0x3] %vm315_vm5, %v312_v60 }
 0x1cf   :  { %v444_v62 = vpop.eup %443 }
 0x1d0   :  { %v228_v63 = vsel %vm227_vm6, %v444_v62, 0.0 }
 0x1d1   :  { %229 = vadd.xlane.f32.xlu0 %v228_v63 }
 0x1d2   :  { %458 = shalt.err (!%p455_p4)
}
 0x1d3   :  { %s459_s22 = scalar_lea.hbm %s654_s6, 32 }
 0x1d4   :  { %p460_p5 = scmp.ne.s32.totalorder %s654_s6, %s459_s22  ;;  %p463_p6 = scmp.lt.u32.totalorder %s459_s22, %s654_s6 }
 0x1d6   :  { %p465_p7 = pnand %p463_p6, %p460_p5 }
 0x1d8   :  { %468 = shalt.err (!%p465_p7)
}
 0x1d9   :  { %326 = dma.vmem_to_hbm [thread:$0]  %s324_s19, 32, %s654_s6, [#allocation3]  }
 0x1da   :  { %s499_s27 = smov [#allocation4]  }
 0x1db   :  { %s333_s28 = sshll.u32 %s499_s27, 4  ;;  %s334_s28 = int_to_ptr.vmem [resolvable:$true] %s333_s28 }
 0x1dc   :  { %s469_s29 = scalar_lea.vmem %s334_s28, 32  ;;  %p474_p9 = scmp.lt.s32.totalorder %s334_s28, %s334_s28 }
 0x1dd   :  { %p470_p8 = scmp.ne.s32.totalorder %s334_s28, %s469_s29  ;;  %p475_p10 = scmp.lt.s32.totalorder %s469_s29, %s469_s29 }
 0x1df   :  { %p476_p11 = por %p475_p10, %p474_p9 }
 0x1e1   :  { %p477_p12 = pnand %p476_p11, %p470_p8 }
 0x25e   :  { %v230_v0 = vpop.xlane.xlu0 %229 }
 0x25f   :  { %445 = vrcp.f32 %v230_v0 }
 0x269   :  { %v446_v1 = vpop.eup %445 }
 0x26a   :  { %v232_v2 = vmul.f32 %v446_v1, %v444_v62 }
 0x26c   :  { %233 = vst.msk [vmem:[#allocation4] sm:$0x3] %vm227_vm6, %v232_v2 }
 0x26d   :  { %480 = shalt.err (!%p477_p12)
}
 0x26e   :  { %s481_s6 = scalar_lea.hbm %s655_s7, 32 }
 0x26f   :  { %p482_p13 = scmp.ne.s32.totalorder %s655_s7, %s481_s6  ;;  %p485_p0 = scmp.lt.u32.totalorder %s481_s6, %s655_s7 }
 0x271   :  { %p487_p1 = pnand %p485_p0, %p482_p13 }
 0x273   :  { %490 = shalt.err (!%p487_p1)
}
 0x274   :  { %336 = dma.vmem_to_hbm [thread:$0]  %s334_s28, 32, %s655_s7, [#allocation5]  }
 0x275   :  { %491 = dma.done.wait [#allocation3], 32  }
 0x276   :  { %492 = vsyncadd [#allocation3], 4294967264 }
 0x277   :  { %493 = dma.done.wait [#allocation5], 32  }
 0x278   :  { %494 = vsyncadd [#allocation5], 4294967264 }
 0x279   :  { %347 = vsyncpa [#allocation3], 1 }
 0x27a   :  { %348 = vsyncpa [#allocation5], 1 }

// kernel: tile.18
= control target key start
LH: loop header
LB: loop body
LE: loop exit
PB: predicated region body
PF: predicated region fallthrough
CT: control target
= control target key end

     0   :  { %s58_s0 = inlined_call_operand.vmem [shape: f32[32], index: 0, kind: input, shape index: {}]   ;;  %s59_s1 = inlined_call_operand.vmem [shape: f32[49,32], index: 1, kind: output, shape index: {}]  }
   0x1   :  { %v4_v0 = vld [vmem:[%s58_s0] ss:$0 sm:$0xff] }
   0x2   :  { %5 = vst [vmem:[%s59_s1] sm:$0xff] %v4_v0  ;;  %18 = vst [vmem:[%s59_s1 + $0x8] sm:$0xff] %v4_v0 }
   0x3   :  { %19 = vst [vmem:[%s59_s1 + $0x10] sm:$0xff] %v4_v0  ;;  %20 = vst [vmem:[%s59_s1 + $0x18] sm:$0xff] %v4_v0 }
   0x4   :  { %21 = vst [vmem:[%s59_s1 + $0x20] sm:$0xff] %v4_v0  ;;  %22 = vst [vmem:[%s59_s1 + $0x28] sm:$0xff] %v4_v0 }
   0x5   :  { %23 = vst [vmem:[%s59_s1 + $0x30] sm:$0xff] %v4_v0 }

// kernel: tile.19
= control target key start
LH: loop header
LB: loop body
LE: loop exit
PB: predicated region body
PF: predicated region fallthrough
CT: control target
= control target key end

     0   :  { %s165_s10 = smov 64   ;;  %s166_s11 = smov 96   ;;  %vm3_vm0 = vcmask 261120   ;;  %vm17_vm1 = vcmask 1048320   ;;  %vm31_vm2 = vcmask 785920   ;;  %vm45_vm3 = vcmask 523520   ;;  %s241_s0 = inlined_call_operand.vmem [shape: f32[49,32], index: 0, kind: input, shape index: {}]   ;;  %s242_s1 = inlined_call_operand.vmem [shape: f32[1,1568], index: 1, kind: output, shape index: {}]  }
   0x1   :  { %v146_v0 = vld [vmem:[%s241_s0 + $0x2] ss:$4 sm:$0xff]   ;;  %v144_v1 = vld [vmem:[%s241_s0 + $0x3] ss:$4 sm:$0xff]   ;;  %v2_v4 = vld [vmem:[%s241_s0] ss:$4 sm:$0xff]  }
   0x2   :  { %29 = vrot.lane.b32.xlu1 %v146_v0, %s165_s10  ;;  %15 = vrot.lane.b32.xlu0 %v144_v1, %s166_s11  ;;  %v147_v2 = vld [vmem:[%s241_s0 + $0x22] ss:$4 sm:$0xf]   ;;  %v145_v3 = vld [vmem:[%s241_s0 + $0x23] ss:$4 sm:$0xf]  }
   0x3   :  { %4 = vst.msk [vmem:[#allocation0] ss:$8 sm:$0xf] %vm3_vm0, %v2_v4   ;;  %5 = vst.msk [vmem:[#allocation0] ss:$8 sm:$0xf0] %vm3_vm0, %v2_v4  }
   0x4   :  { %v143_v5 = vld [vmem:[%s241_s0 + $0x20] ss:$4 sm:$0x1f]   ;;  %v149_v6 = vld [vmem:[%s241_s0 + $0x21] ss:$4 sm:$0xf]  }
   0x5   :  { %10 = vst.msk [vmem:[#allocation0 + $0x40] ss:$8 sm:$0xf] %vm3_vm0, %v143_v5   ;;  %12 = vst.msk [vmem:[#allocation0 + $0x5c] sm:$0x10] %vm3_vm0, %v143_v5  }
   0x6   :  { %36 = vrot.lane.b32.xlu1 %v147_v2, %s165_s10  ;;  %22 = vrot.lane.b32.xlu0 %v145_v3, %s166_s11  ;;  %v148_v7 = vld [vmem:[%s241_s0 + $0x1] ss:$4 sm:$0xff]   ;;  %s167_s0 = smov 32  }
   0xa   :  { %50 = vrot.lane.b32.xlu1 %v149_v6, %s167_s0  ;;  %43 = vrot.lane.b32.xlu0 %v148_v7, %s167_s0 }
   0xc   :  { %v127_v8 = vld [vmem:[#allocation0 + $0x60] sm:$0x1] }
   0xd   :  { %161 = vst [vmem:[%s242_s1 + $0xc] sm:$0x1] %v127_v8 }
  0x74   :  { %v30_v9 = vpop.permute.xlu1 %29   ;;  %v16_v10 = vpop.permute.xlu0 %15  }
  0x75   :  { %18 = vst.msk [vmem:[#allocation0] ss:$8 sm:$0xf] %vm17_vm1, %v16_v10   ;;  %19 = vst.msk [vmem:[#allocation0] ss:$8 sm:$0xf0] %vm17_vm1, %v16_v10  }
  0x76   :  { %32 = vst.msk [vmem:[#allocation0] ss:$8 sm:$0xf] %vm31_vm2, %v30_v9   ;;  %33 = vst.msk [vmem:[#allocation0] ss:$8 sm:$0xf0] %vm31_vm2, %v30_v9  }
  0x78   :  { %v37_v11 = vpop.permute.xlu1 %36   ;;  %v23_v12 = vpop.permute.xlu0 %22  }
  0x79   :  { %26 = vst.msk [vmem:[#allocation0 + $0x40] ss:$8 sm:$0xf] %vm17_vm1, %v23_v12  }
  0x7a   :  { %40 = vst.msk [vmem:[#allocation0 + $0x40] ss:$8 sm:$0xf] %vm31_vm2, %v37_v11  }
  0x7c   :  { %v51_v13 = vpop.permute.xlu1 %50   ;;  %v44_v14 = vpop.permute.xlu0 %43  }
  0x7d   :  { %54 = vst.msk [vmem:[#allocation0 + $0x40] ss:$8 sm:$0xf] %vm45_vm3, %v51_v13   ;;  %46 = vst.msk [vmem:[#allocation0] ss:$8 sm:$0xf] %vm45_vm3, %v44_v14  }
  0x7e   :  { %47 = vst.msk [vmem:[#allocation0] ss:$8 sm:$0xf0] %vm45_vm3, %v44_v14  }
  0x84   :  { %v103_v15 = vld [vmem:[#allocation0 + $0x40] sm:$0x1]  ;;  %v109_v16 = vld [vmem:[#allocation0 + $0x48] sm:$0x1]  ;;  %v115_v17 = vld [vmem:[#allocation0 + $0x50] sm:$0x1] }
  0x85   :  { %157 = vst [vmem:[%s242_s1 + $0x8] sm:$0x1] %v103_v15  ;;  %158 = vst [vmem:[%s242_s1 + $0x9] sm:$0x1] %v109_v16  ;;  %v121_v18 = vld [vmem:[#allocation0 + $0x58] sm:$0x1] }
  0x86   :  { %159 = vst [vmem:[%s242_s1 + $0xa] sm:$0x1] %v115_v17  ;;  %v58_v19 = vld [vmem:[#allocation0] sm:$0x1]  ;;  %v62_v20 = vld [vmem:[#allocation0 + $0x8] sm:$0x1] }
  0x87   :  { %160 = vst [vmem:[%s242_s1 + $0xb] sm:$0x1] %v121_v18  ;;  %60 = vst [vmem:[%s242_s1] sm:$0x1] %v58_v19  ;;  %v67_v21 = vld [vmem:[#allocation0 + $0x10] sm:$0x1] }
  0x88   :  { %150 = vst [vmem:[%s242_s1 + $0x1] sm:$0x1] %v62_v20  ;;  %v73_v22 = vld [vmem:[#allocation0 + $0x18] sm:$0x1]  ;;  %v79_v23 = vld [vmem:[#allocation0 + $0x20] sm:$0x1] }
  0x89   :  { %151 = vst [vmem:[%s242_s1 + $0x2] sm:$0x1] %v67_v21  ;;  %152 = vst [vmem:[%s242_s1 + $0x3] sm:$0x1] %v73_v22  ;;  %v85_v24 = vld [vmem:[#allocation0 + $0x28] sm:$0x1] }
  0x8a   :  { %153 = vst [vmem:[%s242_s1 + $0x4] sm:$0x1] %v79_v23  ;;  %v91_v25 = vld [vmem:[#allocation0 + $0x30] sm:$0x1]  ;;  %v97_v26 = vld [vmem:[#allocation0 + $0x38] sm:$0x1] }
  0x8b   :  { %154 = vst [vmem:[%s242_s1 + $0x5] sm:$0x1] %v85_v24  ;;  %155 = vst [vmem:[%s242_s1 + $0x6] sm:$0x1] %v91_v25 }
  0x8c   :  { %156 = vst [vmem:[%s242_s1 + $0x7] sm:$0x1] %v97_v26 }

// kernel: cluster_autoencoder_forward.9
= control target key start
LH: loop header
LB: loop body
LE: loop exit
PB: predicated region body
PF: predicated region fallthrough
CT: control target
= control target key end

     0   :  { %v1545_v22 = vmov 1966171168   ;;  %v226_v24 = vlaneseq  ;;  %vm1547_vm0 = vmmov 0   ;;  %vm910_vm1 = vcmask 261120   ;;  %s1902_s1 = inlined_call_operand.vmem [shape: bf16[1568,128], index: 1, kind: input, shape index: {}]   ;;  %s1903_s0 = inlined_call_operand.vmem [shape: bf16[2,1568], index: 0, kind: input, shape index: {}]   ;;  %s1904_s2 = inlined_call_operand.vmem [shape: f32[1,128], index: 2, kind: input, shape index: {}]   ;;  %s1905_s3 = inlined_call_operand.vmem [shape: f32[2,128], index: 3, kind: output, shape index: {}]  }
   0x1   :  { %v1445_v0 = vld [vmem:[%s1902_s1 + $0x40] sm:$0xff]   ;;  %v1449_v4 = vld [vmem:[%s1902_s1 + $0x48] sm:$0xff]   ;;  %v1453_v8 = vld [vmem:[%s1902_s1 + $0x50] sm:$0xff]   ;;  %v224_v23 = vunpack.c.l.s4 %v1545_v22 }
   0x2   :  { %v1446_v1 = vld [vmem:[%s1902_s1] sm:$0xff]   ;;  %1299 = vmatprep.subr.bf16.mxu0 %v1445_v0  ;;  %v1450_v5 = vld [vmem:[%s1902_s1 + $0x8] sm:$0xff]   ;;  %v1454_v9 = vld [vmem:[%s1902_s1 + $0x10] sm:$0xff]   ;;  %v227_v30 = vshrl.u32 %v226_v24, 7 }
   0x3   :  { %v1447_v2 = vld [vmem:[%s1902_s1 + $0xc0] sm:$0xff]   ;;  %1300 = vmatpush3.bf16.msra.mxu0 %v1446_v1  ;;  %v1451_v6 = vld [vmem:[%s1902_s1 + $0xc8] sm:$0xff]   ;;  %v1455_v10 = vld [vmem:[%s1902_s1 + $0xd0] sm:$0xff]   ;;  %v225_v29 = vunpack.c.0.s8 %v224_v23 }
   0x4   :  { %v1448_v3 = vld [vmem:[%s1902_s1 + $0x80] sm:$0xff]   ;;  %1321 = vmatprep.subr.bf16.mxu1 %v1447_v2  ;;  %1301 = vmatprep.subr.bf16.mxu0 %v1449_v4  ;;  %v1452_v7 = vld [vmem:[%s1902_s1 + $0x88] sm:$0xff]   ;;  %v1456_v11 = vld [vmem:[%s1902_s1 + $0x90] sm:$0xff]  }
   0x5   :  { %1322 = vmatpush3.bf16.msra.mxu1 %v1448_v3  ;;  %v1457_v12 = vld [vmem:[%s1902_s1 + $0x58] sm:$0xff]   ;;  %v1461_v16 = vld [vmem:[%s1902_s1 + $0x60] sm:$0xff]   ;;  %v1465_v20 = vld [vmem:[%s1902_s1 + $0x68] sm:$0xff]   ;;  %v1658_v35 = vsub.s32 %v225_v29, %v227_v30 }
   0x6   :  { %1323 = vmatprep.subr.bf16.mxu1 %v1451_v6  ;;  %v1458_v13 = vld [vmem:[%s1902_s1 + $0x18] sm:$0xff]   ;;  %v1462_v17 = vld [vmem:[%s1902_s1 + $0x20] sm:$0xff]   ;;  %v1466_v21 = vld [vmem:[%s1902_s1 + $0x28] sm:$0xff]  }
   0x7   :  { %1302 = vmatpush3.bf16.msra.mxu0 %v1450_v5  ;;  %v1459_v14 = vld [vmem:[%s1902_s1 + $0xd8] sm:$0xff]   ;;  %v1463_v18 = vld [vmem:[%s1902_s1 + $0xe0] sm:$0xff]   ;;  %v1467_v25 = vld [vmem:[%s1902_s1 + $0xe8] sm:$0xff]  }
   0x8   :  { %1303 = vmatprep.subr.bf16.mxu0 %v1453_v8  ;;  %v1460_v15 = vld [vmem:[%s1902_s1 + $0x98] sm:$0xff]   ;;  %v1464_v19 = vld [vmem:[%s1902_s1 + $0xa0] sm:$0xff]   ;;  %v1468_v26 = vld [vmem:[%s1902_s1 + $0xa8] sm:$0xff]  }
   0x9   :  { %1324 = vmatpush3.bf16.msra.mxu1 %v1452_v7  ;;  %v1469_v27 = vld [vmem:[%s1902_s1 + $0x70] sm:$0xff]   ;;  %v1473_v33 = vld [vmem:[%s1902_s1 + $0x78] sm:$0xff]   ;;  %v15_v38 = vld [vmem:[%s1903_s0] sm:$0xff] }
   0xa   :  { %1325 = vmatprep.subr.bf16.mxu1 %v1455_v10  ;;  %v1470_v28 = vld [vmem:[%s1902_s1 + $0x30] sm:$0xff]   ;;  %v1474_v34 = vld [vmem:[%s1902_s1 + $0x38] sm:$0xff]   ;;  %v222_v39 = vcombine.high %v15_v38, %v15_v38  ;;  %v229_v40 = vrot.slane %v15_v38, %v1658_v35  ;;  %v1479_v41 = vld [vmem:[%s1902_s1 + $0x140] sm:$0xff]  }
   0xb   :  { %1304 = vmatpush3.bf16.msra.mxu0 %v1454_v9  ;;  %v1471_v31 = vld [vmem:[%s1902_s1 + $0xf0] sm:$0xff]   ;;  %v1475_v36 = vld [vmem:[%s1902_s1 + $0xf8] sm:$0xff]   ;;  %v1481_v44 = vld [vmem:[%s1902_s1 + $0x1c0] sm:$0xff]  }
   0xc   :  { %1305 = vmatprep.subr.bf16.mxu0 %v1457_v12  ;;  %v1472_v32 = vld [vmem:[%s1902_s1 + $0xb0] sm:$0xff]   ;;  %v1476_v37 = vld [vmem:[%s1902_s1 + $0xb8] sm:$0xff]   ;;  %v237_v42 = vcombine.high %v229_v40, %v229_v40  ;;  %v245_v43 = vrot.slane %v229_v40, %v1658_v35  ;;  %v1678_v45 = vrot.slane %v222_v39, %v1658_v35  ;;  %v1480_v47 = vld [vmem:[%s1902_s1 + $0x100] sm:$0xff]  }
   0xd   :  { %1326 = vmatpush3.bf16.msra.mxu1 %v1456_v11  ;;  %v1483_v50 = vld [vmem:[%s1902_s1 + $0x148] sm:$0xff]   ;;  %v1482_v52 = vld [vmem:[%s1902_s1 + $0x180] sm:$0xff]   ;;  %v1487_v57 = vld [vmem:[%s1902_s1 + $0x150] sm:$0xff]  }
   0xe   :  { %1327 = vmatprep.subr.bf16.mxu1 %v1459_v14  ;;  %v259_v46 = vrot.slane %v237_v42, %v1658_v35  ;;  %v238_v48 = vcombine.high %v1678_v45, %v1678_v45  ;;  %v267_v49 = vcombine.high %v245_v43, %v245_v43  ;;  %v1485_v54 = vld [vmem:[%s1902_s1 + $0x1c8] sm:$0xff]   ;;  %v1489_v59 = vld [vmem:[%s1902_s1 + $0x1d0] sm:$0xff]   ;;  %v1491_v61 = vld [vmem:[%s1902_s1 + $0x158] sm:$0xff]  }
   0xf   :  { %1306 = vmatpush3.bf16.msra.mxu0 %v1458_v13  ;;  %v1484_v55 = vld [vmem:[%s1902_s1 + $0x108] sm:$0xff]   ;;  %v1488_v60 = vld [vmem:[%s1902_s1 + $0x110] sm:$0xff]   ;;  %v1493_v63 = vld [vmem:[%s1902_s1 + $0x1d8] sm:$0xff]  }
  0x10   :  { %1307 = vmatprep.subr.bf16.mxu0 %v1461_v16  ;;  %946 = vmatprep.mubr.bf16.mxu0 %v259_v46  ;;  %v269_v51 = vcombine.high %v259_v46, %v259_v46  ;;  %v266_v53 = vrot.slane %v238_v48, %v1658_v35  ;;  %v1486_v58 = vld [vmem:[%s1902_s1 + $0x188] sm:$0xff]   ;;  %v1490_v62 = vld [vmem:[%s1902_s1 + $0x190] sm:$0xff]   ;;  %v1492_v0 = vld [vmem:[%s1902_s1 + $0x118] sm:$0xff]  }
  0x11   :  { %1328 = vmatpush3.bf16.msra.mxu1 %v1460_v15  ;;  %v1495_v1 = vld [vmem:[%s1902_s1 + $0x160] sm:$0xff]   ;;  %v1494_v2 = vld [vmem:[%s1902_s1 + $0x198] sm:$0xff]   ;;  %v1738_v5 = vld [vmem:[%s1903_s0 + $0x8] sm:$0x1f] }
  0x12   :  { %1329 = vmatprep.subr.bf16.mxu1 %v1463_v18  ;;  %986 = vmatprep.mubr.bf16.mxu1 %v269_v51  ;;  %v270_v56 = vcombine.high %v266_v53, %v266_v53  ;;  %v1497_v3 = vld [vmem:[%s1902_s1 + $0x1e0] sm:$0xff]   ;;  %v1499_v6 = vld [vmem:[%s1902_s1 + $0x168] sm:$0xff]   ;;  %v1503_v10 = vld [vmem:[%s1902_s1 + $0x170] sm:$0xff]   ;;  %v1760_v12 = vrot.slane %v1738_v5, %v1658_v35 }
  0x13   :  { %1308 = vmatpush3.bf16.msra.mxu0 %v1462_v17  ;;  %v1496_v4 = vld [vmem:[%s1902_s1 + $0x120] sm:$0xff]   ;;  %v1501_v8 = vld [vmem:[%s1902_s1 + $0x1e8] sm:$0xff]   ;;  %v1505_v13 = vld [vmem:[%s1902_s1 + $0x1f0] sm:$0xff]  }
  0x14   :  { %1309 = vmatprep.subr.bf16.mxu0 %v1465_v20  ;;  %v1498_v7 = vld [vmem:[%s1902_s1 + $0x1a0] sm:$0xff]   ;;  %v1500_v9 = vld [vmem:[%s1902_s1 + $0x128] sm:$0xff]   ;;  %v1504_v14 = vld [vmem:[%s1902_s1 + $0x130] sm:$0xff]   ;;  %v286_v17 = vcombine.high %v1760_v12, %v1760_v12  ;;  %v252_v20 = vrot.slane %v1678_v45, %v1658_v35 }
  0x15   :  { %1330 = vmatpush3.bf16.msra.mxu1 %v1464_v19  ;;  %v1502_v11 = vld [vmem:[%s1902_s1 + $0x1a8] sm:$0xff]   ;;  %v1507_v15 = vld [vmem:[%s1902_s1 + $0x178] sm:$0xff]   ;;  %v1506_v16 = vld [vmem:[%s1902_s1 + $0x1b0] sm:$0xff]  }
  0x16   :  { %1331 = vmatprep.subr.bf16.mxu1 %v1467_v25  ;;  %v1509_v18 = vld [vmem:[%s1902_s1 + $0x1f8] sm:$0xff]   ;;  %v307_v23 = vrot.slane %v286_v17, %v1658_v35  ;;  %v1513_v24 = vld [vmem:[%s1902_s1 + $0x2c0] sm:$0xff]   ;;  %v1517_v30 = vld [vmem:[%s1902_s1 + $0x2c8] sm:$0xff]  }
  0x17   :  { %1310 = vmatpush3.bf16.msra.mxu0 %v1466_v21  ;;  %v1508_v19 = vld [vmem:[%s1902_s1 + $0x138] sm:$0xff]   ;;  %v1511_v21 = vld [vmem:[%s1902_s1 + $0x240] sm:$0xff]   ;;  %v1522_v38 = vld [vmem:[%s1902_s1 + $0x290] sm:$0xff]  }
  0x18   :  { %1311 = vmatprep.subr.bf16.mxu0 %v1469_v27  ;;  %v1510_v22 = vld [vmem:[%s1902_s1 + $0x1b8] sm:$0xff]   ;;  %v1512_v25 = vld [vmem:[%s1902_s1 + $0x200] sm:$0xff]   ;;  %v1515_v27 = vld [vmem:[%s1902_s1 + $0x248] sm:$0xff]   ;;  %v309_v29 = vcombine.high %v307_v23, %v307_v23 }
  0x19   :  { %1332 = vmatpush3.bf16.msra.mxu1 %v1468_v26  ;;  %v268_v26 = vcombine.high %v252_v20, %v252_v20  ;;  %v1525_v39 = vld [vmem:[%s1902_s1 + $0x2d8] sm:$0xff]   ;;  %v1531_v45 = vld [vmem:[%s1902_s1 + $0x268] sm:$0xff]   ;;  %v1530_v46 = vld [vmem:[%s1902_s1 + $0x2a0] sm:$0xff]  }
  0x1a   :  { %1333 = vmatprep.subr.bf16.mxu1 %v1471_v31  ;;  %v1516_v31 = vld [vmem:[%s1902_s1 + $0x208] sm:$0xff]   ;;  %v1524_v40 = vld [vmem:[%s1902_s1 + $0x218] sm:$0xff]   ;;  %v1537_v51 = vld [vmem:[%s1902_s1 + $0x2f0] sm:$0xff]  }
  0x1b   :  { %1312 = vmatpush3.bf16.msra.mxu0 %v1470_v28  ;;  %v1514_v28 = vld [vmem:[%s1902_s1 + $0x280] sm:$0xff]   ;;  %v1526_v42 = vld [vmem:[%s1902_s1 + $0x298] sm:$0xff]   ;;  %v1532_v48 = vld [vmem:[%s1902_s1 + $0x228] sm:$0xff]  }
  0x1c   :  { %1313 = vmatprep.subr.bf16.mxu0 %v1473_v33  ;;  %v1518_v33 = vld [vmem:[%s1902_s1 + $0x288] sm:$0xff]  }
  0x1d   :  { %1334 = vmatpush3.bf16.msra.mxu1 %v1472_v32  ;;  %v1519_v32 = vld [vmem:[%s1902_s1 + $0x250] sm:$0xff]  }
  0x1e   :  { %1335 = vmatprep.subr.bf16.mxu1 %v1475_v36  ;;  %v1520_v36 = vld [vmem:[%s1902_s1 + $0x210] sm:$0xff]  }
  0x1f   :  { %1314 = vmatpush3.bf16.msra.mxu0 %v1474_v34  ;;  %v1521_v34 = vld [vmem:[%s1902_s1 + $0x2d0] sm:$0xff]  }
  0x20   :  { %1343 = vmatprep.subr.bf16.mxu0 %v1479_v41  ;;  %v1527_v41 = vld [vmem:[%s1902_s1 + $0x260] sm:$0xff]  }
  0x21   :  { %1336 = vmatpush3.bf16.msra.mxu1 %v1476_v37  ;;  %v1523_v37 = vld [vmem:[%s1902_s1 + $0x258] sm:$0xff]  }
  0x22   :  { %1365 = vmatprep.subr.bf16.mxu1 %v1481_v44  ;;  %947 = vmatmul.mubr.bf16.vlgmr.msra.gmra.mrb[0].mxu0 %v245_v43  ;;  %v1529_v43 = vld [vmem:[%s1902_s1 + $0x2e0] sm:$0xff]  }
  0x23   :  { %1344 = vmatpush3.bf16.msra.mxu0 %v1480_v47  ;;  %1026 = vmatprep.mubr.bf16.mxu0 %v266_v53  ;;  %v1528_v44 = vld [vmem:[%s1902_s1 + $0x220] sm:$0xff]   ;;  %v1533_v47 = vld [vmem:[%s1902_s1 + $0x2e8] sm:$0xff]   ;;  %v1539_v53 = vld [vmem:[%s1902_s1 + $0x278] sm:$0xff]  }
  0x24   :  { %987 = vmatmul.mubr.bf16.vlgmr.msra.gmra.mrb[0].mxu1 %v267_v49  ;;  %1345 = vmatprep.subr.bf16.mxu0 %v1483_v50  ;;  %v1535_v49 = vld [vmem:[%s1902_s1 + $0x270] sm:$0xff]   ;;  %v1534_v50 = vld [vmem:[%s1902_s1 + $0x2a8] sm:$0xff]  }
  0x25   :  { %1366 = vmatpush3.bf16.msra.mxu1 %v1482_v52  ;;  %1066 = vmatprep.mubr.bf16.mxu1 %v270_v56  ;;  %v1536_v52 = vld [vmem:[%s1902_s1 + $0x230] sm:$0xff]   ;;  %v1540_v56 = vld [vmem:[%s1902_s1 + $0x238] sm:$0xff]  }
  0x26   :  { %1367 = vmatprep.subr.bf16.mxu1 %v1485_v54  ;;  %v1538_v54 = vld [vmem:[%s1902_s1 + $0x2b0] sm:$0xff]  }
  0x27   :  { %1346 = vmatpush3.bf16.msra.mxu0 %v1484_v55  ;;  %v1541_v55 = vld [vmem:[%s1902_s1 + $0x2f8] sm:$0xff]  }
  0x28   :  { %1347 = vmatprep.subr.bf16.mxu0 %v1487_v57  ;;  %v293_v57 = vrot.slane %v1760_v12, %v1658_v35 }
  0x29   :  { %1368 = vmatpush3.bf16.msra.mxu1 %v1486_v58  ;;  %v1542_v58 = vld [vmem:[%s1902_s1 + $0x2b8] sm:$0xff]  }
  0x2a   :  { %1369 = vmatprep.subr.bf16.mxu1 %v1489_v59  ;;  %v271_v59 = vcombine.high %v1738_v5, %v1738_v5 }
  0x2b   :  { %1348 = vmatpush3.bf16.msra.mxu0 %v1488_v60  ;;  %v1543_v60 = vld [vmem:[%s1902_s1 + $0x300] sm:$0xff]  }
  0x2c   :  { %1349 = vmatprep.subr.bf16.mxu0 %v1491_v61  ;;  %v1546_v61 = vmov 0.0  }
  0x2d   :  { %1370 = vmatpush3.bf16.msra.mxu1 %v1490_v62  ;;  %v308_v62 = vcombine.high %v293_v57, %v293_v57 }
  0x2e   :  { %1371 = vmatprep.subr.bf16.mxu1 %v1493_v63  ;;  %v285_v63 = vrot.slane %v271_v59, %v1658_v35 }
  0x2f   :  { %1350 = vmatpush3.bf16.msra.mxu0 %v1492_v0  ;;  %v1544_v0 = vld [vmem:[%s1902_s1 + $0x308] sm:$0xff]  }
  0x30   :  { %1351 = vmatprep.subr.bf16.mxu0 %v1495_v1  ;;  %v300_v1 = vrot.slane %v285_v63, %v1658_v35 }
  0x31   :  { %1372 = vmatpush3.bf16.msra.mxu1 %v1494_v2 }
  0x32   :  { %1373 = vmatprep.subr.bf16.mxu1 %v1497_v3  ;;  %v1199_v3 = vld [vmem:[%s1904_s2] ss:$0 sm:$0xff] }
  0x33   :  { %1352 = vmatpush3.bf16.msra.mxu0 %v1496_v4 }
  0x34   :  { %1353 = vmatprep.subr.bf16.mxu0 %v1499_v6 }
  0x35   :  { %1374 = vmatpush3.bf16.msra.mxu1 %v1498_v7 }
  0x36   :  { %1375 = vmatprep.subr.bf16.mxu1 %v1501_v8 }
  0x37   :  { %1354 = vmatpush3.bf16.msra.mxu0 %v1500_v9 }
  0x38   :  { %1355 = vmatprep.subr.bf16.mxu0 %v1503_v10 }
  0x39   :  { %1376 = vmatpush3.bf16.msra.mxu1 %v1502_v11 }
  0x3a   :  { %1377 = vmatprep.subr.bf16.mxu1 %v1505_v13 }
  0x3b   :  { %1356 = vmatpush3.bf16.msra.mxu0 %v1504_v14 }
  0x3c   :  { %1357 = vmatprep.subr.bf16.mxu0 %v1507_v15 }
  0x3d   :  { %1378 = vmatpush3.bf16.msra.mxu1 %v1506_v16 }
  0x3e   :  { %1379 = vmatprep.subr.bf16.mxu1 %v1509_v18 }
  0x3f   :  { %1358 = vmatpush3.bf16.msra.mxu0 %v1508_v19 }
  0x40   :  { %1387 = vmatprep.subr.bf16.mxu0 %v1511_v21 }
  0x41   :  { %1380 = vmatpush3.bf16.msra.mxu1 %v1510_v22 }
  0x42   :  { %1027 = vmatmul.mubr.bf16.vlgmr.msra.gmra.mrb[4].mxu0 %v252_v20  ;;  %1409 = vmatprep.subr.bf16.mxu1 %v1513_v24 }
  0x43   :  { %1388 = vmatpush3.bf16.msra.mxu0 %v1512_v25  ;;  %1106 = vmatprep.mubr.bf16.mxu0 %v307_v23 }
  0x44   :  { %1067 = vmatmul.mubr.bf16.vlgmr.msra.gmra.mrb[4].mxu1 %v268_v26  ;;  %1389 = vmatprep.subr.bf16.mxu0 %v1515_v27 }
  0x45   :  { %1410 = vmatpush3.bf16.msra.mxu1 %v1514_v28  ;;  %1146 = vmatprep.mubr.bf16.mxu1 %v309_v29 }
  0x46   :  { %1411 = vmatprep.subr.bf16.mxu1 %v1517_v30 }
  0x47   :  { %1390 = vmatpush3.bf16.msra.mxu0 %v1516_v31 }
  0x48   :  { %1391 = vmatprep.subr.bf16.mxu0 %v1519_v32 }
  0x49   :  { %1412 = vmatpush3.bf16.msra.mxu1 %v1518_v33 }
  0x4a   :  { %1413 = vmatprep.subr.bf16.mxu1 %v1521_v34 }
  0x4b   :  { %1392 = vmatpush3.bf16.msra.mxu0 %v1520_v36 }
  0x4c   :  { %1393 = vmatprep.subr.bf16.mxu0 %v1523_v37 }
  0x4d   :  { %1414 = vmatpush3.bf16.msra.mxu1 %v1522_v38 }
  0x4e   :  { %1415 = vmatprep.subr.bf16.mxu1 %v1525_v39 }
  0x4f   :  { %1394 = vmatpush3.bf16.msra.mxu0 %v1524_v40 }
  0x50   :  { %1395 = vmatprep.subr.bf16.mxu0 %v1527_v41 }
  0x51   :  { %1416 = vmatpush3.bf16.msra.mxu1 %v1526_v42 }
  0x52   :  { %1417 = vmatprep.subr.bf16.mxu1 %v1529_v43 }
  0x53   :  { %1396 = vmatpush3.bf16.msra.mxu0 %v1528_v44 }
  0x54   :  { %1397 = vmatprep.subr.bf16.mxu0 %v1531_v45 }
  0x55   :  { %1418 = vmatpush3.bf16.msra.mxu1 %v1530_v46 }
  0x56   :  { %1419 = vmatprep.subr.bf16.mxu1 %v1533_v47 }
  0x57   :  { %1398 = vmatpush3.bf16.msra.mxu0 %v1532_v48 }
  0x58   :  { %1399 = vmatprep.subr.bf16.mxu0 %v1535_v49 }
  0x59   :  { %1420 = vmatpush3.bf16.msra.mxu1 %v1534_v50 }
  0x5a   :  { %1421 = vmatprep.subr.bf16.mxu1 %v1537_v51 }
  0x5b   :  { %1400 = vmatpush3.bf16.msra.mxu0 %v1536_v52 }
  0x5c   :  { %1401 = vmatprep.subr.bf16.mxu0 %v1539_v53 }
  0x5d   :  { %1422 = vmatpush3.bf16.msra.mxu1 %v1538_v54 }
  0x5e   :  { %1423 = vmatprep.subr.bf16.mxu1 %v1541_v55 }
  0x5f   :  { %1402 = vmatpush3.bf16.msra.mxu0 %v1540_v56 }
  0x60   :  { %1434 = vmatprep.subr.bf16.mxu0 %v1546_v61 }
  0x61   :  { %1424 = vmatpush3.bf16.msra.mxu1 %v1542_v58 }
  0x62   :  { %1107 = vmatmul.mubr.bf16.vlgmr.msra.gmra.mrb[8].mxu0 %v293_v57 }
  0x63   :  { %1435 = vmatpush3.bf16.msra.mxu0 %v1543_v60  ;;  %1438 = vmatprep.mubr.msk.bf16.mxu0 %vm1547_vm0, %v1546_v61 }
  0x64   :  { %1147 = vmatmul.mubr.bf16.vlgmr.msra.gmra.mrb[8].mxu1 %v308_v62  ;;  %1436 = vmatprep.subr.bf16.mxu0 %v1546_v61 }
  0x67   :  { %1437 = vmatpush3.bf16.msra.mxu0 %v1544_v0 }
  0x6a   :  { %1439 = vmatmul.mubr.msk.bf16.vlgmr.msra.gmra.mrb[12].mxu0 %vm910_vm1, %v300_v1 }
  0xf5   :  { %v1315_v2 = vpop.f32.mrb[0].mxu0 }
  0xf6   :  { %v1316_v4 = vpop.f32.mrb[1].mxu0 }
  0xf7   :  { %v1317_v5 = vadd.f32 %v1316_v4, %v1315_v2  ;;  %v1318_v6 = vpop.f32.mrb[2].mxu0  ;;  %v1337_v7 = vpop.f32.mrb[0].mxu1 }
  0xf8   :  { %v1319_v8 = vpop.f32.mrb[3].mxu0  ;;  %v1338_v9 = vpop.f32.mrb[1].mxu1 }
  0xf9   :  { %v949_v10 = vadd.f32 %v1317_v5, %v1199_v3  ;;  %v1339_v11 = vadd.f32 %v1338_v9, %v1337_v7  ;;  %v1340_v12 = vpop.f32.mrb[2].mxu1 }
  0xfa   :  { %v1341_v13 = vpop.f32.mrb[3].mxu1 }
  0xfb   :  { %v989_v14 = vadd.f32 %v1339_v11, %v949_v10 }
 0x115   :  { %v1359_v35 = vpop.f32.mrb[4].mxu0 }
 0x116   :  { %v1360_v15 = vpop.f32.mrb[5].mxu0 }
 0x117   :  { %v1361_v16 = vadd.f32 %v1360_v15, %v1359_v35  ;;  %v1362_v17 = vpop.f32.mrb[6].mxu0  ;;  %v1381_v18 = vpop.f32.mrb[4].mxu1 }
 0x118   :  { %v1363_v19 = vpop.f32.mrb[7].mxu0  ;;  %v1382_v20 = vpop.f32.mrb[5].mxu1 }
 0x119   :  { %v1029_v21 = vadd.f32 %v1361_v16, %v989_v14  ;;  %v1383_v22 = vadd.f32 %v1382_v20, %v1381_v18  ;;  %v1384_v23 = vpop.f32.mrb[6].mxu1 }
 0x11a   :  { %v1385_v24 = vpop.f32.mrb[7].mxu1 }
 0x11b   :  { %v1069_v25 = vadd.f32 %v1383_v22, %v1029_v21 }
 0x135   :  { %v1403_v26 = vpop.f32.mrb[8].mxu0 }
 0x136   :  { %v1404_v27 = vpop.f32.mrb[9].mxu0 }
 0x137   :  { %v1405_v28 = vadd.f32 %v1404_v27, %v1403_v26  ;;  %v1425_v29 = vpop.f32.mrb[8].mxu1  ;;  %v1406_v30 = vpop.f32.mrb[10].mxu0 }
 0x138   :  { %v1426_v31 = vpop.f32.mrb[9].mxu1  ;;  %v1407_v32 = vpop.f32.mrb[11].mxu0 }
 0x139   :  { %v1109_v33 = vadd.f32 %v1405_v28, %v1069_v25  ;;  %v1427_v34 = vadd.f32 %v1426_v31, %v1425_v29  ;;  %v1428_v36 = vpop.f32.mrb[10].mxu1 }
 0x13a   :  { %v1429_v37 = vpop.f32.mrb[11].mxu1 }
 0x13b   :  { %v1149_v38 = vadd.f32 %v1427_v34, %v1109_v33 }
 0x13d   :  { %v1188_v39 = vpop.f32.mrb[12].mxu0 }
 0x13e   :  { %v1189_v40 = vadd.f32 %v1188_v39, %v1149_v38  ;;  %v1440_v41 = vpop.f32.mrb[13].mxu0 }
 0x13f   :  { %v1191_v42 = vpop.f32.mrb[14].mxu0 }
 0x140   :  { %1194 = vst [vmem:[%s1905_s3] sm:$0x3] %v1189_v40  ;;  %v1441_v43 = vpop.f32.mrb[15].mxu0 }

// kernel: tile.23
= control target key start
LH: loop header
LB: loop body
LE: loop exit
PB: predicated region body
PF: predicated region fallthrough
CT: control target
= control target key end

     0   :  { %s22_s0 = inlined_call_operand.vmem [shape: f32[16], index: 0, kind: input, shape index: {}]   ;;  %s23_s1 = inlined_call_operand.vmem [shape: f32[4,16], index: 1, kind: output, shape index: {}]  }
   0x1   :  { %v4_v0 = vld [vmem:[%s22_s0] ss:$0 sm:$0xff] }
   0x2   :  { %5 = vst [vmem:[%s23_s1] sm:$0xf] %v4_v0 }

// kernel: tile.24
= control target key start
LH: loop header
LB: loop body
LE: loop exit
PB: predicated region body
PF: predicated region fallthrough
CT: control target
= control target key end

     0   :  { %vm7_vm0 = vcmask 130048   ;;  %s37_s8 = smov 16   ;;  %s38_s9 = smov 32   ;;  %vm13_vm1 = vcmask 523648   ;;  %vm19_vm2 = vcmask 392448   ;;  %vm25_vm3 = vcmask 261248   ;;  %s55_s0 = inlined_call_operand.vmem [shape: f32[4,16], index: 0, kind: input, shape index: {}]   ;;  %s56_s1 = inlined_call_operand.vmem [shape: f32[1,64], index: 1, kind: output, shape index: {}]  }
   0x1   :  { %v4_v0 = vld [vmem:[%s55_s0] sm:$0xf]  ;;  %s36_s0 = smov 48  }
   0x2   :  { %5 = vst [vmem:[#allocation1] sm:$0xf] %v4_v0 }
   0x9   :  { %v10_v1 = vld [vmem:[#allocation1 + $0x3] sm:$0x1]   ;;  %v22_v2 = vld [vmem:[#allocation1 + $0x1] sm:$0x1]   ;;  %v6_v3 = vld [vmem:[#allocation1] sm:$0x1]  }
   0xa   :  { %11 = vrot.lane.b32.xlu0 %v10_v1, %s36_s0  ;;  %23 = vrot.lane.b32.xlu1 %v22_v2, %s37_s8  ;;  %v16_v4 = vld [vmem:[#allocation1 + $0x2] sm:$0x1]   ;;  %8 = vst.msk [vmem:[#allocation0] sm:$0x1] %vm7_vm0, %v6_v3  }
   0xe   :  { %17 = vrot.lane.b32.xlu0 %v16_v4, %s38_s9 }
  0x7c   :  { %v12_v5 = vpop.permute.xlu0 %11   ;;  %v24_v6 = vpop.permute.xlu1 %23  }
  0x7d   :  { %14 = vst.msk [vmem:[#allocation0] sm:$0x1] %vm13_vm1, %v12_v5  }
  0x80   :  { %v18_v7 = vpop.permute.xlu0 %17  }
  0x81   :  { %20 = vst.msk [vmem:[#allocation0] sm:$0x1] %vm19_vm2, %v18_v7  }
  0x82   :  { %26 = vst.msk [vmem:[#allocation0] sm:$0x1] %vm25_vm3, %v24_v6  }
  0x89   :  { %v30_v8 = vld [vmem:[#allocation0] sm:$0x1] }
  0x8a   :  { %32 = vst [vmem:[%s56_s1] sm:$0x1] %v30_v8 }

// kernel: cluster_autoencoder_forward.11
= control target key start
LH: loop header
LB: loop body
LE: loop exit
PB: predicated region body
PF: predicated region fallthrough
CT: control target
= control target key end

     0   :  { %v948_v1 = vmov 0   ;;  %vm405_vm0 = vcmask 523264   ;;  %v949_v51 = vmov 0.0   ;;  %vm950_vm1 = vmmov 0   ;;  %s1206_s1 = inlined_call_operand.vmem [shape: bf16[64,1664], index: 1, kind: input, shape index: {}]   ;;  %s1207_s0 = inlined_call_operand.vmem [shape: bf16[2,64], index: 0, kind: input, shape index: {}]   ;;  %s1208_s2 = inlined_call_operand.vmem [shape: f32[1,1664], index: 2, kind: input, shape index: {}]   ;;  %s1209_s3 = inlined_call_operand.vmem [shape: f32[2,1664], index: 3, kind: output, shape index: {}]  }
   0x1   :  { %v872_v0 = vld [vmem:[%s1206_s1 + $0x4] ss:$52 sps:$4 sm:$0xff]   ;;  %441 = vmatprep.mubr.bf16.mxu0 %v948_v1  ;;  %482 = vmatprep.mubr.bf16.mxu1 %v948_v1  ;;  %v874_v2 = vld [vmem:[%s1206_s1 + $0xc] ss:$52 sps:$4 sm:$0xff]   ;;  %v877_v4 = vld [vmem:[%s1206_s1 + $0x8] ss:$52 sps:$4 sm:$0xff]   ;;  %v76_v55 = vlaneseq }
   0x2   :  { %409 = vmatprep.subr.bf16.mxu0 %v872_v0  ;;  %v876_v3 = vld [vmem:[%s1206_s1] ss:$52 sps:$4 sm:$0xff]   ;;  %450 = vmatprep.subr.bf16.mxu1 %v874_v2  ;;  %v882_v7 = vld [vmem:[%s1206_s1 + $0x68] ss:$52 sps:$4 sm:$0xff]   ;;  %v883_v8 = vld [vmem:[%s1206_s1 + $0x70] ss:$52 sps:$4 sm:$0xff]  }
   0x3   :  { %v878_v5 = vld [vmem:[%s1206_s1 + $0x6c] ss:$52 sps:$4 sm:$0xff]   ;;  %410 = vmatpush1.bf16.msra.mxu0 %v876_v3  ;;  %451 = vmatpush1.bf16.msra.mxu1 %v877_v4  ;;  %v880_v6 = vld [vmem:[%s1206_s1 + $0x74] ss:$52 sps:$4 sm:$0xff]   ;;  %v886_v10 = vld [vmem:[%s1206_s1 + $0xdc] ss:$52 sps:$4 sm:$0xff]  }
   0x4   :  { %411 = vmatprep.subr.bf16.mxu0 %v878_v5  ;;  %452 = vmatprep.subr.bf16.mxu1 %v880_v6  ;;  %v884_v9 = vld [vmem:[%s1206_s1 + $0xd4] ss:$52 sps:$4 sm:$0xff]   ;;  %v888_v11 = vld [vmem:[%s1206_s1 + $0xd0] ss:$52 sps:$4 sm:$0xff]   ;;  %v889_v12 = vld [vmem:[%s1206_s1 + $0xd8] ss:$52 sps:$4 sm:$0xff]  }
   0x5   :  { %v890_v13 = vld [vmem:[%s1206_s1 + $0x13c] ss:$52 sps:$4 sm:$0xff]   ;;  %v892_v14 = vld [vmem:[%s1206_s1 + $0x144] ss:$52 sps:$4 sm:$0xff]   ;;  %v895_v16 = vld [vmem:[%s1206_s1 + $0x140] ss:$52 sps:$4 sm:$0xff]  }
   0x6   :  { %v894_v15 = vld [vmem:[%s1206_s1 + $0x138] ss:$52 sps:$4 sm:$0xff]   ;;  %v898_v17 = vld [vmem:[%s1206_s1 + $0x14] ss:$52 sps:$4 sm:$0xff]   ;;  %v901_v18 = vld [vmem:[%s1206_s1 + $0x1c] ss:$52 sps:$4 sm:$0xff]  }
   0x7   :  { %412 = vmatpush1.bf16.msra.mxu0 %v882_v7  ;;  %453 = vmatpush1.bf16.msra.mxu1 %v883_v8  ;;  %v1031_v19 = vld [vmem:[%s1207_s0] sm:$0x1]  ;;  %v896_v20 = vld [vmem:[%s1206_s1 + $0x10] ss:$52 sps:$4 sm:$0xff]   ;;  %v899_v21 = vld [vmem:[%s1206_s1 + $0x18] ss:$52 sps:$4 sm:$0xff]  }
   0x8   :  { %413 = vmatprep.subr.bf16.mxu0 %v884_v9  ;;  %454 = vmatprep.subr.bf16.mxu1 %v886_v10  ;;  %v904_v22 = vld [vmem:[%s1206_s1 + $0x7c] ss:$52 sps:$4 sm:$0xff]   ;;  %v907_v23 = vld [vmem:[%s1206_s1 + $0x84] ss:$52 sps:$4 sm:$0xff]   ;;  %v905_v25 = vld [vmem:[%s1206_s1 + $0x80] ss:$52 sps:$4 sm:$0xff]  }
   0x9   :  { %v902_v24 = vld [vmem:[%s1206_s1 + $0x78] ss:$52 sps:$4 sm:$0xff]   ;;  %v908_v28 = vld [vmem:[%s1206_s1 + $0xe0] ss:$52 sps:$4 sm:$0xff]   ;;  %v911_v29 = vld [vmem:[%s1206_s1 + $0xe8] ss:$52 sps:$4 sm:$0xff]  }
   0xa   :  { %v910_v26 = vld [vmem:[%s1206_s1 + $0xe4] ss:$52 sps:$4 sm:$0xff]   ;;  %v913_v27 = vld [vmem:[%s1206_s1 + $0xec] ss:$52 sps:$4 sm:$0xff]   ;;  %v919_v31 = vld [vmem:[%s1206_s1 + $0x154] ss:$52 sps:$4 sm:$0xff]  }
   0xb   :  { %414 = vmatpush1.bf16.msra.mxu0 %v888_v11  ;;  %455 = vmatpush1.bf16.msra.mxu1 %v889_v12  ;;  %v916_v30 = vld [vmem:[%s1206_s1 + $0x14c] ss:$52 sps:$4 sm:$0xff]   ;;  %v914_v32 = vld [vmem:[%s1206_s1 + $0x148] ss:$52 sps:$4 sm:$0xff]   ;;  %v917_v33 = vld [vmem:[%s1206_s1 + $0x150] ss:$52 sps:$4 sm:$0xff]  }
   0xc   :  { %415 = vmatprep.subr.bf16.mxu0 %v890_v13  ;;  %456 = vmatprep.subr.bf16.mxu1 %v892_v14  ;;  %v922_v34 = vld [vmem:[%s1206_s1 + $0x24] ss:$52 sps:$4 sm:$0xff]   ;;  %v925_v35 = vld [vmem:[%s1206_s1 + $0x2c] ss:$52 sps:$4 sm:$0xff]   ;;  %v923_v37 = vld [vmem:[%s1206_s1 + $0x28] ss:$52 sps:$4 sm:$0xff]  }
   0xd   :  { %v920_v36 = vld [vmem:[%s1206_s1 + $0x20] ss:$52 sps:$4 sm:$0xff]   ;;  %v926_v40 = vld [vmem:[%s1206_s1 + $0x88] ss:$52 sps:$4 sm:$0xff]   ;;  %v929_v41 = vld [vmem:[%s1206_s1 + $0x90] ss:$52 sps:$4 sm:$0xff]  }
   0xe   :  { %v928_v38 = vld [vmem:[%s1206_s1 + $0x8c] ss:$52 sps:$4 sm:$0xff]   ;;  %v931_v39 = vld [vmem:[%s1206_s1 + $0x94] ss:$52 sps:$4 sm:$0xff]   ;;  %v937_v43 = vld [vmem:[%s1206_s1 + $0xfc] ss:$52 sps:$4 sm:$0xff]  }
   0xf   :  { %416 = vmatpush1.bf16.msra.mxu0 %v894_v15  ;;  %457 = vmatpush1.bf16.msra.mxu1 %v895_v16  ;;  %v934_v42 = vld [vmem:[%s1206_s1 + $0xf4] ss:$52 sps:$4 sm:$0xff]   ;;  %v932_v44 = vld [vmem:[%s1206_s1 + $0xf0] ss:$52 sps:$4 sm:$0xff]   ;;  %v935_v45 = vld [vmem:[%s1206_s1 + $0xf8] ss:$52 sps:$4 sm:$0xff]  }
  0x10   :  { %491 = vmatprep.subr.bf16.mxu0 %v898_v17  ;;  %532 = vmatprep.subr.bf16.mxu1 %v901_v18  ;;  %v940_v46 = vld [vmem:[%s1206_s1 + $0x15c] ss:$52 sps:$4 sm:$0xff]   ;;  %v943_v47 = vld [vmem:[%s1206_s1 + $0x164] ss:$52 sps:$4 sm:$0xff]   ;;  %v941_v49 = vld [vmem:[%s1206_s1 + $0x160] ss:$52 sps:$4 sm:$0xff]  }
  0x11   :  { %v938_v48 = vld [vmem:[%s1206_s1 + $0x158] ss:$52 sps:$4 sm:$0xff]   ;;  %v944_v50 = vld [vmem:[%s1206_s1 + $0x30] ss:$52 sps:$4 sm:$0xff]   ;;  %v946_v53 = vld [vmem:[%s1206_s1 + $0x100] ss:$52 sps:$4 sm:$0xff]  }
  0x12   :  { %843 = vmatmul.mubr.msk.bf16.vlgmr.msra.gmra.mrb[0].mxu0 %vm405_vm0, %v1031_v19  ;;  %844 = vmatmul.mubr.msk.bf16.vlgmr.msra.gmra.mrb[0].mxu1 %vm405_vm0, %v1031_v19  ;;  %v945_v52 = vld [vmem:[%s1206_s1 + $0x98] ss:$52 sps:$4 sm:$0xff]   ;;  %v947_v54 = vld [vmem:[%s1206_s1 + $0x168] ss:$52 sps:$4 sm:$0xff]   ;;  %v1153_v56 = vshrl.u32 %v76_v55, 7  ;;  %v72_v59 = vld [vmem:[%s1208_s2] sm:$0xff] }
  0x13   :  { %492 = vmatpush1.bf16.msra.mxu0 %v896_v20  ;;  %533 = vmatpush1.bf16.msra.mxu1 %v899_v21  ;;  %v951_v62 = vmov 1983009808  }
  0x14   :  { %493 = vmatprep.subr.bf16.mxu0 %v904_v22  ;;  %534 = vmatprep.subr.bf16.mxu1 %v907_v23  ;;  %v78_v57 = vsub.s32 0, %v1153_v56  ;;  %v86_v58 = vsub.s32 2, %v1153_v56  ;;  %v82_v60 = vsub.s32 1, %v1153_v56  ;;  %v90_v61 = vsub.s32 3, %v1153_v56 }
  0x15   :  { %523 = vmatprep.mubr.bf16.mxu0 %v948_v1  ;;  %564 = vmatprep.mubr.bf16.mxu1 %v948_v1  ;;  %v724_v63 = vunpack.c.l.s4 %v951_v62 }
  0x16   :  { %v79_v0 = vrot.slane %v72_v59, %v78_v57  ;;  %v83_v2 = vrot.slane %v72_v59, %v82_v60  ;;  %v91_v3 = vrot.slane %v72_v59, %v90_v61 }
  0x17   :  { %494 = vmatpush1.bf16.msra.mxu0 %v902_v24  ;;  %535 = vmatpush1.bf16.msra.mxu1 %v905_v25  ;;  %v725_v6 = vunpack.c.0.s8 %v724_v63 }
  0x18   :  { %495 = vmatprep.subr.bf16.mxu0 %v910_v26  ;;  %536 = vmatprep.subr.bf16.mxu1 %v913_v27  ;;  %v94_v26 = vsub.s32 4, %v1153_v56  ;;  %v102_v27 = vsub.s32 6, %v1153_v56 }
  0x19   :  { %v1171_v20 = vsub.s32 %v725_v6, %v1153_v56 }
  0x1b   :  { %496 = vmatpush1.bf16.msra.mxu0 %v908_v28  ;;  %537 = vmatpush1.bf16.msra.mxu1 %v911_v29  ;;  %v98_v29 = vsub.s32 5, %v1153_v56 }
  0x1c   :  { %497 = vmatprep.subr.bf16.mxu0 %v916_v30  ;;  %538 = vmatprep.subr.bf16.mxu1 %v919_v31  ;;  %v106_v30 = vsub.s32 7, %v1153_v56  ;;  %v95_v31 = vrot.slane %v72_v59, %v94_v26 }
  0x1f   :  { %498 = vmatpush1.bf16.msra.mxu0 %v914_v32  ;;  %539 = vmatpush1.bf16.msra.mxu1 %v917_v33  ;;  %v103_v32 = vrot.slane %v72_v59, %v102_v27  ;;  %v99_v33 = vrot.slane %v72_v59, %v98_v29 }
  0x20   :  { %573 = vmatprep.subr.bf16.mxu0 %v922_v34  ;;  %614 = vmatprep.subr.bf16.mxu1 %v925_v35  ;;  %v107_v34 = vrot.slane %v72_v59, %v106_v30 }
  0x22   :  { %845 = vmatmul.mubr.msk.bf16.vlgmr.msra.gmra.mrb[4].mxu0 %vm405_vm0, %v1031_v19  ;;  %846 = vmatmul.mubr.msk.bf16.vlgmr.msra.gmra.mrb[4].mxu1 %vm405_vm0, %v1031_v19 }
  0x23   :  { %574 = vmatpush1.bf16.msra.mxu0 %v920_v36  ;;  %615 = vmatpush1.bf16.msra.mxu1 %v923_v37 }
  0x24   :  { %575 = vmatprep.subr.bf16.mxu0 %v928_v38  ;;  %616 = vmatprep.subr.bf16.mxu1 %v931_v39 }
  0x25   :  { %605 = vmatprep.mubr.bf16.mxu0 %v948_v1  ;;  %646 = vmatprep.mubr.bf16.mxu1 %v948_v1  ;;  %v87_v1 = vrot.slane %v72_v59, %v86_v58  ;;  %v73_v59 = vld [vmem:[%s1208_s2 + $0x8] sm:$0x1f] }
  0x26   :  { %v111_v62 = vrot.slane %v73_v59, %v78_v57  ;;  %v119_v63 = vrot.slane %v73_v59, %v86_v58 }
  0x27   :  { %576 = vmatpush1.bf16.msra.mxu0 %v926_v40  ;;  %617 = vmatpush1.bf16.msra.mxu1 %v929_v41 }
  0x28   :  { %577 = vmatprep.subr.bf16.mxu0 %v934_v42  ;;  %618 = vmatprep.subr.bf16.mxu1 %v937_v43 }
  0x2b   :  { %578 = vmatpush1.bf16.msra.mxu0 %v932_v44  ;;  %619 = vmatpush1.bf16.msra.mxu1 %v935_v45 }
  0x2c   :  { %579 = vmatprep.subr.bf16.mxu0 %v940_v46  ;;  %620 = vmatprep.subr.bf16.mxu1 %v943_v47 }
  0x2f   :  { %580 = vmatpush1.bf16.msra.mxu0 %v938_v48  ;;  %621 = vmatpush1.bf16.msra.mxu1 %v941_v49 }
  0x30   :  { %856 = vmatprep.subr.bf16.mxu0 %v949_v51 }
  0x32   :  { %847 = vmatmul.mubr.msk.bf16.vlgmr.msra.gmra.mrb[8].mxu0 %vm405_vm0, %v1031_v19  ;;  %848 = vmatmul.mubr.msk.bf16.vlgmr.msra.gmra.mrb[8].mxu1 %vm405_vm0, %v1031_v19 }
  0x33   :  { %857 = vmatpush3.bf16.msra.mxu0 %v944_v50  ;;  %864 = vmatprep.mubr.msk.bf16.mxu0 %vm950_vm1, %v949_v51 }
  0x34   :  { %858 = vmatprep.subr.bf16.mxu0 %v949_v51 }
  0x37   :  { %859 = vmatpush3.bf16.msra.mxu0 %v945_v52 }
  0x38   :  { %860 = vmatprep.subr.bf16.mxu0 %v949_v51 }
  0x3b   :  { %861 = vmatpush3.bf16.msra.mxu0 %v946_v53 }
  0x3c   :  { %862 = vmatprep.subr.bf16.mxu0 %v949_v51 }
  0x3f   :  { %863 = vmatpush3.bf16.msra.mxu0 %v947_v54 }
  0x42   :  { %865 = vmatmul.mubr.msk.bf16.vlgmr.msra.gmra.mrb[12].mxu0 %vm405_vm0, %v1031_v19 }
  0xe5   :  { %v443_v4 = vpop.f32.mrb[0].mxu0  ;;  %v484_v5 = vpop.f32.mrb[0].mxu1 }
  0xe6   :  { %v444_v7 = vadd.f32 %v443_v4, %v79_v0  ;;  %v485_v8 = vadd.f32 %v484_v5, %v87_v1  ;;  %v445_v9 = vpop.f32.mrb[1].mxu0  ;;  %v486_v10 = vpop.f32.mrb[1].mxu1  ;;  %v115_v0 = vrot.slane %v73_v59, %v82_v60  ;;  %v123_v1 = vrot.slane %v73_v59, %v90_v61 }
  0xe7   :  { %v446_v11 = vadd.f32 %v445_v9, %v83_v2  ;;  %v487_v12 = vadd.f32 %v486_v10, %v91_v3  ;;  %v447_v13 = vpop.f32.mrb[2].mxu0  ;;  %v488_v14 = vpop.f32.mrb[2].mxu1 }
  0xe8   :  { %v695_v15 = vmax.f32 %v444_v7, 0.0  ;;  %v697_v16 = vmax.f32 %v485_v8, 0.0  ;;  %v448_v17 = vpop.f32.mrb[3].mxu0  ;;  %v489_v18 = vpop.f32.mrb[3].mxu1 }
  0xe9   :  { %v696_v19 = vmax.f32 %v446_v11, 0.0  ;;  %v698_v21 = vmax.f32 %v487_v12, 0.0  ;;  %v127_v18 = vrot.slane %v73_v59, %v94_v26 }
  0xeb   :  { %v721_v22 = vcombine.low %v695_v15, %v696_v19  ;;  %v722_v23 = vcombine.low %v697_v16, %v698_v21 }
  0xed   :  { %v729_v24 = vrot.slane %v721_v22, %v1171_v20  ;;  %v736_v25 = vrot.slane %v722_v23, %v1171_v20 }
  0xef   :  { %v737_v28 = vcombine.low %v729_v24, %v736_v25 }
  0xf1   :  { %783 = vst [vmem:[%s1209_s3] sm:$0xff] %v737_v28 }
  0xf5   :  { %v525_v35 = vpop.f32.mrb[4].mxu0  ;;  %v566_v36 = vpop.f32.mrb[4].mxu1 }
  0xf6   :  { %v526_v37 = vadd.f32 %v525_v35, %v95_v31  ;;  %v567_v38 = vadd.f32 %v566_v36, %v103_v32  ;;  %v527_v39 = vpop.f32.mrb[5].mxu0  ;;  %v568_v40 = vpop.f32.mrb[5].mxu1 }
  0xf7   :  { %v528_v41 = vadd.f32 %v527_v39, %v99_v33  ;;  %v569_v42 = vadd.f32 %v568_v40, %v107_v34  ;;  %v529_v43 = vpop.f32.mrb[6].mxu0  ;;  %v570_v44 = vpop.f32.mrb[6].mxu1 }
  0xf8   :  { %v699_v45 = vmax.f32 %v526_v37, 0.0  ;;  %v701_v46 = vmax.f32 %v567_v38, 0.0  ;;  %v530_v47 = vpop.f32.mrb[7].mxu0  ;;  %v571_v48 = vpop.f32.mrb[7].mxu1 }
  0xf9   :  { %v700_v49 = vmax.f32 %v528_v41, 0.0  ;;  %v702_v50 = vmax.f32 %v569_v42, 0.0 }
  0xfb   :  { %v738_v51 = vcombine.low %v699_v45, %v700_v49  ;;  %v739_v52 = vcombine.low %v701_v46, %v702_v50 }
  0xfd   :  { %v746_v53 = vrot.slane %v738_v51, %v1171_v20  ;;  %v753_v54 = vrot.slane %v739_v52, %v1171_v20 }
  0xff   :  { %v754_v55 = vcombine.low %v746_v53, %v753_v54 }
 0x101   :  { %784 = vst [vmem:[%s1209_s3 + $0x8] sm:$0xff] %v754_v55 }
 0x105   :  { %v607_v2 = vpop.f32.mrb[8].mxu0  ;;  %v648_v3 = vpop.f32.mrb[8].mxu1 }
 0x106   :  { %v608_v4 = vadd.f32 %v607_v2, %v111_v62  ;;  %v649_v5 = vadd.f32 %v648_v3, %v119_v63  ;;  %v609_v6 = vpop.f32.mrb[9].mxu0  ;;  %v650_v7 = vpop.f32.mrb[9].mxu1 }
 0x107   :  { %v610_v8 = vadd.f32 %v609_v6, %v115_v0  ;;  %v651_v9 = vadd.f32 %v650_v7, %v123_v1  ;;  %v611_v10 = vpop.f32.mrb[10].mxu0  ;;  %v652_v11 = vpop.f32.mrb[10].mxu1 }
 0x108   :  { %v703_v57 = vmax.f32 %v608_v4, 0.0  ;;  %v705_v12 = vmax.f32 %v649_v5, 0.0  ;;  %v612_v13 = vpop.f32.mrb[11].mxu0  ;;  %v653_v58 = vpop.f32.mrb[11].mxu1 }
 0x109   :  { %v704_v14 = vmax.f32 %v610_v8, 0.0  ;;  %v706_v15 = vmax.f32 %v651_v9, 0.0 }
 0x10b   :  { %v755_v60 = vcombine.low %v703_v57, %v704_v14  ;;  %v756_v16 = vcombine.low %v705_v12, %v706_v15 }
 0x10d   :  { %v763_v56 = vrot.slane %v755_v60, %v1171_v20  ;;  %v770_v61 = vrot.slane %v756_v16, %v1171_v20 }
 0x10f   :  { %v771_v17 = vcombine.low %v763_v56, %v770_v61 }
 0x111   :  { %785 = vst [vmem:[%s1209_s3 + $0x10] sm:$0xff] %v771_v17 }
 0x115   :  { %v689_v19 = vpop.f32.mrb[12].mxu0 }
 0x116   :  { %v690_v21 = vadd.f32 %v689_v19, %v127_v18  ;;  %v866_v22 = vpop.f32.mrb[13].mxu0 }
 0x117   :  { %v692_v23 = vpop.f32.mrb[14].mxu0 }
 0x118   :  { %v707_v24 = vmax.f32 %v690_v21, 0.0  ;;  %v867_v25 = vpop.f32.mrb[15].mxu0 }
 0x11a   :  { %850 = vst.sshfl [vmem:[%s1209_s3 + $0x18] sm:$0x3 pattern:$0x76325410] %v707_v24 }

// kernel: cluster_autoencoder_forward.12
= control target key start
LH: loop header
LB: loop body
LE: loop exit
PB: predicated region body
PF: predicated region fallthrough
CT: control target
= control target key end

     0   :  { %v365_v0 = vmov 0.0   ;;  %vm366_vm0 = vmmov 0   ;;  %s496_s1 = inlined_call_operand.vmem [shape: bf16[128,128], index: 1, kind: input, shape index: {}]   ;;  %s497_s0 = inlined_call_operand.vmem [shape: bf16[98,128], index: 0, kind: input, shape index: {}]   ;;  %s498_s2 = inlined_call_operand.vmem [shape: f32[1,128], index: 2, kind: input, shape index: {}]   ;;  %s499_s3 = inlined_call_operand.vmem [shape: f32[98,128], index: 3, kind: output, shape index: {}]  }
   0x1   :  { %288 = vmatprep.subr.bf16.mxu0 %v365_v0  ;;  %v350_v1 = vld [vmem:[%s496_s1] sm:$0xff]   ;;  %332 = vmatprep.subr.bf16.mxu1 %v365_v0  ;;  %v351_v2 = vld [vmem:[%s496_s1 + $0x8] sm:$0xff]   ;;  %v352_v3 = vld [vmem:[%s496_s1 + $0x10] sm:$0xff]  }
   0x2   :  { %304 = vmatprep.mubr.msk.bf16.mxu0 %vm366_vm0, %v365_v0  ;;  %320 = vmatprep.mubr.msk.bf16.mxu1 %vm366_vm0, %v365_v0  ;;  %v353_v4 = vld [vmem:[%s496_s1 + $0x18] sm:$0xff]   ;;  %v354_v5 = vld [vmem:[%s496_s1 + $0x20] sm:$0xff]   ;;  %v355_v6 = vld [vmem:[%s496_s1 + $0x28] sm:$0xff]  }
   0x3   :  { %289 = vmatpush3.bf16.msra.mxu0 %v350_v1  ;;  %340 = vmatpush3.bf16.msra.mxu1 %v350_v1  ;;  %v356_v7 = vld [vmem:[%s496_s1 + $0x30] sm:$0xff]   ;;  %v357_v8 = vld [vmem:[%s496_s1 + $0x38] sm:$0xff]   ;;  %v358_v9 = vld [vmem:[%s497_s0] sm:$0xff]  }
   0x4   :  { %290 = vmatprep.subr.bf16.mxu0 %v365_v0  ;;  %333 = vmatprep.subr.bf16.mxu1 %v365_v0  ;;  %v359_v10 = vld [vmem:[%s497_s0 + $0x20] sm:$0xff]   ;;  %v360_v11 = vld [vmem:[%s497_s0 + $0x8] sm:$0xff]   ;;  %v362_v13 = vld [vmem:[%s497_s0 + $0x10] sm:$0xff]  }
   0x5   :  { %v361_v12 = vld [vmem:[%s497_s0 + $0x28] sm:$0xff]   ;;  %v363_v14 = vld [vmem:[%s497_s0 + $0x30] ss:$0 sps:$4 sm:$0x11]   ;;  %v364_v15 = vld [vmem:[%s497_s0 + $0x18] sm:$0xff]  }
   0x6   :  { %v442_v16 = vld [vmem:[%s498_s2] ss:$0 sm:$0xff] }
   0x7   :  { %291 = vmatpush3.bf16.msra.mxu0 %v351_v2  ;;  %341 = vmatpush3.bf16.msra.mxu1 %v351_v2 }
   0x8   :  { %292 = vmatprep.subr.bf16.mxu0 %v365_v0  ;;  %334 = vmatprep.subr.bf16.mxu1 %v365_v0 }
   0xb   :  { %293 = vmatpush3.bf16.msra.mxu0 %v352_v3  ;;  %342 = vmatpush3.bf16.msra.mxu1 %v352_v3 }
   0xc   :  { %294 = vmatprep.subr.bf16.mxu0 %v365_v0  ;;  %335 = vmatprep.subr.bf16.mxu1 %v365_v0 }
   0xf   :  { %295 = vmatpush3.bf16.msra.mxu0 %v353_v4  ;;  %343 = vmatpush3.bf16.msra.mxu1 %v353_v4 }
  0x10   :  { %296 = vmatprep.subr.bf16.mxu0 %v365_v0  ;;  %336 = vmatprep.subr.bf16.mxu1 %v365_v0 }
  0x13   :  { %297 = vmatpush3.bf16.msra.mxu0 %v354_v5  ;;  %344 = vmatpush3.bf16.msra.mxu1 %v354_v5 }
  0x14   :  { %298 = vmatprep.subr.bf16.mxu0 %v365_v0  ;;  %337 = vmatprep.subr.bf16.mxu1 %v365_v0 }
  0x17   :  { %299 = vmatpush3.bf16.msra.mxu0 %v355_v6  ;;  %345 = vmatpush3.bf16.msra.mxu1 %v355_v6 }
  0x18   :  { %300 = vmatprep.subr.bf16.mxu0 %v365_v0  ;;  %338 = vmatprep.subr.bf16.mxu1 %v365_v0 }
  0x1b   :  { %301 = vmatpush3.bf16.msra.mxu0 %v356_v7  ;;  %346 = vmatpush3.bf16.msra.mxu1 %v356_v7 }
  0x1c   :  { %302 = vmatprep.subr.bf16.mxu0 %v365_v0  ;;  %339 = vmatprep.subr.bf16.mxu1 %v365_v0 }
  0x1f   :  { %303 = vmatpush3.bf16.msra.mxu0 %v357_v8  ;;  %347 = vmatpush3.bf16.msra.mxu1 %v357_v8 }
  0x22   :  { %305 = vmatmul.mubr.bf16.vlgmr.msra.gmra.mrb[0].mxu0 %v358_v9  ;;  %321 = vmatmul.mubr.bf16.vlgmr.msra.gmra.mrb[0].mxu1 %v359_v10 }
  0x23   :  { %308 = vmatprep.mubr.msk.bf16.mxu0 %vm366_vm0, %v365_v0  ;;  %324 = vmatprep.mubr.msk.bf16.mxu1 %vm366_vm0, %v365_v0 }
  0x2a   :  { %309 = vmatmul.mubr.bf16.gmra.mrb[4].mxu0 %v360_v11  ;;  %325 = vmatmul.mubr.bf16.gmra.mrb[4].mxu1 %v361_v12 }
  0x2b   :  { %312 = vmatprep.mubr.msk.bf16.mxu0 %vm366_vm0, %v365_v0  ;;  %328 = vmatprep.mubr.msk.bf16.mxu1 %vm366_vm0, %v365_v0 }
  0x32   :  { %313 = vmatmul.mubr.bf16.gmra.mrb[8].mxu0 %v362_v13  ;;  %329 = vmatmul.mubr.bf16.gmra.mrb[8].mxu1 %v363_v14 }
  0x33   :  { %316 = vmatprep.mubr.msk.bf16.mxu0 %vm366_vm0, %v365_v0 }
  0x3a   :  { %317 = vmatmul.mubr.bf16.gmra.mrb[12].mxu0 %v364_v15 }
  0xf5   :  { %v173_v17 = vpop.f32.mrb[0].mxu0  ;;  %v205_v18 = vpop.f32.mrb[0].mxu1 }
  0xf6   :  { %v174_v19 = vadd.f32 %v442_v16, %v173_v17  ;;  %v306_v20 = vpop.f32.mrb[1].mxu0  ;;  %v206_v21 = vadd.f32 %v442_v16, %v205_v18  ;;  %v322_v22 = vpop.f32.mrb[1].mxu1 }
  0xf7   :  { %v176_v23 = vpop.f32.mrb[2].mxu0  ;;  %v208_v24 = vpop.f32.mrb[2].mxu1 }
  0xf8   :  { %v227_v25 = vmax.f32 %v174_v19, 0.0  ;;  %v177_v26 = vadd.f32 %v442_v16, %v176_v23  ;;  %v307_v27 = vpop.f32.mrb[3].mxu0  ;;  %v235_v28 = vmax.f32 %v206_v21, 0.0  ;;  %v209_v29 = vadd.f32 %v442_v16, %v208_v24  ;;  %v323_v30 = vpop.f32.mrb[3].mxu1 }
  0xfa   :  { %240 = vst [vmem:[%s499_s3] sm:$0xff] %v227_v25  ;;  %v228_v31 = vmax.f32 %v177_v26, 0.0  ;;  %248 = vst [vmem:[%s499_s3 + $0x40] sm:$0xff] %v235_v28  ;;  %v236_v32 = vmax.f32 %v209_v29, 0.0 }
  0xfc   :  { %241 = vst [vmem:[%s499_s3 + $0x8] sm:$0xff] %v228_v31  ;;  %249 = vst [vmem:[%s499_s3 + $0x48] sm:$0xff] %v236_v32 }
  0xfd   :  { %v181_v33 = vpop.f32.mrb[4].mxu0  ;;  %v213_v34 = vpop.f32.mrb[4].mxu1 }
  0xfe   :  { %v182_v35 = vadd.f32 %v442_v16, %v181_v33  ;;  %v310_v36 = vpop.f32.mrb[5].mxu0  ;;  %v214_v37 = vadd.f32 %v442_v16, %v213_v34  ;;  %v326_v38 = vpop.f32.mrb[5].mxu1 }
  0xff   :  { %v184_v39 = vpop.f32.mrb[6].mxu0  ;;  %v216_v40 = vpop.f32.mrb[6].mxu1 }
 0x100   :  { %v229_v41 = vmax.f32 %v182_v35, 0.0  ;;  %v185_v42 = vadd.f32 %v442_v16, %v184_v39  ;;  %v311_v43 = vpop.f32.mrb[7].mxu0  ;;  %v237_v44 = vmax.f32 %v214_v37, 0.0  ;;  %v217_v45 = vadd.f32 %v442_v16, %v216_v40  ;;  %v327_v46 = vpop.f32.mrb[7].mxu1 }
 0x102   :  { %242 = vst [vmem:[%s499_s3 + $0x10] sm:$0xff] %v229_v41  ;;  %v230_v47 = vmax.f32 %v185_v42, 0.0  ;;  %250 = vst [vmem:[%s499_s3 + $0x50] sm:$0xff] %v237_v44  ;;  %v238_v48 = vmax.f32 %v217_v45, 0.0 }
 0x104   :  { %243 = vst [vmem:[%s499_s3 + $0x18] sm:$0xff] %v230_v47  ;;  %251 = vst [vmem:[%s499_s3 + $0x58] sm:$0xff] %v238_v48 }
 0x105   :  { %v189_v49 = vpop.f32.mrb[8].mxu0  ;;  %v221_v50 = vpop.f32.mrb[8].mxu1 }
 0x106   :  { %v190_v51 = vadd.f32 %v442_v16, %v189_v49  ;;  %v314_v52 = vpop.f32.mrb[9].mxu0  ;;  %v222_v53 = vadd.f32 %v442_v16, %v221_v50  ;;  %v330_v54 = vpop.f32.mrb[9].mxu1 }
 0x107   :  { %v192_v55 = vpop.f32.mrb[10].mxu0  ;;  %v224_v56 = vpop.f32.mrb[10].mxu1 }
 0x108   :  { %v231_v57 = vmax.f32 %v190_v51, 0.0  ;;  %v193_v58 = vadd.f32 %v442_v16, %v192_v55  ;;  %v315_v59 = vpop.f32.mrb[11].mxu0  ;;  %v239_v60 = vmax.f32 %v222_v53, 0.0  ;;  %v331_v61 = vpop.f32.mrb[11].mxu1 }
 0x10a   :  { %244 = vst [vmem:[%s499_s3 + $0x20] sm:$0xff] %v231_v57  ;;  %v232_v62 = vmax.f32 %v193_v58, 0.0  ;;  %252 = vst [vmem:[%s499_s3 + $0x60] sm:$0x3] %v239_v60 }
 0x10c   :  { %245 = vst [vmem:[%s499_s3 + $0x28] sm:$0xff] %v232_v62 }
 0x10d   :  { %v197_v63 = vpop.f32.mrb[12].mxu0 }
 0x10e   :  { %v198_v0 = vadd.f32 %v442_v16, %v197_v63  ;;  %v318_v1 = vpop.f32.mrb[13].mxu0 }
 0x10f   :  { %v200_v2 = vpop.f32.mrb[14].mxu0 }
 0x110   :  { %v233_v3 = vmax.f32 %v198_v0, 0.0  ;;  %v201_v4 = vadd.f32 %v442_v16, %v200_v2  ;;  %v319_v5 = vpop.f32.mrb[15].mxu0 }
 0x112   :  { %246 = vst [vmem:[%s499_s3 + $0x30] sm:$0xff] %v233_v3  ;;  %v234_v6 = vmax.f32 %v201_v4, 0.0 }
 0x114   :  { %247 = vst [vmem:[%s499_s3 + $0x38] sm:$0xff] %v234_v6 }

// kernel: cluster_autoencoder_forward.13
= control target key start
LH: loop header
LB: loop body
LE: loop exit
PB: predicated region body
PF: predicated region fallthrough
CT: control target
= control target key end

     0   :  { %v1357_v0 = vmov 0.0   ;;  %vm1358_vm0 = vmmov 0   ;;  %vm226_vm1 = vcmask 523264   ;;  %s1750_s1 = inlined_call_operand.vmem [shape: bf16[64,128], index: 1, kind: input, shape index: {}]   ;;  %s1751_s0 = inlined_call_operand.vmem [shape: bf16[392,64], index: 0, kind: input, shape index: {}]   ;;  %s1752_s2 = inlined_call_operand.vmem [shape: f32[1,128], index: 2, kind: input, shape index: {}]   ;;  %s1753_s3 = inlined_call_operand.vmem [shape: f32[392,128], index: 3, kind: output, shape index: {}]  }
   0x1   :  { %1014 = vmatprep.subr.bf16.mxu0 %v1357_v0  ;;  %v1132_v1 = vld [vmem:[%s1750_s1] sm:$0xff]   ;;  %1122 = vmatprep.subr.bf16.mxu1 %v1357_v0  ;;  %v1133_v2 = vld [vmem:[%s1750_s1 + $0x8] sm:$0xff]   ;;  %v1134_v3 = vld [vmem:[%s1750_s1 + $0x10] sm:$0xff]  }
   0x2   :  { %1022 = vmatprep.mubr.msk.bf16.mxu0 %vm1358_vm0, %v1357_v0  ;;  %1074 = vmatprep.mubr.msk.bf16.mxu1 %vm1358_vm0, %v1357_v0  ;;  %v1135_v4 = vld [vmem:[%s1750_s1 + $0x18] sm:$0xff]   ;;  %v1136_v5 = vld [vmem:[%s1751_s0] sm:$0xff]   ;;  %v1137_v6 = vld [vmem:[%s1751_s0 + $0x68] sm:$0xff]  }
   0x3   :  { %1015 = vmatpush3.bf16.msra.mxu0 %v1132_v1  ;;  %1126 = vmatpush3.bf16.msra.mxu1 %v1132_v1  ;;  %v1138_v7 = vld [vmem:[%s1751_s0 + $0x8] sm:$0xff]   ;;  %v1139_v8 = vld [vmem:[%s1751_s0 + $0x70] sm:$0xff]   ;;  %v1141_v10 = vld [vmem:[%s1751_s0 + $0x78] sm:$0xff]  }
   0x4   :  { %1016 = vmatprep.subr.bf16.mxu0 %v1357_v0  ;;  %1123 = vmatprep.subr.bf16.mxu1 %v1357_v0  ;;  %v1140_v9 = vld [vmem:[%s1751_s0 + $0x10] sm:$0xff]   ;;  %v1142_v11 = vld [vmem:[%s1751_s0 + $0x18] sm:$0xff]   ;;  %v1143_v12 = vld [vmem:[%s1751_s0 + $0x80] sm:$0xff]  }
   0x5   :  { %v1144_v13 = vld [vmem:[%s1751_s0 + $0x20] sm:$0xff]   ;;  %v1145_v14 = vld [vmem:[%s1751_s0 + $0x88] sm:$0xff]   ;;  %v1147_v16 = vld [vmem:[%s1751_s0 + $0x90] sm:$0xff]  }
   0x6   :  { %v1146_v15 = vld [vmem:[%s1751_s0 + $0x28] sm:$0xff]   ;;  %v1148_v17 = vld [vmem:[%s1751_s0 + $0x30] sm:$0xff]   ;;  %v1149_v18 = vld [vmem:[%s1751_s0 + $0x98] sm:$0xff]  }
   0x7   :  { %1017 = vmatpush3.bf16.msra.mxu0 %v1133_v2  ;;  %1127 = vmatpush3.bf16.msra.mxu1 %v1133_v2  ;;  %v1150_v19 = vld [vmem:[%s1751_s0 + $0x38] sm:$0xff]   ;;  %v1151_v20 = vld [vmem:[%s1751_s0 + $0xa0] sm:$0xff]   ;;  %v1153_v22 = vld [vmem:[%s1751_s0 + $0xa8] sm:$0xff]  }
   0x8   :  { %1018 = vmatprep.subr.bf16.mxu0 %v1357_v0  ;;  %1124 = vmatprep.subr.bf16.mxu1 %v1357_v0  ;;  %v1152_v21 = vld [vmem:[%s1751_s0 + $0x40] sm:$0xff]   ;;  %v1154_v23 = vld [vmem:[%s1751_s0 + $0x48] sm:$0xff]   ;;  %v1155_v24 = vld [vmem:[%s1751_s0 + $0xb0] sm:$0xff]  }
   0x9   :  { %v1156_v25 = vld [vmem:[%s1751_s0 + $0x50] sm:$0xff]   ;;  %v1157_v26 = vld [vmem:[%s1751_s0 + $0xb8] sm:$0xff]   ;;  %v1159_v28 = vld [vmem:[%s1751_s0 + $0xc0] ss:$0 sps:$4 sm:$0xff]  }
   0xa   :  { %v1158_v27 = vld [vmem:[%s1751_s0 + $0x58] sm:$0xff]   ;;  %v1160_v29 = vld [vmem:[%s1751_s0 + $0x60] sm:$0xff]  }
   0xb   :  { %1019 = vmatpush3.bf16.msra.mxu0 %v1134_v3  ;;  %1128 = vmatpush3.bf16.msra.mxu1 %v1134_v3  ;;  %v1552_v30 = vld [vmem:[%s1752_s2] ss:$0 sm:$0xff] }
   0xc   :  { %1020 = vmatprep.subr.bf16.mxu0 %v1357_v0  ;;  %1125 = vmatprep.subr.bf16.mxu1 %v1357_v0 }
   0xf   :  { %1021 = vmatpush3.bf16.msra.mxu0 %v1135_v4  ;;  %1129 = vmatpush3.bf16.msra.mxu1 %v1135_v4 }
  0x12   :  { %1023 = vmatmul.mubr.msk.bf16.vlgmr.msra.gmra.mrb[0].mxu0 %vm226_vm1, %v1136_v5  ;;  %1075 = vmatmul.mubr.msk.bf16.vlgmr.msra.gmra.mrb[0].mxu1 %vm226_vm1, %v1137_v6 }
  0x13   :  { %1026 = vmatprep.mubr.msk.bf16.mxu0 %vm1358_vm0, %v1357_v0  ;;  %1078 = vmatprep.mubr.msk.bf16.mxu1 %vm1358_vm0, %v1357_v0 }
  0x1a   :  { %1027 = vmatmul.mubr.msk.bf16.gmra.mrb[4].mxu0 %vm226_vm1, %v1138_v7  ;;  %1079 = vmatmul.mubr.msk.bf16.gmra.mrb[4].mxu1 %vm226_vm1, %v1139_v8 }
  0x1b   :  { %1030 = vmatprep.mubr.msk.bf16.mxu0 %vm1358_vm0, %v1357_v0  ;;  %1082 = vmatprep.mubr.msk.bf16.mxu1 %vm1358_vm0, %v1357_v0 }
  0x22   :  { %1031 = vmatmul.mubr.msk.bf16.gmra.mrb[8].mxu0 %vm226_vm1, %v1140_v9  ;;  %1083 = vmatmul.mubr.msk.bf16.gmra.mrb[8].mxu1 %vm226_vm1, %v1141_v10 }
  0x23   :  { %1034 = vmatprep.mubr.msk.bf16.mxu0 %vm1358_vm0, %v1357_v0  ;;  %1086 = vmatprep.mubr.msk.bf16.mxu1 %vm1358_vm0, %v1357_v0 }
  0x2a   :  { %1035 = vmatmul.mubr.msk.bf16.gmra.mrb[12].mxu0 %vm226_vm1, %v1142_v11  ;;  %1087 = vmatmul.mubr.msk.bf16.gmra.mrb[12].mxu1 %vm226_vm1, %v1143_v12 }
  0x2b   :  { %1038 = vmatprep.mubr.msk.bf16.mxu0 %vm1358_vm0, %v1357_v0  ;;  %1090 = vmatprep.mubr.msk.bf16.mxu1 %vm1358_vm0, %v1357_v0 }
  0x32   :  { %1039 = vmatmul.mubr.msk.bf16.gmra.mrb[16].mxu0 %vm226_vm1, %v1144_v13  ;;  %1091 = vmatmul.mubr.msk.bf16.gmra.mrb[16].mxu1 %vm226_vm1, %v1145_v14 }
  0x33   :  { %1042 = vmatprep.mubr.msk.bf16.mxu0 %vm1358_vm0, %v1357_v0  ;;  %1094 = vmatprep.mubr.msk.bf16.mxu1 %vm1358_vm0, %v1357_v0 }
  0x3a   :  { %1043 = vmatmul.mubr.msk.bf16.gmra.mrb[20].mxu0 %vm226_vm1, %v1146_v15  ;;  %1095 = vmatmul.mubr.msk.bf16.gmra.mrb[20].mxu1 %vm226_vm1, %v1147_v16 }
  0x3b   :  { %1046 = vmatprep.mubr.msk.bf16.mxu0 %vm1358_vm0, %v1357_v0  ;;  %1098 = vmatprep.mubr.msk.bf16.mxu1 %vm1358_vm0, %v1357_v0 }
  0x42   :  { %1047 = vmatmul.mubr.msk.bf16.gmra.mrb[24].mxu0 %vm226_vm1, %v1148_v17  ;;  %1099 = vmatmul.mubr.msk.bf16.gmra.mrb[24].mxu1 %vm226_vm1, %v1149_v18 }
  0x43   :  { %1050 = vmatprep.mubr.msk.bf16.mxu0 %vm1358_vm0, %v1357_v0  ;;  %1102 = vmatprep.mubr.msk.bf16.mxu1 %vm1358_vm0, %v1357_v0 }
  0x4a   :  { %1051 = vmatmul.mubr.msk.bf16.gmra.mrb[28].mxu0 %vm226_vm1, %v1150_v19  ;;  %1103 = vmatmul.mubr.msk.bf16.gmra.mrb[28].mxu1 %vm226_vm1, %v1151_v20 }
  0x4b   :  { %1054 = vmatprep.mubr.msk.bf16.mxu0 %vm1358_vm0, %v1357_v0  ;;  %1106 = vmatprep.mubr.msk.bf16.mxu1 %vm1358_vm0, %v1357_v0 }
  0x52   :  { %1055 = vmatmul.mubr.msk.bf16.gmra.mrb[32].mxu0 %vm226_vm1, %v1152_v21  ;;  %1107 = vmatmul.mubr.msk.bf16.gmra.mrb[32].mxu1 %vm226_vm1, %v1153_v22 }
  0x53   :  { %1058 = vmatprep.mubr.msk.bf16.mxu0 %vm1358_vm0, %v1357_v0  ;;  %1110 = vmatprep.mubr.msk.bf16.mxu1 %vm1358_vm0, %v1357_v0 }
  0x5a   :  { %1059 = vmatmul.mubr.msk.bf16.gmra.mrb[36].mxu0 %vm226_vm1, %v1154_v23  ;;  %1111 = vmatmul.mubr.msk.bf16.gmra.mrb[36].mxu1 %vm226_vm1, %v1155_v24 }
  0x5b   :  { %1062 = vmatprep.mubr.msk.bf16.mxu0 %vm1358_vm0, %v1357_v0  ;;  %1114 = vmatprep.mubr.msk.bf16.mxu1 %vm1358_vm0, %v1357_v0 }
  0x62   :  { %1063 = vmatmul.mubr.msk.bf16.gmra.mrb[40].mxu0 %vm226_vm1, %v1156_v25  ;;  %1115 = vmatmul.mubr.msk.bf16.gmra.mrb[40].mxu1 %vm226_vm1, %v1157_v26 }
  0x63   :  { %1066 = vmatprep.mubr.msk.bf16.mxu0 %vm1358_vm0, %v1357_v0  ;;  %1118 = vmatprep.mubr.msk.bf16.mxu1 %vm1358_vm0, %v1357_v0 }
  0x6a   :  { %1067 = vmatmul.mubr.msk.bf16.gmra.mrb[44].mxu0 %vm226_vm1, %v1158_v27  ;;  %1119 = vmatmul.mubr.msk.bf16.gmra.mrb[44].mxu1 %vm226_vm1, %v1159_v28 }
  0x6b   :  { %1070 = vmatprep.mubr.msk.bf16.mxu0 %vm1358_vm0, %v1357_v0 }
  0x72   :  { %1071 = vmatmul.mubr.msk.bf16.gmra.mrb[48].mxu0 %vm226_vm1, %v1160_v29 }
  0xe5   :  { %v336_v31 = vpop.f32.mrb[0].mxu0  ;;  %v440_v32 = vpop.f32.mrb[0].mxu1 }
  0xe6   :  { %v337_v33 = vadd.f32 %v1552_v30, %v336_v31  ;;  %v1024_v34 = vpop.f32.mrb[1].mxu0  ;;  %v441_v35 = vadd.f32 %v1552_v30, %v440_v32  ;;  %v1076_v36 = vpop.f32.mrb[1].mxu1 }
  0xe7   :  { %v339_v37 = vpop.f32.mrb[2].mxu0  ;;  %v443_v38 = vpop.f32.mrb[2].mxu1 }
  0xe8   :  { %v936_v39 = vmul.f32 -1.442695, %v337_v33  ;;  %v340_v40 = vadd.f32 %v1552_v30, %v339_v37  ;;  %v1025_v41 = vpop.f32.mrb[3].mxu0  ;;  %v962_v42 = vmul.f32 -1.442695, %v441_v35  ;;  %v444_v43 = vadd.f32 %v1552_v30, %v443_v38  ;;  %v1077_v44 = vpop.f32.mrb[3].mxu1 }
  0xea   :  { %1161 = vpow2.f32 %v936_v39  ;;  %v937_v45 = vmul.f32 -1.442695, %v340_v40  ;;  %v963_v46 = vmul.f32 -1.442695, %v444_v43 }
  0xeb   :  { %1163 = vpow2.f32 %v962_v42 }
  0xec   :  { %1165 = vpow2.f32 %v937_v45 }
  0xed   :  { %v344_v47 = vpop.f32.mrb[4].mxu0  ;;  %1167 = vpow2.f32 %v963_v46  ;;  %v448_v48 = vpop.f32.mrb[4].mxu1 }
  0xee   :  { %v345_v49 = vadd.f32 %v1552_v30, %v344_v47  ;;  %v1028_v50 = vpop.f32.mrb[5].mxu0  ;;  %v449_v51 = vadd.f32 %v1552_v30, %v448_v48  ;;  %v1080_v52 = vpop.f32.mrb[5].mxu1 }
  0xef   :  { %v347_v53 = vpop.f32.mrb[6].mxu0  ;;  %v451_v54 = vpop.f32.mrb[6].mxu1 }
  0xf0   :  { %v938_v55 = vmul.f32 -1.442695, %v345_v49  ;;  %v348_v56 = vadd.f32 %v1552_v30, %v347_v53  ;;  %v1029_v57 = vpop.f32.mrb[7].mxu0  ;;  %v964_v58 = vmul.f32 -1.442695, %v449_v51  ;;  %v452_v59 = vadd.f32 %v1552_v30, %v451_v54  ;;  %v1081_v60 = vpop.f32.mrb[7].mxu1 }
  0xf2   :  { %1169 = vpow2.f32 %v938_v55  ;;  %v939_v61 = vmul.f32 -1.442695, %v348_v56  ;;  %v965_v62 = vmul.f32 -1.442695, %v452_v59 }
  0xf3   :  { %1171 = vpow2.f32 %v964_v58 }
  0xf4   :  { %v1162_v63 = vpop.eup %1161  ;;  %1173 = vpow2.f32 %v939_v61 }
  0xf5   :  { %v1164_v0 = vpop.eup %1163  ;;  %v681_v1 = vadd.f32 1.0, %v1162_v63  ;;  %v352_v2 = vpop.f32.mrb[8].mxu0  ;;  %1175 = vpow2.f32 %v965_v62 }
  0xf6   :  { %v456_v3 = vpop.f32.mrb[8].mxu1  ;;  %v1166_v4 = vpop.eup %1165  ;;  %v707_v5 = vadd.f32 1.0, %v1164_v0  ;;  %v353_v6 = vadd.f32 %v1552_v30, %v352_v2 }
  0xf7   :  { %v1032_v7 = vpop.f32.mrb[9].mxu0  ;;  %v457_v8 = vadd.f32 %v1552_v30, %v456_v3  ;;  %v1084_v9 = vpop.f32.mrb[9].mxu1  ;;  %1177 = vrcp.f32 %v681_v1  ;;  %v682_v11 = vadd.f32 1.0, %v1166_v4 }
  0xf8   :  { %v1168_v10 = vpop.eup %1167  ;;  %v355_v12 = vpop.f32.mrb[10].mxu0  ;;  %1179 = vrcp.f32 %v707_v5  ;;  %v940_v15 = vmul.f32 -1.442695, %v353_v6 }
  0xf9   :  { %v459_v13 = vpop.f32.mrb[10].mxu1  ;;  %v708_v14 = vadd.f32 1.0, %v1168_v10  ;;  %v356_v16 = vadd.f32 %v1552_v30, %v355_v12  ;;  %v1033_v17 = vpop.f32.mrb[11].mxu0  ;;  %1181 = vrcp.f32 %v682_v11  ;;  %v966_v19 = vmul.f32 -1.442695, %v457_v8 }
  0xfa   :  { %v1085_v18 = vpop.f32.mrb[11].mxu1  ;;  %v460_v20 = vadd.f32 %v1552_v30, %v459_v13 }
  0xfb   :  { %1183 = vrcp.f32 %v708_v14  ;;  %v941_v21 = vmul.f32 -1.442695, %v356_v16 }
  0xfc   :  { %1185 = vpow2.f32 %v940_v15  ;;  %v967_v22 = vmul.f32 -1.442695, %v460_v20  ;;  %v1170_v23 = vpop.eup %1169 }
  0xfd   :  { %1187 = vpow2.f32 %v941_v21  ;;  %v1172_v24 = vpop.eup %1171  ;;  %v683_v25 = vadd.f32 1.0, %v1170_v23  ;;  %v360_v26 = vpop.f32.mrb[12].mxu0 }
  0xfe   :  { %1189 = vpow2.f32 %v966_v19  ;;  %v464_v27 = vpop.f32.mrb[12].mxu1  ;;  %v1174_v28 = vpop.eup %1173  ;;  %v709_v29 = vadd.f32 1.0, %v1172_v24  ;;  %v361_v31 = vadd.f32 %v1552_v30, %v360_v26 }
  0xff   :  { %v1036_v32 = vpop.f32.mrb[13].mxu0  ;;  %1191 = vpow2.f32 %v967_v22  ;;  %v465_v33 = vadd.f32 %v1552_v30, %v464_v27  ;;  %v1088_v34 = vpop.f32.mrb[13].mxu1  ;;  %v684_v36 = vadd.f32 1.0, %v1174_v28 }
 0x100   :  { %v1176_v35 = vpop.eup %1175  ;;  %1193 = vrcp.f32 %v683_v25  ;;  %v363_v37 = vpop.f32.mrb[14].mxu0  ;;  %v942_v40 = vmul.f32 -1.442695, %v361_v31 }
 0x101   :  { %v467_v38 = vpop.f32.mrb[14].mxu1  ;;  %1195 = vrcp.f32 %v709_v29  ;;  %v710_v39 = vadd.f32 1.0, %v1176_v35  ;;  %v364_v41 = vadd.f32 %v1552_v30, %v363_v37  ;;  %v1037_v42 = vpop.f32.mrb[15].mxu0  ;;  %v968_v45 = vmul.f32 -1.442695, %v465_v33 }
 0x102   :  { %v1089_v43 = vpop.f32.mrb[15].mxu1  ;;  %v1178_v44 = vpop.eup %1177  ;;  %1197 = vrcp.f32 %v684_v36  ;;  %v468_v46 = vadd.f32 %v1552_v30, %v467_v38 }
 0x103   :  { %v1180_v47 = vpop.eup %1179  ;;  %828 = vst [vmem:[%s1753_s3] sm:$0xff] %v1178_v44  ;;  %1199 = vrcp.f32 %v710_v39  ;;  %v943_v48 = vmul.f32 -1.442695, %v364_v41 }
 0x104   :  { %v1182_v49 = vpop.eup %1181  ;;  %854 = vst [vmem:[%s1753_s3 + $0xd0] sm:$0xff] %v1180_v47  ;;  %1201 = vpow2.f32 %v942_v40  ;;  %v969_v50 = vmul.f32 -1.442695, %v468_v46 }
 0x105   :  { %v1184_v51 = vpop.eup %1183  ;;  %829 = vst [vmem:[%s1753_s3 + $0x8] sm:$0xff] %v1182_v49  ;;  %1203 = vpow2.f32 %v943_v48  ;;  %v368_v53 = vpop.f32.mrb[16].mxu0 }
 0x106   :  { %v1186_v52 = vpop.eup %1185  ;;  %855 = vst [vmem:[%s1753_s3 + $0xd8] sm:$0xff] %v1184_v51  ;;  %1205 = vpow2.f32 %v968_v45  ;;  %v472_v54 = vpop.f32.mrb[16].mxu1  ;;  %v369_v57 = vadd.f32 %v1552_v30, %v368_v53 }
 0x107   :  { %v1188_v55 = vpop.eup %1187  ;;  %v685_v56 = vadd.f32 1.0, %v1186_v52  ;;  %v1040_v58 = vpop.f32.mrb[17].mxu0  ;;  %1207 = vpow2.f32 %v969_v50  ;;  %v473_v59 = vadd.f32 %v1552_v30, %v472_v54 }
 0x108   :  { %v1092_v60 = vpop.f32.mrb[17].mxu1  ;;  %v1190_v61 = vpop.eup %1189  ;;  %v686_v62 = vadd.f32 1.0, %v1188_v55  ;;  %v944_v3 = vmul.f32 -1.442695, %v369_v57 }
 0x109   :  { %v371_v63 = vpop.f32.mrb[18].mxu0  ;;  %v475_v0 = vpop.f32.mrb[18].mxu1  ;;  %1209 = vrcp.f32 %v685_v56  ;;  %v711_v2 = vadd.f32 1.0, %v1190_v61  ;;  %v970_v12 = vmul.f32 -1.442695, %v473_v59 }
 0x10a   :  { %v1192_v1 = vpop.eup %1191  ;;  %v372_v4 = vadd.f32 %v1552_v30, %v371_v63  ;;  %v1041_v5 = vpop.f32.mrb[19].mxu0  ;;  %1211 = vrcp.f32 %v686_v62  ;;  %v476_v9 = vadd.f32 %v1552_v30, %v475_v0 }
 0x10b   :  { %v1093_v6 = vpop.f32.mrb[19].mxu1  ;;  %v1194_v7 = vpop.eup %1193  ;;  %v712_v8 = vadd.f32 1.0, %v1192_v1  ;;  %1213 = vrcp.f32 %v711_v2 }
 0x10c   :  { %v1196_v10 = vpop.eup %1195  ;;  %830 = vst [vmem:[%s1753_s3 + $0x10] sm:$0xff] %v1194_v7  ;;  %v945_v11 = vmul.f32 -1.442695, %v372_v4  ;;  %v971_v14 = vmul.f32 -1.442695, %v476_v9 }
 0x10d   :  { %v1198_v13 = vpop.eup %1197  ;;  %856 = vst [vmem:[%s1753_s3 + $0xe0] sm:$0xff] %v1196_v10  ;;  %1215 = vrcp.f32 %v712_v8  ;;  %v376_v17 = vpop.f32.mrb[20].mxu0 }
 0x10e   :  { %v1200_v15 = vpop.eup %1199  ;;  %831 = vst [vmem:[%s1753_s3 + $0x18] sm:$0xff] %v1198_v13  ;;  %1217 = vpow2.f32 %v944_v3  ;;  %v480_v18 = vpop.f32.mrb[20].mxu1  ;;  %v377_v21 = vadd.f32 %v1552_v30, %v376_v17 }
 0x10f   :  { %v1202_v16 = vpop.eup %1201  ;;  %857 = vst [vmem:[%s1753_s3 + $0xe8] sm:$0xff] %v1200_v15  ;;  %1219 = vpow2.f32 %v945_v11  ;;  %v1044_v22 = vpop.f32.mrb[21].mxu0  ;;  %v481_v23 = vadd.f32 %v1552_v30, %v480_v18 }
 0x110   :  { %v1204_v19 = vpop.eup %1203  ;;  %v687_v20 = vadd.f32 1.0, %v1202_v16  ;;  %1221 = vpow2.f32 %v970_v12  ;;  %v1096_v24 = vpop.f32.mrb[21].mxu1  ;;  %v946_v32 = vmul.f32 -1.442695, %v377_v21 }
 0x111   :  { %v1206_v25 = vpop.eup %1205  ;;  %v688_v26 = vadd.f32 1.0, %v1204_v19  ;;  %1223 = vpow2.f32 %v971_v14  ;;  %v379_v27 = vpop.f32.mrb[22].mxu0  ;;  %v972_v40 = vmul.f32 -1.442695, %v481_v23 }
 0x112   :  { %v483_v28 = vpop.f32.mrb[22].mxu1  ;;  %v1208_v29 = vpop.eup %1207  ;;  %1225 = vrcp.f32 %v687_v20  ;;  %v713_v31 = vadd.f32 1.0, %v1206_v25  ;;  %v380_v33 = vadd.f32 %v1552_v30, %v379_v27 }
 0x113   :  { %v1045_v34 = vpop.f32.mrb[23].mxu0  ;;  %v1097_v35 = vpop.f32.mrb[23].mxu1  ;;  %1227 = vrcp.f32 %v688_v26  ;;  %v714_v36 = vadd.f32 1.0, %v1208_v29  ;;  %v484_v37 = vadd.f32 %v1552_v30, %v483_v28 }
 0x114   :  { %v1210_v38 = vpop.eup %1209  ;;  %1229 = vrcp.f32 %v713_v31  ;;  %v947_v39 = vmul.f32 -1.442695, %v380_v33 }
 0x115   :  { %v1212_v41 = vpop.eup %1211  ;;  %832 = vst [vmem:[%s1753_s3 + $0x20] sm:$0xff] %v1210_v38  ;;  %1231 = vrcp.f32 %v714_v36  ;;  %v973_v42 = vmul.f32 -1.442695, %v484_v37  ;;  %v384_v45 = vpop.f32.mrb[24].mxu0 }
 0x116   :  { %v1214_v43 = vpop.eup %1213  ;;  %833 = vst [vmem:[%s1753_s3 + $0x28] sm:$0xff] %v1212_v41  ;;  %1233 = vpow2.f32 %v946_v32  ;;  %v488_v46 = vpop.f32.mrb[24].mxu1  ;;  %v385_v48 = vadd.f32 %v1552_v30, %v384_v45 }
 0x117   :  { %v1216_v44 = vpop.eup %1215  ;;  %858 = vst [vmem:[%s1753_s3 + $0xf0] sm:$0xff] %v1214_v43  ;;  %1235 = vpow2.f32 %v947_v39  ;;  %v1048_v49 = vpop.f32.mrb[25].mxu0  ;;  %v489_v54 = vadd.f32 %v1552_v30, %v488_v46 }
 0x118   :  { %v1218_v47 = vpop.eup %1217  ;;  %859 = vst [vmem:[%s1753_s3 + $0xf8] sm:$0xff] %v1216_v44  ;;  %1237 = vpow2.f32 %v972_v40  ;;  %v1100_v50 = vpop.f32.mrb[25].mxu1  ;;  %v948_v62 = vmul.f32 -1.442695, %v385_v48 }
 0x119   :  { %v1220_v51 = vpop.eup %1219  ;;  %v689_v52 = vadd.f32 1.0, %v1218_v47  ;;  %1239 = vpow2.f32 %v973_v42  ;;  %v387_v53 = vpop.f32.mrb[26].mxu0  ;;  %v974_v5 = vmul.f32 -1.442695, %v489_v54 }
 0x11a   :  { %v491_v55 = vpop.f32.mrb[26].mxu1  ;;  %v1222_v56 = vpop.eup %1221  ;;  %v690_v57 = vadd.f32 1.0, %v1220_v51  ;;  %v388_v58 = vadd.f32 %v1552_v30, %v387_v53 }
 0x11b   :  { %v1049_v59 = vpop.f32.mrb[27].mxu0  ;;  %v1224_v60 = vpop.eup %1223  ;;  %1241 = vrcp.f32 %v689_v52  ;;  %v715_v61 = vadd.f32 1.0, %v1222_v56  ;;  %v492_v63 = vadd.f32 %v1552_v30, %v491_v55 }
 0x11c   :  { %v1101_v0 = vpop.f32.mrb[27].mxu1  ;;  %v1226_v1 = vpop.eup %1225  ;;  %1243 = vrcp.f32 %v690_v57  ;;  %v716_v2 = vadd.f32 1.0, %v1224_v60  ;;  %v949_v3 = vmul.f32 -1.442695, %v388_v58 }
 0x11d   :  { %v1228_v4 = vpop.eup %1227  ;;  %834 = vst [vmem:[%s1753_s3 + $0x30] sm:$0xff] %v1226_v1  ;;  %1245 = vrcp.f32 %v715_v61  ;;  %v975_v7 = vmul.f32 -1.442695, %v492_v63  ;;  %v392_v9 = vpop.f32.mrb[28].mxu0 }
 0x11e   :  { %v1230_v6 = vpop.eup %1229  ;;  %835 = vst [vmem:[%s1753_s3 + $0x38] sm:$0xff] %v1228_v4  ;;  %1247 = vrcp.f32 %v716_v2  ;;  %v496_v10 = vpop.f32.mrb[28].mxu1  ;;  %v393_v12 = vadd.f32 %v1552_v30, %v392_v9 }
 0x11f   :  { %v1232_v8 = vpop.eup %1231  ;;  %860 = vst [vmem:[%s1753_s3 + $0x100] sm:$0xff] %v1230_v6  ;;  %1249 = vpow2.f32 %v948_v62  ;;  %v1052_v13 = vpop.f32.mrb[29].mxu0  ;;  %v497_v18 = vadd.f32 %v1552_v30, %v496_v10 }
 0x120   :  { %v1234_v11 = vpop.eup %1233  ;;  %861 = vst [vmem:[%s1753_s3 + $0x108] sm:$0xff] %v1232_v8  ;;  %1251 = vpow2.f32 %v949_v3  ;;  %v1104_v14 = vpop.f32.mrb[29].mxu1  ;;  %v950_v27 = vmul.f32 -1.442695, %v393_v12 }
 0x121   :  { %v1236_v15 = vpop.eup %1235  ;;  %v691_v16 = vadd.f32 1.0, %v1234_v11  ;;  %1253 = vpow2.f32 %v974_v5  ;;  %v395_v17 = vpop.f32.mrb[30].mxu0  ;;  %v976_v33 = vmul.f32 -1.442695, %v497_v18 }
 0x122   :  { %v499_v19 = vpop.f32.mrb[30].mxu1  ;;  %v1238_v20 = vpop.eup %1237  ;;  %v692_v21 = vadd.f32 1.0, %v1236_v15  ;;  %1255 = vpow2.f32 %v975_v7  ;;  %v396_v22 = vadd.f32 %v1552_v30, %v395_v17 }
 0x123   :  { %v1053_v23 = vpop.f32.mrb[31].mxu0  ;;  %v1105_v24 = vpop.f32.mrb[31].mxu1  ;;  %1257 = vrcp.f32 %v691_v16  ;;  %v717_v26 = vadd.f32 1.0, %v1238_v20  ;;  %v500_v28 = vadd.f32 %v1552_v30, %v499_v19 }
 0x124   :  { %v1240_v25 = vpop.eup %1239  ;;  %1259 = vrcp.f32 %v692_v21  ;;  %v951_v31 = vmul.f32 -1.442695, %v396_v22 }
 0x125   :  { %v718_v29 = vadd.f32 1.0, %v1240_v25  ;;  %v1242_v32 = vpop.eup %1241  ;;  %1261 = vrcp.f32 %v717_v26  ;;  %v977_v35 = vmul.f32 -1.442695, %v500_v28  ;;  %v400_v37 = vpop.f32.mrb[32].mxu0 }
 0x126   :  { %v1244_v34 = vpop.eup %1243  ;;  %836 = vst [vmem:[%s1753_s3 + $0x40] sm:$0xff] %v1242_v32  ;;  %v504_v38 = vpop.f32.mrb[32].mxu1  ;;  %v401_v40 = vadd.f32 %v1552_v30, %v400_v37 }
 0x127   :  { %1263 = vrcp.f32 %v718_v29  ;;  %v1246_v36 = vpop.eup %1245  ;;  %837 = vst [vmem:[%s1753_s3 + $0x48] sm:$0xff] %v1244_v34  ;;  %v1056_v41 = vpop.f32.mrb[33].mxu0  ;;  %v505_v50 = vadd.f32 %v1552_v30, %v504_v38 }
 0x128   :  { %1265 = vpow2.f32 %v950_v27  ;;  %v1248_v39 = vpop.eup %1247  ;;  %862 = vst [vmem:[%s1753_s3 + $0x110] sm:$0xff] %v1246_v36  ;;  %v1108_v42 = vpop.f32.mrb[33].mxu1  ;;  %v952_v57 = vmul.f32 -1.442695, %v401_v40 }
 0x129   :  { %1267 = vpow2.f32 %v951_v31  ;;  %v1250_v43 = vpop.eup %1249  ;;  %863 = vst [vmem:[%s1753_s3 + $0x118] sm:$0xff] %v1248_v39  ;;  %v403_v44 = vpop.f32.mrb[34].mxu0  ;;  %v978_v62 = vmul.f32 -1.442695, %v505_v50 }
 0x12a   :  { %1269 = vpow2.f32 %v976_v33  ;;  %v507_v45 = vpop.f32.mrb[34].mxu1  ;;  %v1252_v46 = vpop.eup %1251  ;;  %v693_v47 = vadd.f32 1.0, %v1250_v43  ;;  %v404_v48 = vadd.f32 %v1552_v30, %v403_v44 }
 0x12b   :  { %1271 = vpow2.f32 %v977_v35  ;;  %v1057_v49 = vpop.f32.mrb[35].mxu0  ;;  %v1109_v51 = vpop.f32.mrb[35].mxu1  ;;  %v694_v53 = vadd.f32 1.0, %v1252_v46  ;;  %v508_v54 = vadd.f32 %v1552_v30, %v507_v45 }
 0x12c   :  { %v1254_v52 = vpop.eup %1253  ;;  %1273 = vrcp.f32 %v693_v47  ;;  %v953_v60 = vmul.f32 -1.442695, %v404_v48 }
 0x12d   :  { %v1256_v55 = vpop.eup %1255  ;;  %v719_v56 = vadd.f32 1.0, %v1254_v52  ;;  %1275 = vrcp.f32 %v694_v53  ;;  %v408_v0 = vpop.f32.mrb[36].mxu0  ;;  %v979_v1 = vmul.f32 -1.442695, %v508_v54 }
 0x12e   :  { %v1258_v58 = vpop.eup %1257  ;;  %v720_v59 = vadd.f32 1.0, %v1256_v55  ;;  %v512_v2 = vpop.f32.mrb[36].mxu1  ;;  %v409_v4 = vadd.f32 %v1552_v30, %v408_v0 }
 0x12f   :  { %v1260_v61 = vpop.eup %1259  ;;  %838 = vst [vmem:[%s1753_s3 + $0x50] sm:$0xff] %v1258_v58  ;;  %1277 = vrcp.f32 %v719_v56  ;;  %v1060_v5 = vpop.f32.mrb[37].mxu0  ;;  %v513_v14 = vadd.f32 %v1552_v30, %v512_v2 }
 0x130   :  { %v1262_v63 = vpop.eup %1261  ;;  %839 = vst [vmem:[%s1753_s3 + $0x58] sm:$0xff] %v1260_v61  ;;  %1279 = vrcp.f32 %v720_v59  ;;  %v1112_v6 = vpop.f32.mrb[37].mxu1  ;;  %v954_v21 = vmul.f32 -1.442695, %v409_v4 }
 0x131   :  { %v1264_v3 = vpop.eup %1263  ;;  %864 = vst [vmem:[%s1753_s3 + $0x120] sm:$0xff] %v1262_v63  ;;  %1281 = vpow2.f32 %v952_v57  ;;  %v411_v8 = vpop.f32.mrb[38].mxu0  ;;  %v980_v25 = vmul.f32 -1.442695, %v513_v14 }
 0x132   :  { %v1266_v7 = vpop.eup %1265  ;;  %865 = vst [vmem:[%s1753_s3 + $0x128] sm:$0xff] %v1264_v3  ;;  %1283 = vpow2.f32 %v953_v60  ;;  %v515_v9 = vpop.f32.mrb[38].mxu1  ;;  %v412_v12 = vadd.f32 %v1552_v30, %v411_v8 }
 0x133   :  { %v1268_v10 = vpop.eup %1267  ;;  %v695_v11 = vadd.f32 1.0, %v1266_v7  ;;  %1285 = vpow2.f32 %v978_v62  ;;  %v1061_v13 = vpop.f32.mrb[39].mxu0  ;;  %v516_v18 = vadd.f32 %v1552_v30, %v515_v9 }
 0x134   :  { %v1113_v15 = vpop.f32.mrb[39].mxu1  ;;  %v1270_v16 = vpop.eup %1269  ;;  %v696_v17 = vadd.f32 1.0, %v1268_v10  ;;  %1287 = vpow2.f32 %v979_v1  ;;  %v955_v23 = vmul.f32 -1.442695, %v412_v12 }
 0x135   :  { %v1272_v19 = vpop.eup %1271  ;;  %1289 = vrcp.f32 %v695_v11  ;;  %v721_v20 = vadd.f32 1.0, %v1270_v16  ;;  %v416_v27 = vpop.f32.mrb[40].mxu0  ;;  %v981_v28 = vmul.f32 -1.442695, %v516_v18 }
 0x136   :  { %1291 = vrcp.f32 %v696_v17  ;;  %v722_v22 = vadd.f32 1.0, %v1272_v19  ;;  %v1274_v24 = vpop.eup %1273  ;;  %v520_v29 = vpop.f32.mrb[40].mxu1  ;;  %v417_v32 = vadd.f32 %v1552_v30, %v416_v27 }
 0x137   :  { %1293 = vrcp.f32 %v721_v20  ;;  %v1276_v26 = vpop.eup %1275  ;;  %840 = vst [vmem:[%s1753_s3 + $0x60] sm:$0xff] %v1274_v24  ;;  %v1064_v33 = vpop.f32.mrb[41].mxu0  ;;  %v521_v42 = vadd.f32 %v1552_v30, %v520_v29 }
 0x138   :  { %1295 = vrcp.f32 %v722_v22  ;;  %841 = vst [vmem:[%s1753_s3 + $0x68] sm:$0xff] %v1276_v26  ;;  %v1116_v34 = vpop.f32.mrb[41].mxu1  ;;  %v419_v36 = vpop.f32.mrb[42].mxu0  ;;  %v956_v39 = vmul.f32 -1.442695, %v417_v32 }
 0x139   :  { %v1278_v31 = vpop.eup %1277  ;;  %1297 = vpow2.f32 %v954_v21  ;;  %v523_v37 = vpop.f32.mrb[42].mxu1  ;;  %v420_v40 = vadd.f32 %v1552_v30, %v419_v36  ;;  %v982_v54 = vmul.f32 -1.442695, %v521_v42 }
 0x13a   :  { %v1280_v35 = vpop.eup %1279  ;;  %866 = vst [vmem:[%s1753_s3 + $0x130] sm:$0xff] %v1278_v31  ;;  %1299 = vpow2.f32 %v955_v23  ;;  %v1065_v41 = vpop.f32.mrb[43].mxu0  ;;  %v524_v46 = vadd.f32 %v1552_v30, %v523_v37 }
 0x13b   :  { %v1282_v38 = vpop.eup %1281  ;;  %867 = vst [vmem:[%s1753_s3 + $0x138] sm:$0xff] %v1280_v35  ;;  %1301 = vpow2.f32 %v980_v25  ;;  %v1117_v43 = vpop.f32.mrb[43].mxu1  ;;  %v957_v51 = vmul.f32 -1.442695, %v420_v40 }
 0x13c   :  { %v1284_v44 = vpop.eup %1283  ;;  %v697_v45 = vadd.f32 1.0, %v1282_v38  ;;  %1303 = vpow2.f32 %v981_v28  ;;  %v983_v57 = vmul.f32 -1.442695, %v524_v46 }
 0x13d   :  { %v1286_v47 = vpop.eup %1285  ;;  %v698_v48 = vadd.f32 1.0, %v1284_v44  ;;  %1305 = vpow2.f32 %v956_v39  ;;  %v424_v56 = vpop.f32.mrb[44].mxu0 }
 0x13e   :  { %v1288_v49 = vpop.eup %1287  ;;  %1307 = vrcp.f32 %v697_v45  ;;  %v723_v50 = vadd.f32 1.0, %v1286_v47  ;;  %v528_v58 = vpop.f32.mrb[44].mxu1  ;;  %v425_v60 = vadd.f32 %v1552_v30, %v424_v56 }
 0x13f   :  { %v1290_v52 = vpop.eup %1289  ;;  %1309 = vrcp.f32 %v698_v48  ;;  %v724_v53 = vadd.f32 1.0, %v1288_v49  ;;  %v1068_v61 = vpop.f32.mrb[45].mxu0  ;;  %v529_v9 = vadd.f32 %v1552_v30, %v528_v58 }
 0x140   :  { %v1292_v55 = vpop.eup %1291  ;;  %842 = vst [vmem:[%s1753_s3 + $0x70] sm:$0xff] %v1290_v52  ;;  %1311 = vrcp.f32 %v723_v50  ;;  %v1120_v62 = vpop.f32.mrb[45].mxu1  ;;  %v958_v3 = vmul.f32 -1.442695, %v425_v60 }
 0x141   :  { %v1294_v59 = vpop.eup %1293  ;;  %843 = vst [vmem:[%s1753_s3 + $0x78] sm:$0xff] %v1292_v55  ;;  %1313 = vrcp.f32 %v724_v53  ;;  %v427_v0 = vpop.f32.mrb[46].mxu0  ;;  %v984_v19 = vmul.f32 -1.442695, %v529_v9 }
 0x142   :  { %v1296_v63 = vpop.eup %1295  ;;  %868 = vst [vmem:[%s1753_s3 + $0x140] sm:$0xff] %v1294_v59  ;;  %1315 = vpow2.f32 %v957_v51  ;;  %v531_v1 = vpop.f32.mrb[46].mxu1  ;;  %v428_v4 = vadd.f32 %v1552_v30, %v427_v0 }
 0x143   :  { %v1298_v2 = vpop.eup %1297  ;;  %869 = vst [vmem:[%s1753_s3 + $0x148] sm:$0xff] %v1296_v63  ;;  %1317 = vpow2.f32 %v982_v54  ;;  %v1069_v5 = vpop.f32.mrb[47].mxu0 }
 0x144   :  { %v1121_v6 = vpop.f32.mrb[47].mxu1  ;;  %v1300_v7 = vpop.eup %1299  ;;  %v699_v8 = vadd.f32 1.0, %v1298_v2  ;;  %1319 = vpow2.f32 %v983_v57  ;;  %v959_v16 = vmul.f32 -1.442695, %v428_v4 }
 0x145   :  { %v1302_v10 = vpop.eup %1301  ;;  %v700_v11 = vadd.f32 1.0, %v1300_v7  ;;  %1321 = vpow2.f32 %v958_v3  ;;  %v432_v20 = vpop.f32.mrb[48].mxu0 }
 0x146   :  { %v1304_v12 = vpop.eup %1303  ;;  %1323 = vrcp.f32 %v699_v8  ;;  %v725_v13 = vadd.f32 1.0, %v1302_v10  ;;  %v433_v22 = vadd.f32 %v1552_v30, %v432_v20  ;;  %v1072_v23 = vpop.f32.mrb[49].mxu0 }
 0x147   :  { %v1306_v14 = vpop.eup %1305  ;;  %1325 = vrcp.f32 %v700_v11  ;;  %v726_v15 = vadd.f32 1.0, %v1304_v12  ;;  %v435_v25 = vpop.f32.mrb[50].mxu0 }
 0x148   :  { %v1308_v17 = vpop.eup %1307  ;;  %1327 = vrcp.f32 %v725_v13  ;;  %v701_v18 = vadd.f32 1.0, %v1306_v14  ;;  %v960_v27 = vmul.f32 -1.442695, %v433_v22  ;;  %v436_v28 = vadd.f32 %v1552_v30, %v435_v25  ;;  %v1073_v29 = vpop.f32.mrb[51].mxu0 }
 0x149   :  { %v1310_v21 = vpop.eup %1309  ;;  %844 = vst [vmem:[%s1753_s3 + $0x80] sm:$0xff] %v1308_v17  ;;  %1329 = vrcp.f32 %v726_v15 }
 0x14a   :  { %v1312_v24 = vpop.eup %1311  ;;  %845 = vst [vmem:[%s1753_s3 + $0x88] sm:$0xff] %v1310_v21  ;;  %1331 = vrcp.f32 %v701_v18  ;;  %v961_v38 = vmul.f32 -1.442695, %v436_v28 }
 0x14b   :  { %v1314_v26 = vpop.eup %1313  ;;  %870 = vst [vmem:[%s1753_s3 + $0x150] sm:$0xff] %v1312_v24  ;;  %1333 = vpow2.f32 %v959_v16 }
 0x14c   :  { %v1316_v31 = vpop.eup %1315  ;;  %871 = vst [vmem:[%s1753_s3 + $0x158] sm:$0xff] %v1314_v26  ;;  %1335 = vpow2.f32 %v984_v19 }
 0x14d   :  { %v1318_v32 = vpop.eup %1317  ;;  %v702_v33 = vadd.f32 1.0, %v1316_v31  ;;  %1337 = vpow2.f32 %v960_v27 }
 0x14e   :  { %v1320_v34 = vpop.eup %1319  ;;  %v727_v35 = vadd.f32 1.0, %v1318_v32 }
 0x14f   :  { %v1322_v36 = vpop.eup %1321  ;;  %1339 = vrcp.f32 %v702_v33  ;;  %v728_v37 = vadd.f32 1.0, %v1320_v34 }
 0x150   :  { %v1324_v39 = vpop.eup %1323  ;;  %1341 = vrcp.f32 %v727_v35  ;;  %v703_v40 = vadd.f32 1.0, %v1322_v36 }
 0x151   :  { %v1326_v30 = vpop.eup %1325  ;;  %846 = vst [vmem:[%s1753_s3 + $0x90] sm:$0xff] %v1324_v39  ;;  %1343 = vrcp.f32 %v728_v37 }
 0x152   :  { %v1328_v41 = vpop.eup %1327  ;;  %847 = vst [vmem:[%s1753_s3 + $0x98] sm:$0xff] %v1326_v30  ;;  %1345 = vrcp.f32 %v703_v40 }
 0x153   :  { %v1330_v42 = vpop.eup %1329  ;;  %872 = vst [vmem:[%s1753_s3 + $0x160] sm:$0xff] %v1328_v41  ;;  %1347 = vpow2.f32 %v961_v38 }
 0x154   :  { %v1332_v43 = vpop.eup %1331  ;;  %873 = vst [vmem:[%s1753_s3 + $0x168] sm:$0xff] %v1330_v42 }
 0x155   :  { %v1334_v44 = vpop.eup %1333  ;;  %848 = vst [vmem:[%s1753_s3 + $0xa0] sm:$0xff] %v1332_v43 }
 0x156   :  { %v1336_v45 = vpop.eup %1335  ;;  %v704_v46 = vadd.f32 1.0, %v1334_v44 }
 0x157   :  { %v1338_v47 = vpop.eup %1337  ;;  %v729_v48 = vadd.f32 1.0, %v1336_v45 }
 0x158   :  { %1349 = vrcp.f32 %v704_v46  ;;  %v705_v49 = vadd.f32 1.0, %v1338_v47 }
 0x159   :  { %v1340_v50 = vpop.eup %1339  ;;  %1351 = vrcp.f32 %v729_v48 }
 0x15a   :  { %v1342_v51 = vpop.eup %1341  ;;  %849 = vst [vmem:[%s1753_s3 + $0xa8] sm:$0xff] %v1340_v50  ;;  %1353 = vrcp.f32 %v705_v49 }
 0x15b   :  { %v1344_v52 = vpop.eup %1343  ;;  %874 = vst [vmem:[%s1753_s3 + $0x170] sm:$0xff] %v1342_v51 }
 0x15c   :  { %v1346_v53 = vpop.eup %1345  ;;  %875 = vst [vmem:[%s1753_s3 + $0x178] sm:$0xff] %v1344_v52 }
 0x15d   :  { %v1348_v54 = vpop.eup %1347  ;;  %850 = vst [vmem:[%s1753_s3 + $0xb0] sm:$0xff] %v1346_v53 }
 0x15e   :  { %v706_v55 = vadd.f32 1.0, %v1348_v54 }
 0x160   :  { %1355 = vrcp.f32 %v706_v55 }
 0x162   :  { %v1350_v56 = vpop.eup %1349 }
 0x163   :  { %v1352_v57 = vpop.eup %1351  ;;  %851 = vst [vmem:[%s1753_s3 + $0xb8] sm:$0xff] %v1350_v56 }
 0x164   :  { %v1354_v58 = vpop.eup %1353  ;;  %876 = vst [vmem:[%s1753_s3 + $0x180] sm:$0xff] %v1352_v57 }
 0x165   :  { %852 = vst [vmem:[%s1753_s3 + $0xc0] sm:$0xff] %v1354_v58 }
 0x16a   :  { %v1356_v59 = vpop.eup %1355 }
 0x16b   :  { %853 = vst [vmem:[%s1753_s3 + $0xc8] sm:$0xff] %v1356_v59 }

</bundles_post_ra>
